<compile_context>
chip_gen: v7x
topology: tpu7x:2x2x1
jax: 0.10.0
libtpu: 0.0.40
codegen_flags: <defaults>
</compile_context>

<pallas_src>
import functools

import jax
import jax.numpy as jnp
from jax.experimental import pallas as pl
from jax.experimental.pallas import tpu as pltpu

# Finite "+inf" sentinel: pushes masked-out rows to the end of the ascending sort.
BIG = 1e30


def _bitonic_sort_segments(x, seg_len):
    """Ascending sort within each aligned `seg_len`-row segment of a 2-D [N, C] array.

    Classic bitonic network, O(log^2 seg_len) stages.  Each stage is two sublane
    rotates (XLU) + compares/selects (VPU) over the whole slab, so the emitted code is
    independent of the number of segments and only O(log^2 T) in the sequence length.
    `seg_len` must be a power of two and divide N (segments are seg_len-aligned, so a
    compare-exchange at stride j < seg_len never crosses a segment boundary).
    """
    n = x.shape[0]
    idx = jax.lax.broadcasted_iota(jnp.int32, x.shape, 0)   # global row index
    idx_loc = idx & (seg_len - 1)                           # row index within segment
    k = 2
    while k <= seg_len:
        j = k // 2
        while j >= 1:
            want = idx ^ j                                   # partner row (same segment)
            xa = pltpu.roll(x, shift=j, axis=0)
            xb = pltpu.roll(x, shift=n - j, axis=0)
            ia = pltpu.roll(idx, shift=j, axis=0)
            # Rotation-sign agnostic partner fetch: pick whichever rolled copy carries
            # row (idx ^ j) at this position.
            partner = jnp.where(ia == want, xa, xb)
            low = (idx & j) == 0                             # lower element of the pair
            asc = (idx_loc & k) == 0                         # ascending sub-merge
            take_min = (low & asc) | ((~low) & (~asc))
            x = jnp.where(take_min, jnp.minimum(x, partner), jnp.maximum(x, partner))
            j //= 2
        k *= 2
    return x


def _fused_kernel(h2_ref, masks2_ref, sel_ref, wcs_ref, dirs_ref, small_ref, out_ref,
                  *, batch, seq, content_dim):
    B, T = batch, seq
    h2 = h2_ref[...]                 # [B*T, D]  (f32 or bf16 compute dtype)
    masks2 = masks2_ref[...]         # [B*T, 2]  binary f32: (tt==0)&m , (tt==1)&m
    sel = sel_ref[...]               # [3B, B*T] selector: cls one-hots | mask0 | mask1
    wcs = wcs_ref[...]               # [2D, Cd+Sd] merged content|style projection
    dirs = dirs_ref[...]             # [D, P]    slicing directions (pre-transposed)
    small = small_ref[...]           # [6, F]    packed tiny params (f32)
    CS = wcs.shape[1]

    # ---- pooling: ONE MXU dot yields cls / sum0 / sum1; counts from one lane reduce --
    pooled = jnp.dot(sel, h2, preferred_element_type=jnp.float32)        # [3B, D]
    cnts = jnp.sum(sel.astype(jnp.float32), axis=1, keepdims=True)       # [3B, 1]
    cls = pooled[0:B]                                                    # H[:, 0, :]
    sum0, r0 = pooled[B:2 * B], cnts[B:2 * B]
    sum1, r1 = pooled[2 * B:3 * B], cnts[2 * B:3 * B]
    mean0 = sum0 / jnp.maximum(r0, 1.0)                                  # clamp(min=1)
    mean1 = sum1 / jnp.maximum(r1, 1.0)
    rep = jnp.concatenate([cls, mean0 - mean1], axis=-1)                 # [B, 2D]

    # ---- fused content/style projection (one MXU dot) + sigmoid gating ---------------
    b_cs = small[4:5, 0:CS]
    g = jax.nn.sigmoid(small[5:6, 0:1])                                  # [1, 1]
    cs = jnp.dot(rep, wcs, preferred_element_type=jnp.float32) + b_cs    # [B, Cd+Sd]
    col = jax.lax.broadcasted_iota(jnp.int32, cs.shape, 1)
    fused = cs * jnp.where(col < content_dim, 1.0 - g, g)                # [C*(1-g)|S*g]

    # ---- max-sliced W1: single projection matmul + segmented bitonic sort ------------
    # NOTE: assumes finite H (NaNs would poison min/max in the sorting network).
    proj = jnp.dot(h2, dirs, preferred_element_type=jnp.float32)         # [B*T, P]
    pa = jnp.where(masks2[:, 0:1] > 0.5, proj, BIG)                      # set-A rows
    pb = jnp.where(masks2[:, 1:2] > 0.5, proj, BIG)                      # set-B rows
    slab = jnp.concatenate([pa, pb], axis=0)                             # [2*B*T, P]
    slab = _bitonic_sort_segments(slab, T)                               # per (b, set)
    adiff = jnp.abs(slab[:B * T] - slab[B * T:])                         # [B*T, P]

    mmin_raw = jnp.minimum(r0, r1)                                       # [B, 1]
    mmin = jnp.maximum(mmin_raw, 1.0)                                    # clamp >= 1
    r_it = jax.lax.broadcasted_iota(jnp.int32, (B, B * T), 0)
    c_it = jax.lax.broadcasted_iota(jnp.int32, (B, B * T), 1)
    local = c_it - r_it * T                                              # row-in-segment
    keep = ((local >= 0) & (local.astype(jnp.float32) < mmin)).astype(jnp.float32)
    dsum = jnp.dot(keep, adiff, preferred_element_type=jnp.float32)      # [B, P]
    d_ot = jnp.max(dsum / mmin, axis=1, keepdims=True)                   # [B, 1]
    d_ot = jnp.where(mmin_raw > 0.5, d_ot, 0.0)                          # empty seg -> 0

    # ---- classifier head: LayerNorm + 2-wide Linear on the VPU (MXU would be <2%) ----
    ln_w, ln_b = small[0:1, :], small[1:2, :]
    w0, w1 = small[2:3, :], small[3:4, :]
    b_cls = small[5:6, 1:3]
    z = jnp.concatenate([fused, d_ot], axis=1)                           # [B, F]
    mu = jnp.mean(z, axis=-1, keepdims=True)
    var = jnp.mean((z - mu) ** 2, axis=-1, keepdims=True)
    zn = (z - mu) * jax.lax.rsqrt(var + 1e-5) * ln_w + ln_b
    logit0 = jnp.sum(zn * w0, axis=-1, keepdims=True)                    # [B, 1]
    logit1 = jnp.sum(zn * w1, axis=-1, keepdims=True)
    out_ref[...] = jnp.concatenate([logit0, logit1], axis=1) + b_cls


def ot_style_forward(H, mask0, mask1, params, dirs, *, compute_dtype=jnp.float32):
    """Single fused Pallas kernel for OTStyleModel.forward (post-encoder part)."""
    B, T, D = H.shape
    Cd = params["wc"].shape[1]
    Sd = params["ws"].shape[1]
    F = Cd + Sd + 1
    assert T % 8 == 0 and (T & (T - 1)) == 0, "seq len must be a power of two (pad upstream)"

    # ----- wrapper-side layout plumbing (tiny XLA ops, no kernel compute hoisted) -----
    h2 = H.reshape(B * T, D).astype(compute_dtype)                       # [B*T, D]
    masks2 = jnp.stack([mask0, mask1], axis=-1).reshape(B * T, 2)        # [B*T, 2]

    # Pooling selector: rows [0,B) one-hot(CLS at column b*T), rows [B,2B) mask0 scattered
    # into batch-b's column segment, rows [2B,3B) mask1.  One MXU dot -> cls/sum0/sum1.
    c = jnp.arange(B * T)[None, :]
    b_rows = jnp.arange(B)[:, None]
    in_seg = (c // T) == b_rows                                          # [B, B*T]
    cls_rows = (c == b_rows * T).astype(jnp.float32)
    m0_rows = jnp.where(in_seg, mask0.reshape(1, B * T), 0.0)
    m1_rows = jnp.where(in_seg, mask1.reshape(1, B * T), 0.0)
    sel = jnp.concatenate([cls_rows, m0_rows, m1_rows], axis=0).astype(compute_dtype)

    w_cs = jnp.concatenate([params["wc"], params["ws"]], axis=1)         # [2D, Cd+Sd]
    dirs_t = dirs.T.astype(compute_dtype)                                # [D, P]

    # Six tiny parameters packed into one [6, F] array (one DMA stream instead of six).
    b_cs = jnp.pad(jnp.concatenate([params["bc"], params["bs"]], axis=1), ((0, 0), (0, 1)))
    misc = jnp.concatenate([params["gate"], params["b_cls"],
                            jnp.zeros((1, F - 3), jnp.float32)], axis=1)
    small = jnp.concatenate([params["ln_w"], params["ln_b"],
                             params["w_cls"].T, b_cs, misc], axis=0)     # [6, F]

    kernel = functools.partial(_fused_kernel, batch=B, seq=T, content_dim=Cd)
    vmem = lambda: pl.BlockSpec(memory_space=pltpu.MemorySpace.VMEM)
    return pl.pallas_call(
        kernel,
        out_shape=jax.ShapeDtypeStruct((B, 2), jnp.float32),
        in_specs=[vmem() for _ in range(6)],
        out_specs=vmem(),
    )(h2, masks2, sel, w_cs, dirs_t, small)


# ------------------------------ pure-JAX reference (for sanity) ------------------------
def reference_forward(H, mask0, mask1, params, dirs):
    B, T, D = H.shape
    cls = H[:, 0, :]

    def mmean(mask):
        s = jnp.sum(H * mask[:, :, None], axis=1)
        c = jnp.maximum(jnp.sum(mask, axis=1, keepdims=True), 1.0)
        return s / c

    rep = jnp.concatenate([cls, mmean(mask0) - mmean(mask1)], axis=1)
    C = rep @ params["wc"] + params["bc"][0]
    S = rep @ params["ws"] + params["bs"][0]
    g = jax.nn.sigmoid(params["gate"][0, 0])
    fused = jnp.concatenate([C * (1.0 - g), S * g], axis=1)

    Pr = jnp.einsum("btd,pd->btp", H, dirs)
    pa = jnp.sort(jnp.where(mask0[:, :, None] > 0.5, Pr, BIG), axis=1)
    pb = jnp.sort(jnp.where(mask1[:, :, None] > 0.5, Pr, BIG), axis=1)
    mmin_raw = jnp.minimum(jnp.sum(mask0, axis=1), jnp.sum(mask1, axis=1))
    mmin = jnp.maximum(mmin_raw, 1.0)
    row = jnp.arange(T, dtype=jnp.float32)[None, :, None]
    diff = jnp.where(row < mmin[:, None, None], jnp.abs(pa - pb), 0.0)
    d_ot = jnp.max(jnp.sum(diff, axis=1) / mmin[:, None], axis=1, keepdims=True)
    d_ot = jnp.where(mmin_raw[:, None] > 0.5, d_ot, 0.0)

    z = jnp.concatenate([fused, d_ot], axis=1)
    mu = z.mean(-1, keepdims=True)
    var = ((z - mu) ** 2).mean(-1, keepdims=True)
    zn = (z - mu) / jnp.sqrt(var + 1e-5) * params["ln_w"][0] + params["ln_b"][0]
    return zn @ params["w_cls"] + params["b_cls"][0]


if __name__ == "__main__":
    # Small shapes consistent with the module (d_model -> 32, content_dim -> 24,
    # style_dim -> 16, n_proj -> 32, batch -> 2, seq -> 16).
    B, T, D = 2, 16, 32
    Cd, Sd, P = 24, 16, 32
    F = Cd + Sd + 1

    key = jax.random.PRNGKey(0)
    ks = jax.random.split(key, 8)

    H = jax.random.normal(ks[0], (B, T, D), jnp.float32)              # encoder last_hidden_state

    # token_type_ids / attention_mask (deterministic synthetic tokenization)
    sep_pos = jnp.array([8, 10])
    seq_len = jnp.array([14, 16])
    pos = jnp.arange(T)[None, :]
    attn = pos < seq_len[:, None]
    tt = pos >= sep_pos[:, None]
    mask0 = jnp.logical_and(~tt, attn).astype(jnp.float32)            # (tt==0) & (m==1)
    mask1 = jnp.logical_and(tt, attn).astype(jnp.float32)             # (tt==1) & (m==1)

    params = {
        "wc": jax.random.normal(ks[1], (2 * D, Cd), jnp.float32) * 0.1,   # content_proj.weight.T
        "bc": jax.random.normal(ks[2], (1, Cd), jnp.float32) * 0.1,
        "ws": jax.random.normal(ks[3], (2 * D, Sd), jnp.float32) * 0.1,   # style_proj.weight.T
        "bs": jax.random.normal(ks[4], (1, Sd), jnp.float32) * 0.1,
        "gate": jnp.full((1, 1), 0.5, jnp.float32),                       # nn.Parameter([0.5])
        "ln_w": jnp.ones((1, F), jnp.float32),                            # LayerNorm default init
        "ln_b": jnp.zeros((1, F), jnp.float32),
        "w_cls": jax.random.normal(ks[5], (F, 2), jnp.float32) * 0.1,     # classifier Linear.T
        "b_cls": jax.random.normal(ks[6], (1, 2), jnp.float32) * 0.1,
    }

    # resample_proj=True path: randn directions, row-normalized (host/XLA side).
    dirs = jax.random.normal(ks[7], (P, D), jnp.float32)
    dirs = dirs / jnp.linalg.norm(dirs, axis=1, keepdims=True)

    logits = jax.jit(ot_style_forward)(H, mask0, mask1, params, dirs)
    jax.block_until_ready(logits)

    ref = reference_forward(H, mask0, mask1, params, dirs)
    assert logits.shape == (B, 2)
    assert jnp.allclose(logits, ref, rtol=1e-2, atol=1e-2), (logits, ref)

    print("KERNEL_OK")
</pallas_src>

<mosaic_0001>
module attributes {stable_mosaic.version = 11 : i64} {
  func.func @_fused_kernel(%arg0: memref<32x32xf32, #tpu.memory_space<vmem>>, %arg1: memref<32x2xf32, #tpu.memory_space<vmem>>, %arg2: memref<6x32xf32, #tpu.memory_space<vmem>>, %arg3: memref<64x40xf32, #tpu.memory_space<vmem>>, %arg4: memref<32x32xf32, #tpu.memory_space<vmem>>, %arg5: memref<6x41xf32, #tpu.memory_space<vmem>>, %arg6: memref<2x2xf32, #tpu.memory_space<vmem>>) attributes {dimension_semantics = [], scalar_prefetch = 0 : i64, scratch_operands = 0 : i64, tpu.core_type = #tpu.core_type<tc>} {
    %c0 = arith.constant 0 : index
    %c0_0 = arith.constant 0 : index
    %0 = vector.load %arg0[%c0, %c0_0] : memref<32x32xf32, #tpu.memory_space<vmem>>, vector<32x32xf32>
    %c0_1 = arith.constant 0 : index
    %c0_2 = arith.constant 0 : index
    %1 = vector.load %arg1[%c0_1, %c0_2] : memref<32x2xf32, #tpu.memory_space<vmem>>, vector<32x2xf32>
    %c0_3 = arith.constant 0 : index
    %c0_4 = arith.constant 0 : index
    %2 = vector.load %arg2[%c0_3, %c0_4] : memref<6x32xf32, #tpu.memory_space<vmem>>, vector<6x32xf32>
    %c0_5 = arith.constant 0 : index
    %c0_6 = arith.constant 0 : index
    %3 = vector.load %arg3[%c0_5, %c0_6] : memref<64x40xf32, #tpu.memory_space<vmem>>, vector<64x40xf32>
    %c0_7 = arith.constant 0 : index
    %c0_8 = arith.constant 0 : index
    %4 = vector.load %arg4[%c0_7, %c0_8] : memref<32x32xf32, #tpu.memory_space<vmem>>, vector<32x32xf32>
    %c0_9 = arith.constant 0 : index
    %c0_10 = arith.constant 0 : index
    %5 = vector.load %arg5[%c0_9, %c0_10] : memref<6x41xf32, #tpu.memory_space<vmem>>, vector<6x41xf32>
    %cst = arith.constant dense<0.000000e+00> : vector<6x32xf32>
    %6 = tpu.matmul %2, %0, %cst {dimension_numbers = #tpu.dot_dimension_numbers<[1], [0], [0], [1], [0, 0, 1, 1], [], []>} : vector<6x32xf32>, vector<32x32xf32>, vector<6x32xf32> -> vector<6x32xf32>
    %cst_11 = arith.constant dense<0.000000e+00> : vector<6xf32>
    %7 = vector.multi_reduction <add>, %2, %cst_11 [1] : vector<6x32xf32> to vector<6xf32>
    %8 = vector.shape_cast %7 : vector<6xf32> to vector<6x1xf32>
    %9 = vector.extract_strided_slice %6 {offsets = [0, 0], sizes = [2, 32], strides = [1, 1]} : vector<6x32xf32> to vector<2x32xf32>
    %10 = vector.extract_strided_slice %6 {offsets = [2, 0], sizes = [2, 32], strides = [1, 1]} : vector<6x32xf32> to vector<2x32xf32>
    %11 = vector.extract_strided_slice %8 {offsets = [2, 0], sizes = [2, 1], strides = [1, 1]} : vector<6x1xf32> to vector<2x1xf32>
    %12 = vector.extract_strided_slice %6 {offsets = [4, 0], sizes = [2, 32], strides = [1, 1]} : vector<6x32xf32> to vector<2x32xf32>
    %13 = vector.extract_strided_slice %8 {offsets = [4, 0], sizes = [2, 1], strides = [1, 1]} : vector<6x1xf32> to vector<2x1xf32>
    %cst_12 = arith.constant 1.000000e+00 : f32
    %14 = vector.broadcast %cst_12 : f32 to vector<2x1xf32>
    %15 = arith.maximumf %11, %14 : vector<2x1xf32>
    %16 = vector.broadcast %15 : vector<2x1xf32> to vector<2x32xf32>
    %17 = arith.divf %10, %16 : vector<2x32xf32>
    %cst_13 = arith.constant 1.000000e+00 : f32
    %18 = vector.broadcast %cst_13 : f32 to vector<2x1xf32>
    %19 = arith.maximumf %13, %18 : vector<2x1xf32>
    %20 = vector.broadcast %19 : vector<2x1xf32> to vector<2x32xf32>
    %21 = arith.divf %12, %20 : vector<2x32xf32>
    %22 = arith.subf %17, %21 : vector<2x32xf32>
    %23 = tpu.concatenate %9, %22 in 1 : vector<2x32xf32>, vector<2x32xf32> -> vector<2x64xf32>
    %24 = vector.extract_strided_slice %5 {offsets = [4, 0], sizes = [1, 40], strides = [1, 1]} : vector<6x41xf32> to vector<1x40xf32>
    %25 = vector.extract_strided_slice %5 {offsets = [5, 0], sizes = [1, 1], strides = [1, 1]} : vector<6x41xf32> to vector<1x1xf32>
    %26 = arith.negf %25 : vector<1x1xf32>
    %27 = math.exp %26 : vector<1x1xf32>
    %cst_14 = arith.constant 1.000000e+00 : f32
    %28 = vector.broadcast %cst_14 : f32 to vector<1x1xf32>
    %29 = arith.addf %28, %27 : vector<1x1xf32>
    %30 = arith.divf %28, %29 : vector<1x1xf32>
    %cst_15 = arith.constant dense<0.000000e+00> : vector<2x40xf32>
    %31 = tpu.matmul %23, %3, %cst_15 {dimension_numbers = #tpu.dot_dimension_numbers<[1], [0], [0], [1], [0, 0, 1, 1], [], []>} : vector<2x64xf32>, vector<64x40xf32>, vector<2x40xf32> -> vector<2x40xf32>
    %32 = vector.broadcast %24 : vector<1x40xf32> to vector<2x40xf32>
    %33 = arith.addf %31, %32 : vector<2x40xf32>
    %34 = tpu.iota {dimensions = array<i32: 1>} : vector<2x40xi32>
    %c24_i32 = arith.constant 24 : i32
    %35 = vector.broadcast %c24_i32 : i32 to vector<2x40xi32>
    %36 = arith.cmpi slt, %34, %35 : vector<2x40xi32>
    %cst_16 = arith.constant 1.000000e+00 : f32
    %37 = vector.broadcast %cst_16 : f32 to vector<1x1xf32>
    %38 = arith.subf %37, %30 : vector<1x1xf32>
    %39 = vector.shape_cast %38 : vector<1x1xf32> to vector<1x1xf32>
    %40 = vector.broadcast %39 : vector<1x1xf32> to vector<2x40xf32>
    %41 = vector.shape_cast %30 : vector<1x1xf32> to vector<1x1xf32>
    %42 = vector.broadcast %41 : vector<1x1xf32> to vector<2x40xf32>
    %43 = arith.select %36, %40, %42 : vector<2x40xi1>, vector<2x40xf32>
    %44 = arith.mulf %33, %43 : vector<2x40xf32>
    %cst_17 = arith.constant dense<0.000000e+00> : vector<32x32xf32>
    %45 = tpu.matmul %0, %4, %cst_17 {dimension_numbers = #tpu.dot_dimension_numbers<[1], [0], [0], [1], [0, 0, 1, 1], [], []>} : vector<32x32xf32>, vector<32x32xf32>, vector<32x32xf32> -> vector<32x32xf32>
    %46 = vector.extract_strided_slice %1 {offsets = [0, 0], sizes = [32, 1], strides = [1, 1]} : vector<32x2xf32> to vector<32x1xf32>
    %cst_18 = arith.constant 5.000000e-01 : f32
    %47 = vector.broadcast %cst_18 : f32 to vector<32x1xf32>
    %48 = arith.cmpf ogt, %46, %47 : vector<32x1xf32>
    %cst_19 = arith.constant 1.000000e+30 : f32
    %49 = vector.shape_cast %48 : vector<32x1xi1> to vector<32x1xi1>
    %50 = vector.broadcast %49 : vector<32x1xi1> to vector<32x32xi1>
    %51 = vector.broadcast %cst_19 : f32 to vector<32x32xf32>
    %52 = arith.select %50, %45, %51 : vector<32x32xi1>, vector<32x32xf32>
    %53 = vector.extract_strided_slice %1 {offsets = [0, 1], sizes = [32, 1], strides = [1, 1]} : vector<32x2xf32> to vector<32x1xf32>
    %cst_20 = arith.constant 5.000000e-01 : f32
    %54 = vector.broadcast %cst_20 : f32 to vector<32x1xf32>
    %55 = arith.cmpf ogt, %53, %54 : vector<32x1xf32>
    %cst_21 = arith.constant 1.000000e+30 : f32
    %56 = vector.shape_cast %55 : vector<32x1xi1> to vector<32x1xi1>
    %57 = vector.broadcast %56 : vector<32x1xi1> to vector<32x32xi1>
    %58 = vector.broadcast %cst_21 : f32 to vector<32x32xf32>
    %59 = arith.select %57, %45, %58 : vector<32x32xi1>, vector<32x32xf32>
    %60 = tpu.concatenate %52, %59 in 0 : vector<32x32xf32>, vector<32x32xf32> -> vector<64x32xf32>
    %61 = tpu.iota {dimensions = array<i32: 0>} : vector<64x32xi32>
    %c15_i32 = arith.constant 15 : i32
    %62 = vector.broadcast %c15_i32 : i32 to vector<64x32xi32>
    %63 = arith.andi %61, %62 : vector<64x32xi32>
    %c1_i32 = arith.constant 1 : i32
    %64 = vector.broadcast %c1_i32 : i32 to vector<64x32xi32>
    %65 = arith.xori %61, %64 : vector<64x32xi32>
    %c1_i32_22 = arith.constant 1 : i32
    %66 = tpu.dynamic_rotate %60 by %c1_i32_22 dim 0 : vector<64x32xf32>, i32 -> vector<64x32xf32>
    %c63_i32 = arith.constant 63 : i32
    %67 = tpu.dynamic_rotate %60 by %c63_i32 dim 0 : vector<64x32xf32>, i32 -> vector<64x32xf32>
    %c1_i32_23 = arith.constant 1 : i32
    %68 = tpu.dynamic_rotate %61 by %c1_i32_23 dim 0 : vector<64x32xi32>, i32 -> vector<64x32xi32>
    %69 = arith.cmpi eq, %68, %65 : vector<64x32xi32>
    %70 = arith.select %69, %66, %67 : vector<64x32xi1>, vector<64x32xf32>
    %c1_i32_24 = arith.constant 1 : i32
    %71 = vector.broadcast %c1_i32_24 : i32 to vector<64x32xi32>
    %72 = arith.andi %61, %71 : vector<64x32xi32>
    %c0_i32 = arith.constant 0 : i32
    %73 = vector.broadcast %c0_i32 : i32 to vector<64x32xi32>
    %74 = arith.cmpi eq, %72, %73 : vector<64x32xi32>
    %c2_i32 = arith.constant 2 : i32
    %75 = vector.broadcast %c2_i32 : i32 to vector<64x32xi32>
    %76 = arith.andi %63, %75 : vector<64x32xi32>
    %c0_i32_25 = arith.constant 0 : i32
    %77 = vector.broadcast %c0_i32_25 : i32 to vector<64x32xi32>
    %78 = arith.cmpi eq, %76, %77 : vector<64x32xi32>
    %79 = arith.andi %74, %78 : vector<64x32xi1>
    %cst_26 = arith.constant dense<true> : vector<64x32xi1>
    %80 = arith.xori %74, %cst_26 : vector<64x32xi1>
    %cst_27 = arith.constant dense<true> : vector<64x32xi1>
    %81 = arith.xori %78, %cst_27 : vector<64x32xi1>
    %82 = arith.andi %80, %81 : vector<64x32xi1>
    %83 = arith.ori %79, %82 : vector<64x32xi1>
    %84 = arith.minimumf %60, %70 : vector<64x32xf32>
    %85 = arith.maximumf %60, %70 : vector<64x32xf32>
    %86 = arith.select %83, %84, %85 : vector<64x32xi1>, vector<64x32xf32>
    %c2_i32_28 = arith.constant 2 : i32
    %87 = vector.broadcast %c2_i32_28 : i32 to vector<64x32xi32>
    %88 = arith.xori %61, %87 : vector<64x32xi32>
    %c2_i32_29 = arith.constant 2 : i32
    %89 = tpu.dynamic_rotate %86 by %c2_i32_29 dim 0 : vector<64x32xf32>, i32 -> vector<64x32xf32>
    %c62_i32 = arith.constant 62 : i32
    %90 = tpu.dynamic_rotate %86 by %c62_i32 dim 0 : vector<64x32xf32>, i32 -> vector<64x32xf32>
    %c2_i32_30 = arith.constant 2 : i32
    %91 = tpu.dynamic_rotate %61 by %c2_i32_30 dim 0 : vector<64x32xi32>, i32 -> vector<64x32xi32>
    %92 = arith.cmpi eq, %91, %88 : vector<64x32xi32>
    %93 = arith.select %92, %89, %90 : vector<64x32xi1>, vector<64x32xf32>
    %c2_i32_31 = arith.constant 2 : i32
    %94 = vector.broadcast %c2_i32_31 : i32 to vector<64x32xi32>
    %95 = arith.andi %61, %94 : vector<64x32xi32>
    %c0_i32_32 = arith.constant 0 : i32
    %96 = vector.broadcast %c0_i32_32 : i32 to vector<64x32xi32>
    %97 = arith.cmpi eq, %95, %96 : vector<64x32xi32>
    %c4_i32 = arith.constant 4 : i32
    %98 = vector.broadcast %c4_i32 : i32 to vector<64x32xi32>
    %99 = arith.andi %63, %98 : vector<64x32xi32>
    %c0_i32_33 = arith.constant 0 : i32
    %100 = vector.broadcast %c0_i32_33 : i32 to vector<64x32xi32>
    %101 = arith.cmpi eq, %99, %100 : vector<64x32xi32>
    %102 = arith.andi %97, %101 : vector<64x32xi1>
    %cst_34 = arith.constant dense<true> : vector<64x32xi1>
    %103 = arith.xori %97, %cst_34 : vector<64x32xi1>
    %cst_35 = arith.constant dense<true> : vector<64x32xi1>
    %104 = arith.xori %101, %cst_35 : vector<64x32xi1>
    %105 = arith.andi %103, %104 : vector<64x32xi1>
    %106 = arith.ori %102, %105 : vector<64x32xi1>
    %107 = arith.minimumf %86, %93 : vector<64x32xf32>
    %108 = arith.maximumf %86, %93 : vector<64x32xf32>
    %109 = arith.select %106, %107, %108 : vector<64x32xi1>, vector<64x32xf32>
    %c1_i32_36 = arith.constant 1 : i32
    %110 = vector.broadcast %c1_i32_36 : i32 to vector<64x32xi32>
    %111 = arith.xori %61, %110 : vector<64x32xi32>
    %c1_i32_37 = arith.constant 1 : i32
    %112 = tpu.dynamic_rotate %109 by %c1_i32_37 dim 0 : vector<64x32xf32>, i32 -> vector<64x32xf32>
    %c63_i32_38 = arith.constant 63 : i32
    %113 = tpu.dynamic_rotate %109 by %c63_i32_38 dim 0 : vector<64x32xf32>, i32 -> vector<64x32xf32>
    %c1_i32_39 = arith.constant 1 : i32
    %114 = tpu.dynamic_rotate %61 by %c1_i32_39 dim 0 : vector<64x32xi32>, i32 -> vector<64x32xi32>
    %115 = arith.cmpi eq, %114, %111 : vector<64x32xi32>
    %116 = arith.select %115, %112, %113 : vector<64x32xi1>, vector<64x32xf32>
    %c1_i32_40 = arith.constant 1 : i32
    %117 = vector.broadcast %c1_i32_40 : i32 to vector<64x32xi32>
    %118 = arith.andi %61, %117 : vector<64x32xi32>
    %c0_i32_41 = arith.constant 0 : i32
    %119 = vector.broadcast %c0_i32_41 : i32 to vector<64x32xi32>
    %120 = arith.cmpi eq, %118, %119 : vector<64x32xi32>
    %c4_i32_42 = arith.constant 4 : i32
    %121 = vector.broadcast %c4_i32_42 : i32 to vector<64x32xi32>
    %122 = arith.andi %63, %121 : vector<64x32xi32>
    %c0_i32_43 = arith.constant 0 : i32
    %123 = vector.broadcast %c0_i32_43 : i32 to vector<64x32xi32>
    %124 = arith.cmpi eq, %122, %123 : vector<64x32xi32>
    %125 = arith.andi %120, %124 : vector<64x32xi1>
    %cst_44 = arith.constant dense<true> : vector<64x32xi1>
    %126 = arith.xori %120, %cst_44 : vector<64x32xi1>
    %cst_45 = arith.constant dense<true> : vector<64x32xi1>
    %127 = arith.xori %124, %cst_45 : vector<64x32xi1>
    %128 = arith.andi %126, %127 : vector<64x32xi1>
    %129 = arith.ori %125, %128 : vector<64x32xi1>
    %130 = arith.minimumf %109, %116 : vector<64x32xf32>
    %131 = arith.maximumf %109, %116 : vector<64x32xf32>
    %132 = arith.select %129, %130, %131 : vector<64x32xi1>, vector<64x32xf32>
    %c4_i32_46 = arith.constant 4 : i32
    %133 = vector.broadcast %c4_i32_46 : i32 to vector<64x32xi32>
    %134 = arith.xori %61, %133 : vector<64x32xi32>
    %c4_i32_47 = arith.constant 4 : i32
    %135 = tpu.dynamic_rotate %132 by %c4_i32_47 dim 0 : vector<64x32xf32>, i32 -> vector<64x32xf32>
    %c60_i32 = arith.constant 60 : i32
    %136 = tpu.dynamic_rotate %132 by %c60_i32 dim 0 : vector<64x32xf32>, i32 -> vector<64x32xf32>
    %c4_i32_48 = arith.constant 4 : i32
    %137 = tpu.dynamic_rotate %61 by %c4_i32_48 dim 0 : vector<64x32xi32>, i32 -> vector<64x32xi32>
    %138 = arith.cmpi eq, %137, %134 : vector<64x32xi32>
    %139 = arith.select %138, %135, %136 : vector<64x32xi1>, vector<64x32xf32>
    %c4_i32_49 = arith.constant 4 : i32
    %140 = vector.broadcast %c4_i32_49 : i32 to vector<64x32xi32>
    %141 = arith.andi %61, %140 : vector<64x32xi32>
    %c0_i32_50 = arith.constant 0 : i32
    %142 = vector.broadcast %c0_i32_50 : i32 to vector<64x32xi32>
    %143 = arith.cmpi eq, %141, %142 : vector<64x32xi32>
    %c8_i32 = arith.constant 8 : i32
    %144 = vector.broadcast %c8_i32 : i32 to vector<64x32xi32>
    %145 = arith.andi %63, %144 : vector<64x32xi32>
    %c0_i32_51 = arith.constant 0 : i32
    %146 = vector.broadcast %c0_i32_51 : i32 to vector<64x32xi32>
    %147 = arith.cmpi eq, %145, %146 : vector<64x32xi32>
    %148 = arith.andi %143, %147 : vector<64x32xi1>
    %cst_52 = arith.constant dense<true> : vector<64x32xi1>
    %149 = arith.xori %143, %cst_52 : vector<64x32xi1>
    %cst_53 = arith.constant dense<true> : vector<64x32xi1>
    %150 = arith.xori %147, %cst_53 : vector<64x32xi1>
    %151 = arith.andi %149, %150 : vector<64x32xi1>
    %152 = arith.ori %148, %151 : vector<64x32xi1>
    %153 = arith.minimumf %132, %139 : vector<64x32xf32>
    %154 = arith.maximumf %132, %139 : vector<64x32xf32>
    %155 = arith.select %152, %153, %154 : vector<64x32xi1>, vector<64x32xf32>
    %c2_i32_54 = arith.constant 2 : i32
    %156 = vector.broadcast %c2_i32_54 : i32 to vector<64x32xi32>
    %157 = arith.xori %61, %156 : vector<64x32xi32>
    %c2_i32_55 = arith.constant 2 : i32
    %158 = tpu.dynamic_rotate %155 by %c2_i32_55 dim 0 : vector<64x32xf32>, i32 -> vector<64x32xf32>
    %c62_i32_56 = arith.constant 62 : i32
    %159 = tpu.dynamic_rotate %155 by %c62_i32_56 dim 0 : vector<64x32xf32>, i32 -> vector<64x32xf32>
    %c2_i32_57 = arith.constant 2 : i32
    %160 = tpu.dynamic_rotate %61 by %c2_i32_57 dim 0 : vector<64x32xi32>, i32 -> vector<64x32xi32>
    %161 = arith.cmpi eq, %160, %157 : vector<64x32xi32>
    %162 = arith.select %161, %158, %159 : vector<64x32xi1>, vector<64x32xf32>
    %c2_i32_58 = arith.constant 2 : i32
    %163 = vector.broadcast %c2_i32_58 : i32 to vector<64x32xi32>
    %164 = arith.andi %61, %163 : vector<64x32xi32>
    %c0_i32_59 = arith.constant 0 : i32
    %165 = vector.broadcast %c0_i32_59 : i32 to vector<64x32xi32>
    %166 = arith.cmpi eq, %164, %165 : vector<64x32xi32>
    %c8_i32_60 = arith.constant 8 : i32
    %167 = vector.broadcast %c8_i32_60 : i32 to vector<64x32xi32>
    %168 = arith.andi %63, %167 : vector<64x32xi32>
    %c0_i32_61 = arith.constant 0 : i32
    %169 = vector.broadcast %c0_i32_61 : i32 to vector<64x32xi32>
    %170 = arith.cmpi eq, %168, %169 : vector<64x32xi32>
    %171 = arith.andi %166, %170 : vector<64x32xi1>
    %cst_62 = arith.constant dense<true> : vector<64x32xi1>
    %172 = arith.xori %166, %cst_62 : vector<64x32xi1>
    %cst_63 = arith.constant dense<true> : vector<64x32xi1>
    %173 = arith.xori %170, %cst_63 : vector<64x32xi1>
    %174 = arith.andi %172, %173 : vector<64x32xi1>
    %175 = arith.ori %171, %174 : vector<64x32xi1>
    %176 = arith.minimumf %155, %162 : vector<64x32xf32>
    %177 = arith.maximumf %155, %162 : vector<64x32xf32>
    %178 = arith.select %175, %176, %177 : vector<64x32xi1>, vector<64x32xf32>
    %c1_i32_64 = arith.constant 1 : i32
    %179 = vector.broadcast %c1_i32_64 : i32 to vector<64x32xi32>
    %180 = arith.xori %61, %179 : vector<64x32xi32>
    %c1_i32_65 = arith.constant 1 : i32
    %181 = tpu.dynamic_rotate %178 by %c1_i32_65 dim 0 : vector<64x32xf32>, i32 -> vector<64x32xf32>
    %c63_i32_66 = arith.constant 63 : i32
    %182 = tpu.dynamic_rotate %178 by %c63_i32_66 dim 0 : vector<64x32xf32>, i32 -> vector<64x32xf32>
    %c1_i32_67 = arith.constant 1 : i32
    %183 = tpu.dynamic_rotate %61 by %c1_i32_67 dim 0 : vector<64x32xi32>, i32 -> vector<64x32xi32>
    %184 = arith.cmpi eq, %183, %180 : vector<64x32xi32>
    %185 = arith.select %184, %181, %182 : vector<64x32xi1>, vector<64x32xf32>
    %c1_i32_68 = arith.constant 1 : i32
    %186 = vector.broadcast %c1_i32_68 : i32 to vector<64x32xi32>
    %187 = arith.andi %61, %186 : vector<64x32xi32>
    %c0_i32_69 = arith.constant 0 : i32
    %188 = vector.broadcast %c0_i32_69 : i32 to vector<64x32xi32>
    %189 = arith.cmpi eq, %187, %188 : vector<64x32xi32>
    %c8_i32_70 = arith.constant 8 : i32
    %190 = vector.broadcast %c8_i32_70 : i32 to vector<64x32xi32>
    %191 = arith.andi %63, %190 : vector<64x32xi32>
    %c0_i32_71 = arith.constant 0 : i32
    %192 = vector.broadcast %c0_i32_71 : i32 to vector<64x32xi32>
    %193 = arith.cmpi eq, %191, %192 : vector<64x32xi32>
    %194 = arith.andi %189, %193 : vector<64x32xi1>
    %cst_72 = arith.constant dense<true> : vector<64x32xi1>
    %195 = arith.xori %189, %cst_72 : vector<64x32xi1>
    %cst_73 = arith.constant dense<true> : vector<64x32xi1>
    %196 = arith.xori %193, %cst_73 : vector<64x32xi1>
    %197 = arith.andi %195, %196 : vector<64x32xi1>
    %198 = arith.ori %194, %197 : vector<64x32xi1>
    %199 = arith.minimumf %178, %185 : vector<64x32xf32>
    %200 = arith.maximumf %178, %185 : vector<64x32xf32>
    %201 = arith.select %198, %199, %200 : vector<64x32xi1>, vector<64x32xf32>
    %c8_i32_74 = arith.constant 8 : i32
    %202 = vector.broadcast %c8_i32_74 : i32 to vector<64x32xi32>
    %203 = arith.xori %61, %202 : vector<64x32xi32>
    %c8_i32_75 = arith.constant 8 : i32
    %204 = tpu.dynamic_rotate %201 by %c8_i32_75 dim 0 : vector<64x32xf32>, i32 -> vector<64x32xf32>
    %c56_i32 = arith.constant 56 : i32
    %205 = tpu.dynamic_rotate %201 by %c56_i32 dim 0 : vector<64x32xf32>, i32 -> vector<64x32xf32>
    %c8_i32_76 = arith.constant 8 : i32
    %206 = tpu.dynamic_rotate %61 by %c8_i32_76 dim 0 : vector<64x32xi32>, i32 -> vector<64x32xi32>
    %207 = arith.cmpi eq, %206, %203 : vector<64x32xi32>
    %208 = arith.select %207, %204, %205 : vector<64x32xi1>, vector<64x32xf32>
    %c8_i32_77 = arith.constant 8 : i32
    %209 = vector.broadcast %c8_i32_77 : i32 to vector<64x32xi32>
    %210 = arith.andi %61, %209 : vector<64x32xi32>
    %c0_i32_78 = arith.constant 0 : i32
    %211 = vector.broadcast %c0_i32_78 : i32 to vector<64x32xi32>
    %212 = arith.cmpi eq, %210, %211 : vector<64x32xi32>
    %c16_i32 = arith.constant 16 : i32
    %213 = vector.broadcast %c16_i32 : i32 to vector<64x32xi32>
    %214 = arith.andi %63, %213 : vector<64x32xi32>
    %c0_i32_79 = arith.constant 0 : i32
    %215 = vector.broadcast %c0_i32_79 : i32 to vector<64x32xi32>
    %216 = arith.cmpi eq, %214, %215 : vector<64x32xi32>
    %217 = arith.andi %212, %216 : vector<64x32xi1>
    %cst_80 = arith.constant dense<true> : vector<64x32xi1>
    %218 = arith.xori %212, %cst_80 : vector<64x32xi1>
    %cst_81 = arith.constant dense<true> : vector<64x32xi1>
    %219 = arith.xori %216, %cst_81 : vector<64x32xi1>
    %220 = arith.andi %218, %219 : vector<64x32xi1>
    %221 = arith.ori %217, %220 : vector<64x32xi1>
    %222 = arith.minimumf %201, %208 : vector<64x32xf32>
    %223 = arith.maximumf %201, %208 : vector<64x32xf32>
    %224 = arith.select %221, %222, %223 : vector<64x32xi1>, vector<64x32xf32>
    %c4_i32_82 = arith.constant 4 : i32
    %225 = vector.broadcast %c4_i32_82 : i32 to vector<64x32xi32>
    %226 = arith.xori %61, %225 : vector<64x32xi32>
    %c4_i32_83 = arith.constant 4 : i32
    %227 = tpu.dynamic_rotate %224 by %c4_i32_83 dim 0 : vector<64x32xf32>, i32 -> vector<64x32xf32>
    %c60_i32_84 = arith.constant 60 : i32
    %228 = tpu.dynamic_rotate %224 by %c60_i32_84 dim 0 : vector<64x32xf32>, i32 -> vector<64x32xf32>
    %c4_i32_85 = arith.constant 4 : i32
    %229 = tpu.dynamic_rotate %61 by %c4_i32_85 dim 0 : vector<64x32xi32>, i32 -> vector<64x32xi32>
    %230 = arith.cmpi eq, %229, %226 : vector<64x32xi32>
    %231 = arith.select %230, %227, %228 : vector<64x32xi1>, vector<64x32xf32>
    %c4_i32_86 = arith.constant 4 : i32
    %232 = vector.broadcast %c4_i32_86 : i32 to vector<64x32xi32>
    %233 = arith.andi %61, %232 : vector<64x32xi32>
    %c0_i32_87 = arith.constant 0 : i32
    %234 = vector.broadcast %c0_i32_87 : i32 to vector<64x32xi32>
    %235 = arith.cmpi eq, %233, %234 : vector<64x32xi32>
    %c16_i32_88 = arith.constant 16 : i32
    %236 = vector.broadcast %c16_i32_88 : i32 to vector<64x32xi32>
    %237 = arith.andi %63, %236 : vector<64x32xi32>
    %c0_i32_89 = arith.constant 0 : i32
    %238 = vector.broadcast %c0_i32_89 : i32 to vector<64x32xi32>
    %239 = arith.cmpi eq, %237, %238 : vector<64x32xi32>
    %240 = arith.andi %235, %239 : vector<64x32xi1>
    %cst_90 = arith.constant dense<true> : vector<64x32xi1>
    %241 = arith.xori %235, %cst_90 : vector<64x32xi1>
    %cst_91 = arith.constant dense<true> : vector<64x32xi1>
    %242 = arith.xori %239, %cst_91 : vector<64x32xi1>
    %243 = arith.andi %241, %242 : vector<64x32xi1>
    %244 = arith.ori %240, %243 : vector<64x32xi1>
    %245 = arith.minimumf %224, %231 : vector<64x32xf32>
    %246 = arith.maximumf %224, %231 : vector<64x32xf32>
    %247 = arith.select %244, %245, %246 : vector<64x32xi1>, vector<64x32xf32>
    %c2_i32_92 = arith.constant 2 : i32
    %248 = vector.broadcast %c2_i32_92 : i32 to vector<64x32xi32>
    %249 = arith.xori %61, %248 : vector<64x32xi32>
    %c2_i32_93 = arith.constant 2 : i32
    %250 = tpu.dynamic_rotate %247 by %c2_i32_93 dim 0 : vector<64x32xf32>, i32 -> vector<64x32xf32>
    %c62_i32_94 = arith.constant 62 : i32
    %251 = tpu.dynamic_rotate %247 by %c62_i32_94 dim 0 : vector<64x32xf32>, i32 -> vector<64x32xf32>
    %c2_i32_95 = arith.constant 2 : i32
    %252 = tpu.dynamic_rotate %61 by %c2_i32_95 dim 0 : vector<64x32xi32>, i32 -> vector<64x32xi32>
    %253 = arith.cmpi eq, %252, %249 : vector<64x32xi32>
    %254 = arith.select %253, %250, %251 : vector<64x32xi1>, vector<64x32xf32>
    %c2_i32_96 = arith.constant 2 : i32
    %255 = vector.broadcast %c2_i32_96 : i32 to vector<64x32xi32>
    %256 = arith.andi %61, %255 : vector<64x32xi32>
    %c0_i32_97 = arith.constant 0 : i32
    %257 = vector.broadcast %c0_i32_97 : i32 to vector<64x32xi32>
    %258 = arith.cmpi eq, %256, %257 : vector<64x32xi32>
    %c16_i32_98 = arith.constant 16 : i32
    %259 = vector.broadcast %c16_i32_98 : i32 to vector<64x32xi32>
    %260 = arith.andi %63, %259 : vector<64x32xi32>
    %c0_i32_99 = arith.constant 0 : i32
    %261 = vector.broadcast %c0_i32_99 : i32 to vector<64x32xi32>
    %262 = arith.cmpi eq, %260, %261 : vector<64x32xi32>
    %263 = arith.andi %258, %262 : vector<64x32xi1>
    %cst_100 = arith.constant dense<true> : vector<64x32xi1>
    %264 = arith.xori %258, %cst_100 : vector<64x32xi1>
    %cst_101 = arith.constant dense<true> : vector<64x32xi1>
    %265 = arith.xori %262, %cst_101 : vector<64x32xi1>
    %266 = arith.andi %264, %265 : vector<64x32xi1>
    %267 = arith.ori %263, %266 : vector<64x32xi1>
    %268 = arith.minimumf %247, %254 : vector<64x32xf32>
    %269 = arith.maximumf %247, %254 : vector<64x32xf32>
    %270 = arith.select %267, %268, %269 : vector<64x32xi1>, vector<64x32xf32>
    %c1_i32_102 = arith.constant 1 : i32
    %271 = vector.broadcast %c1_i32_102 : i32 to vector<64x32xi32>
    %272 = arith.xori %61, %271 : vector<64x32xi32>
    %c1_i32_103 = arith.constant 1 : i32
    %273 = tpu.dynamic_rotate %270 by %c1_i32_103 dim 0 : vector<64x32xf32>, i32 -> vector<64x32xf32>
    %c63_i32_104 = arith.constant 63 : i32
    %274 = tpu.dynamic_rotate %270 by %c63_i32_104 dim 0 : vector<64x32xf32>, i32 -> vector<64x32xf32>
    %c1_i32_105 = arith.constant 1 : i32
    %275 = tpu.dynamic_rotate %61 by %c1_i32_105 dim 0 : vector<64x32xi32>, i32 -> vector<64x32xi32>
    %276 = arith.cmpi eq, %275, %272 : vector<64x32xi32>
    %277 = arith.select %276, %273, %274 : vector<64x32xi1>, vector<64x32xf32>
    %c1_i32_106 = arith.constant 1 : i32
    %278 = vector.broadcast %c1_i32_106 : i32 to vector<64x32xi32>
    %279 = arith.andi %61, %278 : vector<64x32xi32>
    %c0_i32_107 = arith.constant 0 : i32
    %280 = vector.broadcast %c0_i32_107 : i32 to vector<64x32xi32>
    %281 = arith.cmpi eq, %279, %280 : vector<64x32xi32>
    %c16_i32_108 = arith.constant 16 : i32
    %282 = vector.broadcast %c16_i32_108 : i32 to vector<64x32xi32>
    %283 = arith.andi %63, %282 : vector<64x32xi32>
    %c0_i32_109 = arith.constant 0 : i32
    %284 = vector.broadcast %c0_i32_109 : i32 to vector<64x32xi32>
    %285 = arith.cmpi eq, %283, %284 : vector<64x32xi32>
    %286 = arith.andi %281, %285 : vector<64x32xi1>
    %cst_110 = arith.constant dense<true> : vector<64x32xi1>
    %287 = arith.xori %281, %cst_110 : vector<64x32xi1>
    %cst_111 = arith.constant dense<true> : vector<64x32xi1>
    %288 = arith.xori %285, %cst_111 : vector<64x32xi1>
    %289 = arith.andi %287, %288 : vector<64x32xi1>
    %290 = arith.ori %286, %289 : vector<64x32xi1>
    %291 = arith.minimumf %270, %277 : vector<64x32xf32>
    %292 = arith.maximumf %270, %277 : vector<64x32xf32>
    %293 = arith.select %290, %291, %292 : vector<64x32xi1>, vector<64x32xf32>
    %294 = vector.extract_strided_slice %293 {offsets = [0, 0], sizes = [32, 32], strides = [1, 1]} : vector<64x32xf32> to vector<32x32xf32>
    %295 = vector.extract_strided_slice %293 {offsets = [32, 0], sizes = [32, 32], strides = [1, 1]} : vector<64x32xf32> to vector<32x32xf32>
    %296 = arith.subf %294, %295 : vector<32x32xf32>
    %297 = math.absf %296 : vector<32x32xf32>
    %298 = arith.minimumf %11, %13 : vector<2x1xf32>
    %cst_112 = arith.constant 1.000000e+00 : f32
    %299 = vector.broadcast %cst_112 : f32 to vector<2x1xf32>
    %300 = arith.maximumf %298, %299 : vector<2x1xf32>
    %301 = tpu.iota {dimensions = array<i32: 0>} : vector<2x32xi32>
    %302 = tpu.iota {dimensions = array<i32: 1>} : vector<2x32xi32>
    %c16_i32_113 = arith.constant 16 : i32
    %303 = vector.broadcast %c16_i32_113 : i32 to vector<2x32xi32>
    %304 = arith.muli %301, %303 : vector<2x32xi32>
    %305 = arith.subi %302, %304 : vector<2x32xi32>
    %c0_i32_114 = arith.constant 0 : i32
    %306 = vector.broadcast %c0_i32_114 : i32 to vector<2x32xi32>
    %307 = arith.cmpi sge, %305, %306 : vector<2x32xi32>
    %308 = arith.sitofp %305 : vector<2x32xi32> to vector<2x32xf32>
    %309 = vector.broadcast %300 : vector<2x1xf32> to vector<2x32xf32>
    %310 = arith.cmpf olt, %308, %309 : vector<2x32xf32>
    %311 = arith.andi %307, %310 : vector<2x32xi1>
    %312 = arith.extui %311 : vector<2x32xi1> to vector<2x32xi32>
    %313 = arith.sitofp %312 : vector<2x32xi32> to vector<2x32xf32>
    %cst_115 = arith.constant dense<0.000000e+00> : vector<2x32xf32>
    %314 = tpu.matmul %313, %297, %cst_115 {dimension_numbers = #tpu.dot_dimension_numbers<[1], [0], [0], [1], [0, 0, 1, 1], [], []>} : vector<2x32xf32>, vector<32x32xf32>, vector<2x32xf32> -> vector<2x32xf32>
    %315 = vector.broadcast %300 : vector<2x1xf32> to vector<2x32xf32>
    %316 = arith.divf %314, %315 : vector<2x32xf32>
    %cst_116 = arith.constant dense<0xFF800000> : vector<2xf32>
    %317 = vector.multi_reduction <maximumf>, %316, %cst_116 [1] : vector<2x32xf32> to vector<2xf32>
    %318 = vector.shape_cast %317 : vector<2xf32> to vector<2x1xf32>
    %cst_117 = arith.constant 5.000000e-01 : f32
    %319 = vector.broadcast %cst_117 : f32 to vector<2x1xf32>
    %320 = arith.cmpf ogt, %298, %319 : vector<2x1xf32>
    %cst_118 = arith.constant 0.000000e+00 : f32
    %321 = vector.broadcast %cst_118 : f32 to vector<2x1xf32>
    %322 = arith.select %320, %318, %321 : vector<2x1xi1>, vector<2x1xf32>
    %323 = vector.extract_strided_slice %5 {offsets = [0, 0], sizes = [1, 41], strides = [1, 1]} : vector<6x41xf32> to vector<1x41xf32>
    %324 = vector.extract_strided_slice %5 {offsets = [1, 0], sizes = [1, 41], strides = [1, 1]} : vector<6x41xf32> to vector<1x41xf32>
    %325 = vector.extract_strided_slice %5 {offsets = [2, 0], sizes = [1, 41], strides = [1, 1]} : vector<6x41xf32> to vector<1x41xf32>
    %326 = vector.extract_strided_slice %5 {offsets = [3, 0], sizes = [1, 41], strides = [1, 1]} : vector<6x41xf32> to vector<1x41xf32>
    %327 = vector.extract_strided_slice %5 {offsets = [5, 1], sizes = [1, 2], strides = [1, 1]} : vector<6x41xf32> to vector<1x2xf32>
    %328 = tpu.concatenate %44, %322 in 1 : vector<2x40xf32>, vector<2x1xf32> -> vector<2x41xf32>
    %cst_119 = arith.constant dense<0.000000e+00> : vector<2xf32>
    %329 = vector.multi_reduction <add>, %328, %cst_119 [1] : vector<2x41xf32> to vector<2xf32>
    %330 = vector.shape_cast %329 : vector<2xf32> to vector<2x1xf32>
    %cst_120 = arith.constant 4.100000e+01 : f32
    %331 = vector.broadcast %cst_120 : f32 to vector<2x1xf32>
    %332 = arith.divf %330, %331 : vector<2x1xf32>
    %333 = vector.broadcast %332 : vector<2x1xf32> to vector<2x41xf32>
    %334 = arith.subf %328, %333 : vector<2x41xf32>
    %335 = arith.mulf %334, %334 : vector<2x41xf32>
    %cst_121 = arith.constant dense<0.000000e+00> : vector<2xf32>
    %336 = vector.multi_reduction <add>, %335, %cst_121 [1] : vector<2x41xf32> to vector<2xf32>
    %337 = vector.shape_cast %336 : vector<2xf32> to vector<2x1xf32>
    %cst_122 = arith.constant 4.100000e+01 : f32
    %338 = vector.broadcast %cst_122 : f32 to vector<2x1xf32>
    %339 = arith.divf %337, %338 : vector<2x1xf32>
    %340 = vector.broadcast %332 : vector<2x1xf32> to vector<2x41xf32>
    %341 = arith.subf %328, %340 : vector<2x41xf32>
    %cst_123 = arith.constant 9.99999974E-6 : f32
    %342 = vector.broadcast %cst_123 : f32 to vector<2x1xf32>
    %343 = arith.addf %339, %342 : vector<2x1xf32>
    %344 = math.rsqrt %343 : vector<2x1xf32>
    %345 = vector.broadcast %344 : vector<2x1xf32> to vector<2x41xf32>
    %346 = arith.mulf %341, %345 : vector<2x41xf32>
    %347 = vector.broadcast %323 : vector<1x41xf32> to vector<2x41xf32>
    %348 = arith.mulf %346, %347 : vector<2x41xf32>
    %349 = vector.broadcast %324 : vector<1x41xf32> to vector<2x41xf32>
    %350 = arith.addf %348, %349 : vector<2x41xf32>
    %351 = vector.broadcast %325 : vector<1x41xf32> to vector<2x41xf32>
    %352 = arith.mulf %350, %351 : vector<2x41xf32>
    %cst_124 = arith.constant dense<0.000000e+00> : vector<2xf32>
    %353 = vector.multi_reduction <add>, %352, %cst_124 [1] : vector<2x41xf32> to vector<2xf32>
    %354 = vector.shape_cast %353 : vector<2xf32> to vector<2x1xf32>
    %355 = vector.broadcast %326 : vector<1x41xf32> to vector<2x41xf32>
    %356 = arith.mulf %350, %355 : vector<2x41xf32>
    %cst_125 = arith.constant dense<0.000000e+00> : vector<2xf32>
    %357 = vector.multi_reduction <add>, %356, %cst_125 [1] : vector<2x41xf32> to vector<2xf32>
    %358 = vector.shape_cast %357 : vector<2xf32> to vector<2x1xf32>
    %359 = tpu.concatenate %354, %358 in 1 : vector<2x1xf32>, vector<2x1xf32> -> vector<2x2xf32>
    %360 = vector.broadcast %327 : vector<1x2xf32> to vector<2x2xf32>
    %361 = arith.addf %359, %360 : vector<2x2xf32>
    %c0_126 = arith.constant 0 : index
    %c0_127 = arith.constant 0 : index
    %362 = vector.load %arg6[%c0_126, %c0_127] : memref<2x2xf32, #tpu.memory_space<vmem>>, vector<2x2xf32>
    tpu.vector_store %arg6[%c0_126, %c0_127], %361 {strides = array<i32>} : memref<2x2xf32, #tpu.memory_space<vmem>>, vector<2x2xf32>,
    return
  }
}

</mosaic_0001>

<bundles_post_ra>
// kernel: ot_style_forward.1
= control target key start
LH: loop header
LB: loop body
LE: loop exit
PB: predicated region body
PF: predicated region fallthrough
CT: control target
= control target key end

     0   :  { %v4357_v3 = vmov 0.0|0.0   ;;  %vm1886_vm0 = vmmov 0   ;;  %v4356_v6 = vmov 0.0   ;;  %vm120_vm1 = vcmask 259072   ;;  %s4347_s0 = inlined_call_operand.vmem [shape: f32[32,32], index: 0, kind: input, shape index: {}]   ;;  %s4348_s1 = inlined_call_operand.vmem [shape: f32[32,2], index: 1, kind: input, shape index: {}]   ;;  %s4349_s2 = inlined_call_operand.vmem [shape: f32[6,32], index: 2, kind: input, shape index: {}]   ;;  %s4350_s3 = inlined_call_operand.vmem [shape: f32[64,40], index: 3, kind: input, shape index: {}]   ;;  %s4351_s4 = inlined_call_operand.vmem [shape: f32[32,32], index: 4, kind: input, shape index: {}]   ;;  %s4352_s5 = inlined_call_operand.vmem [shape: f32[6,41], index: 5, kind: input, shape index: {}]   ;;  %s4353_s6 = inlined_call_operand.hbm [shape: f32[2,2], index: 6, kind: output, shape index: {}]  }
   0x1   :  { %v24_v0 = vld [vmem:[%s4347_s0] sm:$0xff]  ;;  %v25_v1 = vld [vmem:[%s4347_s0 + $0x8] sm:$0xff]  ;;  %v26_v2 = vld [vmem:[%s4347_s0 + $0x10] sm:$0xff]  ;;  %1801 = vmatprep.subr.bf16.mxu0 %v4357_v3  ;;  %1754 = vmatprep.mubr.msk.f32.mxu0 %vm1886_vm0, %v4356_v6  ;;  %v1888_v15 = vmov 0  }
   0x2   :  { %v1802_v4 = vpack.c.bf16 %v25_v1, %v24_v0  ;;  %v27_v5 = vld [vmem:[%s4347_s0 + $0x18] sm:$0xff]  ;;  %v32_v7 = vld [vmem:[%s4349_s2] sm:$0x3f]  ;;  %v42_v9 = vld [vmem:[%s4351_s4 + $0x8] sm:$0xff]  ;;  %1807 = vmatprep.subr.bf16.mxu1 %v4357_v3  ;;  %1773 = vmatprep.mubr.msk.f32.mxu1 %vm1886_vm0, %v4356_v6 }
   0x3   :  { %v41_v8 = vld [vmem:[%s4351_s4] sm:$0xff]  ;;  %v121_v10 = vsel %vm120_vm1, %v32_v7, 0.0  ;;  %v1805_v11 = vpack.c.bf16 %v27_v5, %v26_v2  ;;  %v29_v12 = vld [vmem:[%s4348_s1 + $0x8] sm:$0xff]  ;;  %v30_v13 = vld [vmem:[%s4348_s1 + $0x10] sm:$0xff]  ;;  %1848 = vset.pattern.permute.xlu1 %v1888_v15 }
   0x4   :  { %1803 = vmatpush3.bf16.msra.mxu0 %v1802_v4  ;;  %122 = vadd.xlane.f32.xlu0 %v121_v10  ;;  %v1819_v14 = vpack.c.bf16 %v42_v9, %v41_v8  ;;  %vm335_vm2 = vcmp.gt.f32.partialorder %v29_v12, 0.5  ;;  %vm336_vm3 = vcmp.gt.f32.partialorder %v30_v13, 0.5 }
   0x5   :  { %1804 = vmatprep.subr.bf16.mxu0 %v4357_v3 }
   0x6   :  { %11 = vsyncpa [#allocation3], 0  ;;  %v43_v16 = vld [vmem:[%s4351_s4 + $0x10] sm:$0xff]  ;;  %v44_v17 = vld [vmem:[%s4351_s4 + $0x18] sm:$0xff]  ;;  %v339_v18 = vsel %vm335_vm2, 1, %v1888_v15  ;;  %1847 = vset.pattern.permute.xlu0 %v1888_v15  ;;  %vm4354_vm4 = vcmask 261120   ;;  %v4359_v30 = vlaneseq }
   0x7   :  { %v31_v19 = vld [vmem:[%s4348_s1 + $0x18] sm:$0xff]  ;;  %346 = vperm.xlu1 %1848, %v339_v18   ;;  %v340_v20 = vsel %vm336_vm3, 1, %v1888_v15  ;;  %v1823_v21 = vpack.c.bf16 %v44_v17, %v43_v16  ;;  %v28_v22 = vld [vmem:[%s4348_s1] sm:$0xff]  ;;  %v1889_v25 = vmov 1   ;;  %v4648_v46 = vmov 0  ;;  %s1891_s1 = smov 32  }
   0x8   :  { %1806 = vmatpush3.bf16.msra.mxu0 %v1805_v11  ;;  %vm337_vm5 = vcmp.gt.f32.partialorder %v31_v19, 0.5  ;;  %vm334_vm6 = vcmp.gt.f32.partialorder %v28_v22, 0.5  ;;  %v1992_v31 = vshrl.u32 %v4359_v30, 7  ;;  %v4882_v45 = vmov 0  ;;  %s1893_s13 = smov 127   ;;  %s1894_s14 = smov [#allocation2]  }
   0x9   :  { %1820 = vmatprep.subr.bf16.mxu0 %v1819_v14  ;;  %v341_v23 = vsel %vm337_vm5, 1, %v1888_v15  ;;  %v338_v24 = vsel %vm334_vm6, 1, %v1888_v15  ;;  %vm4407_vm5 = vmmov 1   ;;  %s1702_s15 = sshll.u32 %s1894_s14, 4  ;;  %s1703_s15 = int_to_ptr.vmem [resolvable:$true] %s1702_s15 }
   0xa   :  { %v1997_v33 = vadd.s32 24, %v1992_v31  ;;  %v2000_v34 = vadd.s32 32, %v1992_v31  ;;  %v2003_v35 = vadd.s32 56, %v1992_v31  ;;  %v2006_v36 = vadd.s32 8, %v1992_v31  ;;  %s1861_s16 = scalar_lea.vmem %s1703_s15, 32  ;;  %p1866_p1 = scmp.lt.s32.totalorder %s1703_s15, %s1703_s15 }
   0xb   :  { %1755 = vmatmul.mubr.msk.f32.vlgmr.msra.gmra.mrb[0].mxu0 %vm4354_vm4, %v32_v7  ;;  %349 = vperm.xlu1 %1848, %v340_v20   ;;  %v2009_v37 = vadd.s32 16, %v1992_v31  ;;  %v2012_v38 = vadd.s32 40, %v1992_v31  ;;  %v441_v40 = vrot.slane %v1992_v31, 7  ;;  %v2021_v44 = vadd.s32 48, %v1992_v31  ;;  %p1862_p0 = scmp.ne.s32.totalorder %s1703_s15, %s1861_s16  ;;  %p1867_p2 = scmp.lt.s32.totalorder %s1861_s16, %s1861_s16 }
   0xc   :  { %1822 = vmatpush3.bf16.msra.mxu0 %v1819_v14  ;;  %1784 = vmatprep.mubr.msk.f32.mxu0 %vm4354_vm4, %v24_v0  ;;  %4597 = vst [vmem:[#allocation6_spill] sm:$0xff] %v1997_v33  ;;  %4598 = vst [vmem:[#allocation7_spill] sm:$0xff] %v2000_v34  ;;  %v444_v41 = vrot.slane %v1997_v33, 7  ;;  %v445_v42 = vrot.slane %v2000_v34, 7  ;;  %v448_v43 = vrot.slane %v2003_v35, 7  ;;  %vm4355_vm7 = vcmp.lt.s32.totalorder %v1992_v31, 1 }
   0xd   :  { %1824 = vmatprep.subr.bf16.mxu0 %v1823_v21  ;;  %4599 = vst [vmem:[#allocation8_spill] sm:$0xff] %v2003_v35  ;;  %4600 = vst [vmem:[#allocation9_spill] sm:$0xff] %v2006_v36  ;;  %v4372_v47 = vand.u32 15, %v1992_v31  ;;  %v4371_v48 = vand.u32 15, %v2006_v36  ;;  %v4369_v49 = vand.u32 15, %v2009_v37  ;;  %v4367_v50 = vand.u32 15, %v1997_v33  ;;  %p1868_p3 = por %p1867_p2, %p1866_p1 }
   0xe   :  { %4601 = vst [vmem:[#allocation10_spill] sm:$0xff] %v2009_v37  ;;  %4602 = vst [vmem:[#allocation11_spill] sm:$0xff] %v2012_v38  ;;  %v2032_v51 = vsel %vm4355_vm7, %v444_v41, %v445_v42  ;;  %v2036_v52 = vsel %vm4355_vm7, %v448_v43, %v441_v40  ;;  %v4364_v53 = vand.u32 15, %v2000_v34  ;;  %v446_v54 = vrot.slane %v2012_v38, 7 }
   0xf   :  { %352 = vperm.xlu1 %1848, %v341_v23   ;;  %4603 = vst [vmem:[#allocation12_spill] sm:$0xff] %v2021_v44  ;;  %v4362_v55 = vand.u32 15, %v2012_v38  ;;  %v442_v56 = vrot.slane %v2006_v36, 7  ;;  %v443_v57 = vrot.slane %v2009_v37, 7  ;;  %v447_v58 = vrot.slane %v2021_v44, 7  ;;  %p1869_p4 = pnand %p1868_p3, %p1862_p0 }
  0x10   :  { %1826 = vmatpush3.bf16.msra.mxu0 %v1823_v21  ;;  %v4361_v60 = vand.u32 15, %v2021_v44  ;;  %v4360_v61 = vand.u32 15, %v2003_v35  ;;  %v473_v7 = vand.u32 1, %v1992_v31  ;;  %v474_v8 = vand.u32 1, %v2006_v36 }
  0x11   :  { %1827 = vmatprep.subr.bf16.mxu0 %v4357_v3  ;;  %v475_v9 = vand.u32 1, %v2009_v37  ;;  %v2063_v10 = vsel %vm4355_vm7, %v447_v58, %v448_v43  ;;  %v2067_v11 = vsel %vm4355_vm7, %v443_v57, %v444_v41  ;;  %v2071_v12 = vsel %vm4355_vm7, %v442_v56, %v443_v57 }
  0x12   :  { %4606 = vst [vmem:[#allocation15_spill] sm:$0xff] %v2071_v12  ;;  %v2075_v13 = vsel %vm4355_vm7, %v441_v40, %v442_v56  ;;  %v2079_v14 = vsel %vm4355_vm7, %v446_v54, %v447_v58  ;;  %v477_v16 = vand.u32 1, %v2000_v34  ;;  %v478_v17 = vand.u32 1, %v2012_v38 }
  0x13   :  { %1785 = vmatmul.mubr.msk.f32.vlgmr.msra.gmra.mrb[2].mxu0 %vm4354_vm4, %v25_v1  ;;  %1849 = vset.pattern.permute.xlu1 %v1889_v25  ;;  %4607 = vst [vmem:[#allocation16_spill] sm:$0xff] %v2075_v13  ;;  %4608 = vst [vmem:[#allocation17_spill] sm:$0xff] %v2079_v14  ;;  %v2087_v19 = vand.u32 2, %v4372_v47  ;;  %v2095_v21 = vand.u32 2, %v4369_v49  ;;  %v2103_v25 = vand.u32 2, %v4367_v50  ;;  %vm2109_vm8 = vcmp.eq.s32.totalorder %v473_v7, 0 }
  0x14   :  { %1787 = vmatprep.mubr.msk.f32.mxu0 %vm4354_vm4, %v26_v2  ;;  %363 = vperm.xlu1 %1849, %v338_v24   ;;  %vm2113_vm9 = vcmp.eq.s32.totalorder %v474_v8, 0  ;;  %v4613_v40 = vmov 0  ;;  %vm2117_vm10 = vcmp.eq.s32.totalorder %v475_v9, 0  ;;  %v2123_v41 = vand.u32 2, %v4362_v55 }
  0x15   :  { %v4614_v40 = vsel %vm2113_vm9, 4294967295, %v4613_v40  ;;  %vm2129_vm12 = vcmp.eq.s32.totalorder %v477_v16, 0  ;;  %v4622_v43 = vmov 0  ;;  %vm2133_vm13 = vcmp.eq.s32.totalorder %v478_v17, 0  ;;  %vm2188_vm6 = vmxor %vm2113_vm9, %vm4407_vm5 }
  0x16   :  { %4615 = vst [vmem:[#allocation20_spill] sm:$0xff] %v4614_v40  ;;  %v4623_v43 = vsel %vm2129_vm12, 4294967295, %v4622_v43  ;;  %v2139_v56 = vand.u32 2, %v4361_v60  ;;  %v4628_v57 = vmov 0  ;;  %v2147_v58 = vand.u32 2, %v4360_v61  ;;  %vm2205_vm3 = vmxor %vm2117_vm10, %vm4407_vm5 }
  0x17   :  { %1788 = vmatmul.mubr.msk.f32.gmra.mrb[4].mxu0 %vm4354_vm4, %v27_v5  ;;  %v2056_v5 = vsel %vm4355_vm7, %v445_v42, %v446_v54  ;;  %v4619_v42 = vmov 0  ;;  %4624 = vst [vmem:[#allocation23_spill] sm:$0xff] %v4623_v43  ;;  %v4625_v54 = vmov 0  ;;  %vm4363_vm15 = vcmp.eq.s32.totalorder %v2087_v19, 0  ;;  %vm2177_vm7 = vmxor %vm2109_vm8, %vm4407_vm5 }
  0x18   :  { %366 = vperm.xlu1 %1849, %v339_v18   ;;  %1798 = vmatprep.mubr.msk.f32.mxu0 %vm1886_vm0, %v4356_v6  ;;  %4605 = vst [vmem:[#allocation14_spill] sm:$0xff] %v2056_v5  ;;  %v479_v18 = vand.u32 1, %v2021_v44  ;;  %v4626_v54 = vsel %vm2133_vm13, 4294967295, %v4625_v54  ;;  %v4631_v7 = vmov 0  ;;  %vm4368_vm4 = vcmp.lt.s32.totalorder %v1992_v31, 2  ;;  %vm2232_vm0 = vmxor %vm4363_vm15, %vm4407_vm5 }
  0x19   :  { %4627 = vst [vmem:[#allocation24_spill] sm:$0xff] %v4626_v54  ;;  %v612_v8 = vrot.slane %v2006_v36, 6  ;;  %v613_v9 = vrot.slane %v2009_v37, 6  ;;  %v611_v17 = vrot.slane %v1992_v31, 6  ;;  %v615_v30 = vrot.slane %v2000_v34, 6  ;;  %vm2254_vm15 = vmxor %vm2129_vm12, %vm4407_vm5 }
  0x1a   :  { %343 = vperm.xlu0 %1847, %v338_v24   ;;  %v480_v24 = vand.u32 1, %v2003_v35  ;;  %vm2141_vm14 = vcmp.eq.s32.totalorder %v479_v18, 0  ;;  %v616_v18 = vrot.slane %v2012_v38, 6  ;;  %v4634_v2 = vmov 0 }
  0x1b   :  { %v4629_v57 = vsel %vm2141_vm14, 4294967295, %v4628_v57  ;;  %v4635_v2 = vsel %vm2177_vm7, 4294967295, %v4634_v2  ;;  %v4637_v3 = vmov 0  ;;  %v2200_v62 = vsel %vm4368_vm4, %v612_v8, %v613_v9 }
  0x1c   :  { %369 = vperm.xlu1 %1849, %v340_v20   ;;  %v2091_v20 = vand.u32 2, %v4371_v48  ;;  %4630 = vst [vmem:[#allocation25_spill] sm:$0xff] %v4629_v57  ;;  %vm2152_vm2 = vcmp.eq.s32.totalorder %v480_v24, 0  ;;  %v618_v24 = vrot.slane %v2003_v35, 6  ;;  %4636 = vst [vmem:[#allocation27_spill] sm:$0xff] %v4635_v2  ;;  %v4638_v3 = vsel %vm2188_vm6, 4294967295, %v4637_v3 }
  0x1d   :  { %v4632_v7 = vsel %vm2152_vm2, 4294967295, %v4631_v7  ;;  %4639 = vst [vmem:[#allocation28_spill] sm:$0xff] %v4638_v3  ;;  %4641 = vst [vmem:[#allocation30_spill] sm:$0xff] %v2200_v62  ;;  %v4642_v6 = vmov 0  ;;  %v2219_v63 = vsel %vm4368_vm4, %v611_v17, %v612_v8  ;;  %v2238_v8 = vsel %vm4368_vm4, %v615_v30, %v616_v18 }
  0x1e   :  { %4633 = vst [vmem:[#allocation26_spill] sm:$0xff] %v4632_v7  ;;  %v4643_v6 = vsel %vm2205_vm3, 4294967295, %v4642_v6  ;;  %4647 = vst [vmem:[#allocation34_spill] sm:$0xff] %v2219_v63  ;;  %v2246_v61 = vsel %vm4368_vm4, %v618_v24, %v611_v17  ;;  %v644_v60 = vand.u32 2, %v2006_v36  ;;  %v646_v17 = vand.u32 2, %v1997_v33 }
  0x1f   :  { %4644 = vst [vmem:[#allocation31_spill] sm:$0xff] %v4643_v6  ;;  %4653 = vst [vmem:[#allocation36_spill] sm:$0xff] %v2238_v8  ;;  %v4663_v49 = vmov 0  ;;  %v4667_v48 = vmov 0  ;;  %v4674_v47 = vmov 0  ;;  %v4682_v62 = vand.u32 15, %v1997_v33 }
  0x20   :  { %372 = vperm.xlu1 %1849, %v341_v23   ;;  %4655 = vst [vmem:[#allocation38_spill] sm:$0xff] %v2246_v61  ;;  %v4684_v61 = vand.u32 15, %v2000_v34  ;;  %v4686_v5 = vand.u32 15, %v2012_v38  ;;  %v4751_v7 = vxor.u32 1, %v1992_v31  ;;  %v4970_v2 = vmov 0 }
  0x21   :  { %v2318_v63 = vand.u32 4, %v4682_v62  ;;  %v4694_v62 = vand.u32 15, %v2021_v44 }
  0x22   :  { %v2322_v14 = vand.u32 4, %v4684_v61  ;;  %v2326_v12 = vand.u32 4, %v4686_v5  ;;  %v4692_v61 = vmov 0 }
  0x23   :  { %4683 = vst [vmem:[#allocation47_spill] sm:$0xff] %v2318_v63  ;;  %v2346_v5 = vand.u32 4, %v4694_v62  ;;  %v853_v62 = vrot.slane %v2006_v36, 4  ;;  %v4829_v63 = vld [vmem:[#allocation15_spill] sm:$0xff] }
  0x24   :  { %1850 = vset.pattern.permute.xlu1 %v1888_v15  ;;  %v476_v15 = vand.u32 1, %v1997_v33  ;;  %4685 = vst [vmem:[#allocation48_spill] sm:$0xff] %v2322_v14  ;;  %4687 = vst [vmem:[#allocation49_spill] sm:$0xff] %v2326_v12  ;;  %v858_v12 = vrot.slane %v2021_v44, 4  ;;  %v4825_v14 = vmov 0 }
  0x25   :  { %4695 = vst [vmem:[#allocation51_spill] sm:$0xff] %v2346_v5  ;;  %v4706_v5 = vmov 0 }
  0x26   :  { %vm2125_vm11 = vcmp.eq.s32.totalorder %v476_v15, 0  ;;  %v614_v15 = vrot.slane %v1997_v33, 6 }
  0x27   :  { %v4620_v42 = vsel %vm2125_vm11, 4294967295, %v4619_v42  ;;  %vm2225_vm1 = vmxor %vm2125_vm11, %vm4407_vm5 }
  0x28   :  { %4621 = vst [vmem:[#allocation22_spill] sm:$0xff] %v4620_v42  ;;  %v2196_v1 = vsel %vm4368_vm4, %v613_v9, %v614_v15  ;;  %v643_v9 = vand.u32 2, %v1992_v31  ;;  %v4649_v46 = vsel %vm2225_vm1, 4294967295, %v4648_v46  ;;  %vm4659_vm1 = vcmp.eq.s32.totalorder %v2091_v20, 0 }
  0x29   :  { %4640 = vst [vmem:[#allocation29_spill] sm:$0xff] %v2196_v1  ;;  %4650 = vst [vmem:[#allocation35_spill] sm:$0xff] %v4649_v46 }
  0x2a   :  { %vm2261_vm3 = vmxor %vm4659_vm1, %vm4407_vm5  ;;  %vm4666_vm1 = vcmp.eq.s32.totalorder %v2095_v21, 0 }
  0x86   :  { %v1994_v32 = vpop.permute.xlu1 %346 }
  0x8a   :  { %v2014_v39 = vpop.permute.xlu1 %349 }
  0x8e   :  { %v2044_v59 = vpop.permute.xlu1 %352 }
  0x8f   :  { %4604 = vst [vmem:[#allocation13_spill] sm:$0xff] %v2044_v59  ;;  %v4734_v59 = vmov 0 }
  0x91   :  { %v1984_v26 = vpop.xlane.xlu0 %122 }
  0x92   :  { %v1533_v27 = vrot.slane %v1984_v26, 2  ;;  %v124_v22 = vmax.f32 %v1984_v26, 1.0 }
  0x93   :  { %v2098_v23 = vpop.permute.xlu1 %363 }
  0x94   :  { %v1988_v28 = vmin.f32 %v1984_v26, %v1533_v27  ;;  %4609 = vst [vmem:[#allocation18_spill] sm:$0xff] %v2098_v23  ;;  %v2107_v27 = vand.u32 2, %v4364_v53  ;;  %v4616_v26 = vmov 0  ;;  %1851 = vrcp.f32 %v124_v22 }
  0x95   :  { %v4617_v26 = vsel %vm2117_vm10, 4294967295, %v4616_v26  ;;  %v617_v22 = vrot.slane %v2021_v44, 6  ;;  %v4656_v53 = vmov 0 }
  0x96   :  { %4596 = vst [vmem:[#allocation5_spill] sm:$0xff] %v1988_v28  ;;  %v1536_v29 = vmax.f32 %v1988_v28, 1.0  ;;  %4618 = vst [vmem:[#allocation21_spill] sm:$0xff] %v4617_v26  ;;  %v4657_v53 = vsel %vm2254_vm15, 4294967295, %v4656_v53  ;;  %v4669_v28 = vand.u32 15, %v1992_v31 }
  0x97   :  { %v2163_v16 = vpop.permute.xlu1 %366  ;;  %v2211_v4 = vsel %vm4368_vm4, %v617_v22, %v618_v24  ;;  %v2215_v0 = vsel %vm4368_vm4, %v616_v18, %v617_v22  ;;  %v2242_v22 = vsel %vm4368_vm4, %v614_v15, %v615_v30  ;;  %4658 = vst [vmem:[#allocation39_spill] sm:$0xff] %v4657_v53  ;;  %v4660_v30 = vmov 0  ;;  %vm2274_vm4 = vmxor %vm2133_vm13, %vm4407_vm5 }
  0x98   :  { %1543 = vperm.xlu1 %1850, %v1536_v29   ;;  %v4610_v29 = vmov 0  ;;  %4645 = vst [vmem:[#allocation32_spill] sm:$0xff] %v2211_v4  ;;  %4646 = vst [vmem:[#allocation33_spill] sm:$0xff] %v2215_v0  ;;  %v4661_v30 = vsel %vm2261_vm3, 4294967295, %v4660_v30  ;;  %v645_v15 = vand.u32 2, %v2009_v37  ;;  %v647_v18 = vand.u32 2, %v2000_v34 }
  0x99   :  { %v4611_v29 = vsel %vm2109_vm8, 4294967295, %v4610_v29  ;;  %4654 = vst [vmem:[#allocation37_spill] sm:$0xff] %v2242_v22  ;;  %v2269_v50 = vpop.permute.xlu0 %343  ;;  %v4664_v49 = vsel %vm2274_vm4, 4294967295, %v4663_v49  ;;  %vm2281_vm15 = vmxor %vm4666_vm1, %vm4407_vm5  ;;  %v2289_v4 = vand.u32 4, %v4669_v28  ;;  %v4671_v0 = vand.u32 15, %v2006_v36 }
  0x9a   :  { %4612 = vst [vmem:[#allocation19_spill] sm:$0xff] %v4611_v29  ;;  %4662 = vst [vmem:[#allocation40_spill] sm:$0xff] %v2269_v50  ;;  %v4668_v48 = vsel %vm2281_vm15, 4294967295, %v4667_v48  ;;  %vm4677_vm15 = vcmp.eq.s32.totalorder %v2103_v25, 0  ;;  %v4678_v28 = vmov 0  ;;  %vm4705_vm3 = vcmp.eq.s32.totalorder %v2139_v56, 0 }
  0x9b   :  { %v2249_v55 = vpop.permute.xlu1 %369  ;;  %4665 = vst [vmem:[#allocation41_spill] sm:$0xff] %v4664_v49  ;;  %4670 = vst [vmem:[#allocation42_spill] sm:$0xff] %v2289_v4  ;;  %v2293_v8 = vand.u32 4, %v4671_v0  ;;  %v4680_v0 = vand.u32 15, %v2009_v37  ;;  %v4713_v50 = vmov 0  ;;  %v4830_v29 = vmov 0 }
  0x9c   :  { %vm2301_vm1 = vmxor %vm2141_vm14, %vm4407_vm5 }
  0x9d   :  { %4672 = vst [vmem:[#allocation43_spill] sm:$0xff] %v2293_v8  ;;  %v4675_v47 = vsel %vm2301_vm1, 4294967295, %v4674_v47  ;;  %vm2308_vm6 = vmxor %vm4677_vm15, %vm4407_vm5  ;;  %v2314_v24 = vand.u32 4, %v4680_v0  ;;  %v4688_v0 = vmov 0  ;;  %vm4691_vm1 = vcmp.eq.s32.totalorder %v2107_v27, 0 }
  0x9e   :  { %v1852_v22 = vpop.eup %1851  ;;  %4676 = vst [vmem:[#allocation45_spill] sm:$0xff] %v4675_v47  ;;  %v4679_v28 = vsel %vm2308_vm6, 4294967295, %v4678_v28  ;;  %vm2333_vm4 = vmxor %vm2152_vm2, %vm4407_vm5 }
  0x9f   :  { %4681 = vst [vmem:[#allocation46_spill] sm:$0xff] %v2314_v24  ;;  %v4689_v0 = vsel %vm2333_vm4, 4294967295, %v4688_v0  ;;  %vm2340_vm6 = vmxor %vm4691_vm1, %vm4407_vm5  ;;  %vm4698_vm4 = vcmp.eq.s32.totalorder %v2123_v41, 0  ;;  %vm2361_vm1 = vcmp.eq.s32.totalorder %v643_v9, 0  ;;  %v4709_v9 = vmov 0  ;;  %v2384_v23 = vpop.permute.xlu1 %372 }
  0xa0   :  { %4690 = vst [vmem:[#allocation50_spill] sm:$0xff] %v4689_v0  ;;  %v4693_v61 = vsel %vm2340_vm6, 4294967295, %v4692_v61  ;;  %vm2357_vm14 = vmxor %vm4698_vm4, %vm4407_vm5  ;;  %v4702_v0 = vmov 0  ;;  %vm4718_vm6 = vcmp.eq.s32.totalorder %v2087_v19, 0  ;;  %v4728_v19 = vmov 0 }
  0xa1   :  { %v4703_v0 = vsel %vm2361_vm1, 4294967295, %v4702_v0  ;;  %vm2372_vm4 = vmxor %vm4705_vm3, %vm4407_vm5  ;;  %vm4712_vm3 = vcmp.eq.s32.totalorder %v2147_v58, 0  ;;  %vm2393_vm1 = vcmp.eq.s32.totalorder %v645_v15, 0 }
  0xa2   :  { %4704 = vst [vmem:[#allocation54_spill] sm:$0xff] %v4703_v0  ;;  %v4707_v5 = vsel %vm2372_vm4, 4294967295, %v4706_v5  ;;  %v856_v0 = vrot.slane %v2000_v34, 4  ;;  %vm2389_vm15 = vmxor %vm4712_vm3, %vm4407_vm5  ;;  %vm4721_vm5 = vcmp.eq.s32.totalorder %v2103_v25, 0  ;;  %v4730_v25 = vmov 0 }
  0xa3   :  { %4708 = vst [vmem:[#allocation55_spill] sm:$0xff] %v4707_v5  ;;  %v4714_v50 = vsel %vm2389_vm15, 4294967295, %v4713_v50  ;;  %v855_v5 = vrot.slane %v1997_v33, 4  ;;  %vm2405_vm3 = vmand %vm2109_vm8, %vm4718_vm6  ;;  %vm4727_vm6 = vcmp.eq.s32.totalorder %v2147_v58, 0  ;;  %v4756_v58 = vmov 0 }
  0xa4   :  { %vm2429_vm8 = vmand %vm2152_vm2, %vm4727_vm6  ;;  %vm4733_vm6 = vcmp.eq.s32.totalorder %v2091_v20, 0  ;;  %v4740_v20 = vmov 0 }
  0xa5   :  { %v4729_v19 = vsel %vm2429_vm8, 4294967295, %v4728_v19  ;;  %vm2449_vm2 = vmand %vm2113_vm9, %vm4733_vm6  ;;  %vm4742_vm6 = vcmp.eq.s32.totalorder %v2139_v56, 0  ;;  %vm4743_vm9 = vnez %v4629_v57  ;;  %vm2481_vm8 = vcmp.eq.s32.totalorder %v647_v18, 0 }
  0xa6   :  { %v4735_v59 = vsel %vm2449_vm2, 4294967295, %v4734_v59  ;;  %vm2473_vm2 = vmand %vm4743_vm9, %vm4742_vm6  ;;  %v4752_v57 = vmov 0  ;;  %v4755_v56 = vxor.u32 1, %v2000_v34 }
  0xa7   :  { %v4817_v40 = vld [vmem:[#allocation50_spill] sm:$0xff] }
  0xde   :  { %v2296_v1 = vpop.f32.mrb[0].mxu0 }
  0xdf   :  { %4673 = vst [vmem:[#allocation44_spill] sm:$0xff] %v2296_v1  ;;  %v126_v13 = vmul.f32 %v1852_v22, %v2296_v1  ;;  %v1756_v47 = vpop.f32.mrb[1].mxu0  ;;  %v4699_v1 = vmov 0 }
  0xe0   :  { %v4696_v47 = vand.u32 15, %v2003_v35  ;;  %v4700_v1 = vsel %vm2357_vm14, 4294967295, %v4699_v1  ;;  %vm2376_vm14 = vcmp.eq.s32.totalorder %v644_v60, 0  ;;  %v4715_v60 = vmov 0 }
  0xe1   :  { %4701 = vst [vmem:[#allocation53_spill] sm:$0xff] %v4700_v1  ;;  %v4710_v9 = vsel %vm2376_vm14, 4294967295, %v4709_v9  ;;  %v4716_v60 = vsel %vm2393_vm1, 4294967295, %v4715_v60  ;;  %vm2413_vm1 = vmand %vm2125_vm11, %vm4721_vm5  ;;  %vm4724_vm14 = vcmp.eq.s32.totalorder %v2107_v27, 0  ;;  %vm2437_vm11 = vcmp.eq.s32.totalorder %v646_v17, 0 }
  0xe2   :  { %v2350_v22 = vand.u32 4, %v4696_v47  ;;  %4711 = vst [vmem:[#allocation56_spill] sm:$0xff] %v4710_v9  ;;  %v857_v47 = vrot.slane %v2012_v38, 4  ;;  %4717 = vst [vmem:[#allocation57_spill] sm:$0xff] %v4716_v60  ;;  %v854_v9 = vrot.slane %v2009_v37, 4  ;;  %v4731_v25 = vsel %vm2437_vm11, 4294967295, %v4730_v25 }
  0xe3   :  { %vm2421_vm15 = vmand %vm2129_vm12, %vm4724_vm14  ;;  %4732 = vst [vmem:[#allocation58_spill] sm:$0xff] %v4731_v25  ;;  %vm4736_vm5 = vcmp.eq.s32.totalorder %v2095_v21, 0  ;;  %v4737_v17 = vmov 0  ;;  %vm4739_vm14 = vcmp.eq.s32.totalorder %v2123_v41, 0  ;;  %v4744_v21 = vmov 0 }
  0xe4   :  { %4697 = vst [vmem:[#allocation52_spill] sm:$0xff] %v2350_v22  ;;  %v128_v22 = vrot.slane %v126_v13, 2  ;;  %vm2457_vm12 = vmand %vm2117_vm10, %vm4736_vm5  ;;  %v4745_v21 = vsel %vm2473_vm2, 4294967295, %v4744_v21  ;;  %v4748_v41 = vmov 0  ;;  %v4762_v27 = vmov 0 }
  0xe5   :  { %v4738_v17 = vsel %vm2457_vm12, 4294967295, %v4737_v17  ;;  %vm2465_vm11 = vmand %vm2133_vm13, %vm4739_vm14  ;;  %v4749_v41 = vsel %vm2481_vm8, 4294967295, %v4748_v41  ;;  %vm2496_vm13 = vcmp.eq.s32.totalorder %v2036_v52, %v4751_v7  ;;  %vm2503_vm14 = vcmp.eq.s32.totalorder %v2032_v51, %v4755_v56 }
  0xe6   :  { %v130_v49 = vsub.f32 %v126_v13, %v128_v22  ;;  %v4725_v13 = vmov 0  ;;  %v4741_v20 = vsel %vm2465_vm11, 4294967295, %v4740_v20  ;;  %4750 = vst [vmem:[#allocation59_spill] sm:$0xff] %v4749_v41  ;;  %v4753_v57 = vsel %vm2496_vm13, 4294967295, %v4752_v57  ;;  %v1786_v56 = vpop.f32.mrb[2].mxu0 }
  0xe7   :  { %v4726_v13 = vsel %vm2421_vm15, 4294967295, %v4725_v13  ;;  %4754 = vst [vmem:[#allocation60_spill] sm:$0xff] %v4753_v57  ;;  %v4757_v58 = vsel %vm2503_vm14, 4294967295, %v4756_v58  ;;  %vm4765_vm2 = vcmp.lt.s32.totalorder %v1992_v31, 4  ;;  %v4767_v51 = vrot.slane %v1992_v31, 4 }
  0xe8   :  { %v132_v18 = vrot.slane %v130_v49, 2  ;;  %4758 = vst [vmem:[#allocation61_spill] sm:$0xff] %v4757_v58  ;;  %v4761_v49 = vand.u32 2, %v2012_v38  ;;  %v2520_v52 = vsel %vm4765_vm2, %v856_v0, %v857_v47  ;;  %vm4768_vm14 = vmmov %vm4765_vm2  ;;  %vm4770_vm12 = vnez %v4679_v28 }
  0xe9   :  { %4766 = vst [vmem:[#allocation63_spill] sm:$0xff] %v2520_v52  ;;  %v2526_v7 = vsel %vm4768_vm14, %v4767_v51, %v853_v62  ;;  %vm4771_vm11 = vnez %v4649_v46  ;;  %v4773_v22 = vmov 0  ;;  %v4776_v52 = vrot.slane %v2003_v35, 4  ;;  %vm4777_vm13 = vmmov %vm4765_vm2 }
  0xea   :  { %vm2513_vm8 = vcmp.eq.s32.totalorder %v4761_v49, 0  ;;  %4769 = vst [vmem:[#allocation64_spill] sm:$0xff] %v2526_v7  ;;  %v4772_v49 = vand.u32 2, %v2021_v44  ;;  %vm4779_vm14 = vmmov %vm4765_vm2  ;;  %133 = vrot.lane.b32.xlu1 %v132_v18, %s1891_s1  ;;  %vm4843_vm10 = vmmov 1   ;;  %v4889_v1 = vmov 0 }
  0xeb   :  { %v4763_v27 = vsel %vm2513_vm8, 4294967295, %v4762_v27  ;;  %v2543_v51 = vsel %vm4777_vm13, %v858_v12, %v4776_v52  ;;  %v2547_v7 = vsel %vm4779_vm14, %v857_v47, %v858_v12  ;;  %vm4781_vm6 = vmmov %vm4765_vm2  ;;  %v315_v12 = vpop.f32.mrb[3].mxu0  ;;  %v4805_v47 = vld [vmem:[#allocation41_spill] sm:$0xff] }
  0xec   :  { %4764 = vst [vmem:[#allocation62_spill] sm:$0xff] %v4763_v27  ;;  %vm2534_vm8 = vcmp.eq.s32.totalorder %v4772_v49, 0  ;;  %4778 = vst [vmem:[#allocation66_spill] sm:$0xff] %v2543_v51  ;;  %v2551_v54 = vsel %vm4781_vm6, %v855_v5, %v856_v0  ;;  %v4789_v0 = vand.u32 2, %v2003_v35  ;;  %v4808_v51 = vld [vmem:[#allocation40_spill] sm:$0xff] }
  0xed   :  { %v4774_v22 = vsel %vm2534_vm8, 4294967295, %v4773_v22  ;;  %4780 = vst [vmem:[#allocation67_spill] sm:$0xff] %v2547_v7  ;;  %4782 = vst [vmem:[#allocation68_spill] sm:$0xff] %v2551_v54  ;;  %vm4786_vm8 = vcmp.eq.s32.totalorder %v2163_v16, 1  ;;  %v4796_v7 = vmov 0  ;;  %v4803_v16 = vld [vmem:[#allocation53_spill] sm:$0xff] }
  0xee   :  { %4775 = vst [vmem:[#allocation65_spill] sm:$0xff] %v4774_v22  ;;  %vm4783_vm9 = vmmov %vm4765_vm2  ;;  %vm4785_vm2 = vcmp.eq.s32.totalorder %v1994_v32, 1  ;;  %v2563_v52 = vsel %vm4786_vm8, %v1786_v56, 1e+30  ;;  %vm4809_vm15 = vcmp.eq.s32.totalorder %v4808_v51, 1  ;;  %v4812_v54 = vld [vmem:[#allocation55_spill] sm:$0xff] }
  0xef   :  { %v2555_v49 = vsel %vm4783_vm9, %v854_v9, %v855_v5  ;;  %v2559_v43 = vsel %vm4785_vm2, %v1786_v56, 1e+30  ;;  %vm2571_vm9 = vcmp.eq.s32.totalorder %v4789_v0, 0  ;;  %v4790_v5 = vmov 0  ;;  %vm4793_vm5 = vmmov %vm4779_vm14 }
  0xf0   :  { %4784 = vst [vmem:[#allocation69_spill] sm:$0xff] %v2555_v49  ;;  %v4791_v5 = vsel %vm2571_vm9, 4294967295, %v4790_v5  ;;  %v2578_v32 = vsel %vm4793_vm5, %v853_v62, %v854_v9  ;;  %v4795_v0 = vxor.u32 1, %v1997_v33  ;;  %v4799_v62 = vxor.u32 1, %v2003_v35 }
  0xf1   :  { %4792 = vst [vmem:[#allocation70_spill] sm:$0xff] %v4791_v5  ;;  %4794 = vst [vmem:[#allocation71_spill] sm:$0xff] %v2578_v32  ;;  %v4800_v9 = vmov 0  ;;  %vm4806_vm14 = vnez %v4805_v47  ;;  %vm4822_vm9 = vcmp.eq.s32.totalorder %v2384_v23, 1  ;;  %v4828_v5 = vxor.u32 1, %v2009_v37  ;;  %v4834_v23 = vld [vmem:[#allocation14_spill] sm:$0xff] }
  0xf2   :  { %vm2588_vm8 = vcmp.eq.s32.totalorder %v2067_v11, %v4795_v0  ;;  %vm2595_vm5 = vcmp.eq.s32.totalorder %v2063_v10, %v4799_v62  ;;  %v2606_v11 = vsel %vm4809_vm15, %v315_v12, 1e+30  ;;  %v4810_v0 = vld [vmem:[#allocation18_spill] sm:$0xff]  ;;  %v4813_v10 = vld [vmem:[#allocation45_spill] sm:$0xff]  ;;  %vm4816_vm15 = vnez %v4714_v50 }
  0xf3   :  { %v4797_v7 = vsel %vm2588_vm8, 4294967295, %v4796_v7  ;;  %v4801_v9 = vsel %vm2595_vm5, 4294967295, %v4800_v9  ;;  %vm4811_vm8 = vcmp.eq.s32.totalorder %v4810_v0, 1  ;;  %v407_v42 = vrot.slane %v2606_v11, 7  ;;  %v1789_v0 = vpop.f32.mrb[4].mxu0  ;;  %v4820_v62 = vld [vmem:[#allocation13_spill] sm:$0xff] }
  0xf4   :  { %4798 = vst [vmem:[#allocation72_spill] sm:$0xff] %v4797_v7  ;;  %4802 = vst [vmem:[#allocation73_spill] sm:$0xff] %v4801_v9  ;;  %v2610_v18 = vsel %vm4811_vm8, %v315_v12, 1e+30  ;;  %v424_v26 = vrot.slane %v2606_v11, 1  ;;  %vm4818_vm8 = vnez %v4817_v40  ;;  %vm4821_vm5 = vcmp.eq.s32.totalorder %v4820_v62, 1 }
  0xf5   :  { %v411_v51 = vrot.slane %v2610_v18, 7  ;;  %v428_v12 = vrot.slane %v2610_v18, 1  ;;  %v2630_v49 = vsel %vm4821_vm5, %v1789_v0, 1e+30  ;;  %v2634_v32 = vsel %vm4822_vm9, %v1789_v0, 1e+30 }
  0xf6   :  { %v325_v56 = vpop.f32.mrb[5].mxu0  ;;  %v4823_v9 = vxor.u32 1, %v2006_v36  ;;  %v4824_v7 = vld [vmem:[#allocation16_spill] sm:$0xff]  ;;  %vm2646_vm6 = vcmp.eq.s32.totalorder %v4829_v63, %v4828_v5  ;;  %v4833_v62 = vxor.u32 1, %v2012_v38  ;;  %v4835_v0 = vmov 0  ;;  %v4844_v37 = vld [vmem:[#allocation54_spill] sm:$0xff] }
  0xf7   :  { %v4831_v29 = vsel %vm2646_vm6, 4294967295, %v4830_v29  ;;  %v4838_v36 = vxor.u32 1, %v2021_v44  ;;  %v4846_v63 = vmov 0  ;;  %v4849_v5 = vrot.slane %v1992_v31, 4 }
  0xf8   :  { %vm2639_vm4 = vcmp.eq.s32.totalorder %v4824_v7, %v4823_v9  ;;  %4832 = vst [vmem:[#allocation40_spill] sm:$0xff] %v4831_v29  ;;  %vm2653_vm9 = vcmp.eq.s32.totalorder %v4834_v23, %v4833_v62  ;;  %v4839_v7 = vld [vmem:[#allocation17_spill] sm:$0xff]  ;;  %v4840_v9 = vmov 0  ;;  %v4850_v62 = vrot.slane %v2003_v35, 4 }
  0xf9   :  { %v4826_v14 = vsel %vm2639_vm4, 4294967295, %v4825_v14  ;;  %v4836_v0 = vsel %vm2653_vm9, 4294967295, %v4835_v0  ;;  %vm2660_vm5 = vcmp.eq.s32.totalorder %v4839_v7, %v4838_v36  ;;  %vm4845_vm4 = vnez %v4844_v37 }
  0xfa   :  { %4827 = vst [vmem:[#allocation53_spill] sm:$0xff] %v4826_v14  ;;  %4837 = vst [vmem:[#allocation18_spill] sm:$0xff] %v4836_v0  ;;  %v4841_v9 = vsel %vm2660_vm5, 4294967295, %v4840_v9  ;;  %vm4851_vm9 = vcmp.lt.s32.totalorder %v1992_v31, 4  ;;  %v4853_v7 = vrot.slane %v2563_v52, 7  ;;  %vm4854_vm5 = vcmp.lt.s32.totalorder %v1992_v31, 1 }
  0xfb   :  { %4842 = vst [vmem:[#allocation55_spill] sm:$0xff] %v4841_v9  ;;  %vm2667_vm13 = vmxor %vm4845_vm4, %vm4843_vm10  ;;  %v2677_v23 = vsel %vm4851_vm9, %v4850_v62, %v4849_v5  ;;  %v4856_v9 = vrot.slane %v2559_v43, 7  ;;  %v4858_v35 = vrot.slane %v2563_v52, 1  ;;  %vm4859_vm6 = vcmp.lt.s32.totalorder %v1992_v31, 7 }
  0xfc   :  { %v4847_v63 = vsel %vm2667_vm13, 4294967295, %v4846_v63  ;;  %4852 = vst [vmem:[#allocation16_spill] sm:$0xff] %v2677_v23  ;;  %v2684_v44 = vsel %vm4854_vm5, %v411_v51, %v4853_v7  ;;  %vm4857_vm13 = vmmov %vm4854_vm5  ;;  %v4860_v62 = vrot.slane %v2559_v43, 1  ;;  %v4862_v23 = vld [vmem:[#allocation56_spill] sm:$0xff]  ;;  %v4864_v7 = vmov 0 }
  0xfd   :  { %4848 = vst [vmem:[#allocation13_spill] sm:$0xff] %v4847_v63  ;;  %4855 = vst [vmem:[#allocation15_spill] sm:$0xff] %v2684_v44  ;;  %v2690_v63 = vsel %vm4857_vm13, %v407_v42, %v4856_v9  ;;  %v435_v5 = vsel %vm4859_vm6, %v428_v12, %v4858_v35  ;;  %vm4863_vm5 = vnez %v4862_v23  ;;  %v410_v9 = vrot.slane %v2630_v49, 7 }
  0xfe   :  { %vm4861_vm9 = vmmov %vm4859_vm6  ;;  %v414_v33 = vrot.slane %v2634_v32, 7  ;;  %v427_v0 = vrot.slane %v2630_v49, 1  ;;  %v431_v35 = vrot.slane %v2634_v32, 1  ;;  %vm4867_vm13 = vnez %v4716_v60 }
  0xff   :  { %v439_v36 = vsel %vm4861_vm9, %v424_v26, %v4860_v62  ;;  %vm2703_vm4 = vmxor %vm4863_vm5, %vm4843_vm10  ;;  %v4868_v62 = vmov 0  ;;  %vm4870_vm9 = vcmp.eq.s32.totalorder %v2014_v39, 1  ;;  %v4873_v29 = vmov 0 }
 0x100   :  { %v4865_v7 = vsel %vm2703_vm4, 4294967295, %v4864_v7  ;;  %vm2714_vm6 = vmxor %vm4867_vm13, %vm4843_vm10  ;;  %v2720_v44 = vsel %vm4870_vm9, %v325_v56, 1e+30  ;;  %vm4871_vm4 = vcmp.eq.s32.totalorder %v2249_v55, 1  ;;  %v4876_v39 = vmov 0 }
 0x101   :  { %4866 = vst [vmem:[#allocation14_spill] sm:$0xff] %v4865_v7  ;;  %v4869_v62 = vsel %vm2714_vm6, 4294967295, %v4868_v62  ;;  %v2724_v7 = vsel %vm4871_vm4, %v325_v56, 1e+30  ;;  %vm4872_vm5 = vmand %vm2177_vm7, %vm2232_vm0  ;;  %vm4878_vm6 = vnez %v4657_v53  ;;  %vm4879_vm0 = vnez %v4693_v61  ;;  %v4940_v61 = vld [vmem:[#allocation47_spill] sm:$0xff]  ;;  %v4959_v53 = vld [vmem:[#allocation72_spill] sm:$0xff] }
 0x102   :  { %vm2733_vm2 = vmor %vm2405_vm3, %vm4872_vm5  ;;  %vm4881_vm3 = vnez %v4726_v13  ;;  %v4886_v55 = vmov 0  ;;  %v4903_v50 = vmov 0  ;;  %v4952_v47 = vmov 0  ;;  %v4999_v60 = vld [vmem:[#allocation18_spill] sm:$0xff] }
 0x103   :  { %v4874_v29 = vsel %vm2733_vm2, 4294967295, %v4873_v29  ;;  %vm4875_vm9 = vmand %vm4771_vm11, %vm4770_vm12  ;;  %vm4900_vm11 = vnez %v4661_v30  ;;  %v4926_v30 = vmov 0 }
 0x104   :  { %vm2744_vm4 = vmor %vm2413_vm1, %vm4875_vm9  ;;  %vm4885_vm1 = vnez %v4729_v19 }
 0x105   :  { %v4877_v39 = vsel %vm2744_vm4, 4294967295, %v4876_v39  ;;  %vm4880_vm7 = vmand %vm4878_vm6, %vm4879_vm0  ;;  %vm4888_vm0 = vnez %v4731_v25 }
 0x106   :  { %vm2755_vm5 = vmor %vm4881_vm3, %vm4880_vm7  ;;  %vm4892_vm7 = vcmp.eq.s32.totalorder %v2289_v4, 0 }
 0x107   :  { %v4883_v45 = vsel %vm2755_vm5, 4294967295, %v4882_v45  ;;  %vm4884_vm12 = vmand %vm4818_vm8, %vm4816_vm15  ;;  %vm4895_vm15 = vcmp.lt.s32.totalorder %v1992_v31, 1 }
 0x108   :  { %vm2766_vm9 = vmor %vm4885_vm1, %vm4884_vm12  ;;  %v419_v15 = vsel %vm4895_vm15, %v410_v9, %v411_v51  ;;  %vm4897_vm1 = vcmp.lt.s32.totalorder %v1992_v31, 7  ;;  %v4935_v51 = vmov 0 }
 0x109   :  { %v4887_v55 = vsel %vm2766_vm9, 4294967295, %v4886_v55  ;;  %vm2773_vm6 = vmxor %vm4888_vm0, %vm4843_vm10  ;;  %v436_v19 = vsel %vm4897_vm1, %v427_v0, %v428_v12  ;;  %vm4902_vm9 = vnez %v4735_v59  ;;  %v4914_v59 = vmov 0 }
 0x10a   :  { %v4890_v1 = vsel %vm2773_vm6, 4294967295, %v4889_v1  ;;  %vm2780_vm3 = vmxor %vm4892_vm7, %vm4843_vm10  ;;  %vm4899_vm7 = vnez %v4638_v3  ;;  %v4968_v3 = vld [vmem:[#allocation49_spill] sm:$0xff] }
 0x10b   :  { %4891 = vst [vmem:[#allocation17_spill] sm:$0xff] %v4890_v1  ;;  %vm4896_vm12 = vmmov %vm4895_vm15  ;;  %vm4905_vm15 = vnez %v4643_v6  ;;  %v4965_v6 = vmov 0 }
 0x10c   :  { %v423_v13 = vsel %vm4896_vm12, %v414_v33, %v407_v42  ;;  %vm4898_vm8 = vmmov %vm4897_vm1  ;;  %vm4906_vm12 = vnez %v4668_v48  ;;  %vm4908_vm1 = vnez %v4738_v17  ;;  %v4920_v48 = vmov 0 }
 0x10d   :  { %v440_v56 = vsel %vm4898_vm8, %v431_v35, %v424_v26  ;;  %vm4901_vm6 = vmand %vm4899_vm7, %vm4900_vm11  ;;  %v4909_v26 = vmov 0  ;;  %vm4911_vm11 = vnez %v4803_v16  ;;  %vm4916_vm7 = vnez %v4813_v10  ;;  %v4950_v10 = vld [vmem:[#allocation70_spill] sm:$0xff] }
 0x10e   :  { %vm2801_vm5 = vmor %vm4902_vm9, %vm4901_vm6  ;;  %vm4913_vm6 = vnez %v4741_v20  ;;  %v4923_v42 = vmov 0  ;;  %v409_v20 = vrot.slane %v2720_v44, 7  ;;  %v4931_v16 = vmov 0 }
 0x10f   :  { %v4904_v50 = vsel %vm2801_vm5, 4294967295, %v4903_v50  ;;  %vm4907_vm4 = vmand %vm4905_vm15, %vm4906_vm12  ;;  %vm4917_vm12 = vnez %v4812_v54 }
 0x110   :  { %vm2812_vm2 = vmor %vm4908_vm1, %vm4907_vm4  ;;  %vm4919_vm4 = vnez %v4745_v21  ;;  %v413_v21 = vrot.slane %v2724_v7, 7 }
 0x111   :  { %v4910_v26 = vsel %vm2812_vm2, 4294967295, %v4909_v26  ;;  %vm4912_vm8 = vmand %vm4806_vm14, %vm4911_vm11  ;;  %vm4922_vm11 = vnez %v4749_v41  ;;  %v5016_v41 = vld [vmem:[#allocation38_spill] sm:$0xff] }
 0x112   :  { %vm2823_vm9 = vmor %vm4913_vm6, %vm4912_vm8  ;;  %vm4925_vm8 = vcmp.eq.s32.totalorder %v2293_v8, 0 }
 0x113   :  { %v4915_v59 = vsel %vm2823_vm9, 4294967295, %v4914_v59  ;;  %vm4918_vm15 = vmand %vm4916_vm7, %vm4917_vm12  ;;  %vm4928_vm12 = vnez %v4753_v57 }
 0x114   :  { %vm2834_vm1 = vmor %vm4919_vm4, %vm4918_vm15  ;;  %v465_v54 = vsel %vm4928_vm12, %v423_v13, %v439_v36  ;;  %vm4929_vm15 = vnez %v4757_v58  ;;  %vm4930_vm4 = vnez %v4763_v27  ;;  %v4938_v13 = vmov 0 }
 0x115   :  { %v4921_v48 = vsel %vm2834_vm1, 4294967295, %v4920_v48  ;;  %vm2841_vm14 = vmxor %vm4922_vm11, %vm4843_vm10  ;;  %v469_v17 = vsel %vm4929_vm15, %v419_v15, %v435_v5  ;;  %v545_v12 = vmin.f32 %v2606_v11, %v465_v54  ;;  %v553_v5 = vmax.f32 %v2606_v11, %v465_v54 }
 0x116   :  { %v4924_v42 = vsel %vm2841_vm14, 4294967295, %v4923_v42  ;;  %vm2848_vm6 = vmxor %vm4925_vm8, %vm4843_vm10  ;;  %vm4934_vm8 = vcmp.eq.s32.totalorder %v2314_v24, 0  ;;  %v549_v36 = vmin.f32 %v2610_v18, %v469_v17  ;;  %v557_v15 = vmax.f32 %v2610_v18, %v469_v17 }
 0x117   :  { %v4927_v30 = vsel %vm2848_vm6, 4294967295, %v4926_v30  ;;  %vm2861_vm7 = vmxor %vm4930_vm4, %vm4843_vm10  ;;  %vm4937_vm15 = vnez %v4774_v22  ;;  %v4942_v58 = vmov 0  ;;  %vm4944_vm1 = vcmp.lt.s32.totalorder %v1992_v31, 1 }
 0x118   :  { %v4932_v16 = vsel %vm2861_vm7, 4294967295, %v4931_v16  ;;  %vm2868_vm14 = vmxor %vm4934_vm8, %vm4843_vm10  ;;  %vm4941_vm8 = vcmp.eq.s32.totalorder %v4940_v61, 0  ;;  %v416_v57 = vsel %vm4944_vm1, %v413_v21, %v414_v33  ;;  %v4945_v11 = vrot.slane %v2563_v52, 7  ;;  %v4955_v33 = vld [vmem:[#allocation48_spill] sm:$0xff] }
 0x119   :  { %4933 = vst [vmem:[#allocation74_spill] sm:$0xff] %v4932_v16  ;;  %v4936_v51 = vsel %vm2868_vm14, 4294967295, %v4935_v51  ;;  %vm2879_vm12 = vmxor %vm4937_vm15, %vm4843_vm10  ;;  %v4948_v17 = vrot.slane %v2559_v43, 7  ;;  %vm5064_vm14 = vnez %v4910_v26 }
 0x11a   :  { %v4939_v13 = vsel %vm2879_vm12, 4294967295, %v4938_v13  ;;  %vm2886_vm7 = vmxor %vm4941_vm8, %vm4843_vm10  ;;  %vm4951_vm8 = vnez %v4950_v10 }
 0x11b   :  { %v4943_v58 = vsel %vm2886_vm7, 4294967295, %v4942_v58  ;;  %vm4946_vm9 = vmmov %vm4944_vm1 }
 0x11c   :  { %v417_v18 = vsel %vm4946_vm9, %v4945_v11, %v413_v21  ;;  %vm4947_vm2 = vmmov %vm4944_vm1  ;;  %v4957_v21 = vmov 0  ;;  %v430_v11 = vrot.slane %v2724_v7, 1 }
 0x11d   :  { %v420_v54 = vsel %vm4947_vm2, %v409_v20, %v410_v9  ;;  %vm4949_vm12 = vmmov %vm4944_vm1  ;;  %vm4956_vm1 = vcmp.eq.s32.totalorder %v4955_v33, 0  ;;  %v426_v9 = vrot.slane %v2720_v44, 1  ;;  %vm4960_vm2 = vnez %v4959_v53 }
 0x11e   :  { %v421_v40 = vsel %vm4949_vm12, %v4948_v17, %v409_v20  ;;  %vm2905_vm5 = vmxor %vm4951_vm8, %vm4843_vm10  ;;  %v468_v20 = vsel %vm4960_vm2, %v420_v54, %v436_v19  ;;  %v4961_v17 = vld [vmem:[#allocation73_spill] sm:$0xff]  ;;  %vm4963_vm12 = vcmp.eq.s32.totalorder %v2289_v4, 0  ;;  %v4979_v53 = vmov 0 }
 0x11f   :  { %v4953_v47 = vsel %vm2905_vm5, 4294967295, %v4952_v47  ;;  %vm2912_vm7 = vmxor %vm4956_vm1, %vm4843_vm10  ;;  %vm4962_vm9 = vnez %v4961_v17  ;;  %vm4964_vm5 = vnez %v4844_v37  ;;  %vm4969_vm1 = vcmp.eq.s32.totalorder %v4968_v3, 0  ;;  %v4977_v17 = vld [vmem:[#allocation51_spill] sm:$0xff] }
 0x120   :  { %4954 = vst [vmem:[#allocation75_spill] sm:$0xff] %v4953_v47  ;;  %v4958_v21 = vsel %vm2912_vm7, 4294967295, %v4957_v21  ;;  %v472_v46 = vsel %vm4962_vm9, %v416_v57, %v440_v56  ;;  %vm2926_vm8 = vmand %vm4964_vm5, %vm4963_vm12  ;;  %v548_v19 = vmin.f32 %v2630_v49, %v468_v20  ;;  %v556_v57 = vmax.f32 %v2630_v49, %v468_v20 }
 0x121   :  { %v4966_v6 = vsel %vm2926_vm8, 4294967295, %v4965_v6  ;;  %vm2933_vm7 = vmxor %vm4969_vm1, %vm4843_vm10  ;;  %v552_v54 = vmin.f32 %v2634_v32, %v472_v46  ;;  %v560_v56 = vmax.f32 %v2634_v32, %v472_v46  ;;  %vm4972_vm12 = vcmp.eq.s32.totalorder %v2293_v8, 0 }
 0x122   :  { %4967 = vst [vmem:[#allocation76_spill] sm:$0xff] %v4966_v6  ;;  %v4971_v2 = vsel %vm2933_vm7, 4294967295, %v4970_v2  ;;  %vm4973_vm5 = vnez %v4862_v23  ;;  %v4974_v37 = vmov 0  ;;  %vm4978_vm1 = vcmp.eq.s32.totalorder %v4977_v17, 0 }
 0x123   :  { %vm2945_vm9 = vmand %vm4973_vm5, %vm4972_vm12  ;;  %vm4981_vm8 = vcmp.lt.s32.totalorder %v1992_v31, 7  ;;  %v4982_v46 = vrot.slane %v2563_v52, 1  ;;  %v4985_v23 = vrot.slane %v2559_v43, 1  ;;  %v4988_v4 = vmov 0 }
 0x124   :  { %v4975_v37 = vsel %vm2945_vm9, 4294967295, %v4974_v37  ;;  %vm2952_vm2 = vmxor %vm4978_vm1, %vm4843_vm10  ;;  %v433_v49 = vsel %vm4981_vm8, %v430_v11, %v431_v35  ;;  %vm4987_vm1 = vcmp.eq.s32.totalorder %v2314_v24, 0  ;;  %v4991_v35 = vld [vmem:[#allocation52_spill] sm:$0xff]  ;;  %v5004_v6 = vmov 0 }
 0x125   :  { %4976 = vst [vmem:[#allocation49_spill] sm:$0xff] %v4975_v37  ;;  %v4980_v53 = vsel %vm2952_vm2, 4294967295, %v4979_v53  ;;  %vm4983_vm7 = vmmov %vm4981_vm8  ;;  %vm4992_vm8 = vcmp.eq.s32.totalorder %v4991_v35, 0  ;;  %v5001_v37 = vld [vmem:[#allocation55_spill] sm:$0xff] }
 0x126   :  { %v434_v32 = vsel %vm4983_vm7, %v4982_v46, %v430_v11  ;;  %vm4984_vm12 = vmmov %vm4983_vm7  ;;  %v4993_v11 = vmov 0  ;;  %v4998_v46 = vld [vmem:[#allocation15_spill] sm:$0xff] }
 0x127   :  { %v437_v20 = vsel %vm4984_vm12, %v426_v9, %v427_v0  ;;  %vm4986_vm5 = vmmov %vm4983_vm7  ;;  %vm4995_vm12 = vnez %v4826_v14  ;;  %v5017_v14 = vmov 0 }
 0x128   :  { %v438_v8 = vsel %vm4986_vm5, %v4985_v23, %v426_v9  ;;  %vm2972_vm9 = vmand %vm4867_vm13, %vm4987_vm1  ;;  %v4996_v23 = vld [vmem:[#allocation40_spill] sm:$0xff]  ;;  %vm5000_vm1 = vnez %v4999_v60  ;;  %vm5002_vm13 = vnez %v5001_v37 }
 0x129   :  { %v4989_v4 = vsel %vm2972_vm9, 4294967295, %v4988_v4  ;;  %vm2979_vm7 = vmxor %vm4992_vm8, %vm4843_vm10  ;;  %v466_v0 = vsel %vm4995_vm12, %v2690_v63, %v438_v8  ;;  %vm4997_vm5 = vnez %v4996_v23  ;;  %v470_v24 = vsel %vm5000_vm1, %v4998_v46, %v434_v32 }
 0x12a   :  { %4990 = vst [vmem:[#allocation51_spill] sm:$0xff] %v4989_v4  ;;  %v4994_v11 = vsel %vm2979_vm7, 4294967295, %v4993_v11  ;;  %v467_v9 = vsel %vm4997_vm5, %v421_v40, %v437_v20  ;;  %v471_v4 = vsel %vm5002_vm13, %v417_v18, %v433_v49  ;;  %vm5003_vm8 = vcmp.eq.s32.totalorder %v4940_v61, 0  ;;  %v5007_v40 = vld [vmem:[#allocation13_spill] sm:$0xff]  ;;  %v5013_v20 = vld [vmem:[#allocation14_spill] sm:$0xff] }
 0x12b   :  { %vm2998_vm10 = vmand %vm4888_vm0, %vm5003_vm8  ;;  %vm5008_vm5 = vnez %v5007_v40  ;;  %v546_v8 = vmin.f32 %v2559_v43, %v466_v0  ;;  %v547_v63 = vmin.f32 %v2720_v44, %v467_v9  ;;  %v550_v18 = vmin.f32 %v2563_v52, %v470_v24 }
 0x12c   :  { %v5005_v6 = vsel %vm2998_vm10, 4294967295, %v5004_v6  ;;  %v551_v49 = vmin.f32 %v2724_v7, %v471_v4  ;;  %vm5009_vm9 = vcmp.eq.s32.totalorder %v4955_v33, 0  ;;  %v5010_v32 = vmov 0  ;;  %v5020_v33 = vld [vmem:[#allocation9_spill] sm:$0xff] }
 0x12d   :  { %5006 = vst [vmem:[#allocation52_spill] sm:$0xff] %v5005_v6  ;;  %vm3014_vm8 = vmand %vm4922_vm11, %vm5009_vm9  ;;  %vm5014_vm12 = vnez %v5013_v20  ;;  %v554_v46 = vmax.f32 %v2559_v43, %v466_v0  ;;  %v555_v25 = vmax.f32 %v2720_v44, %v467_v9  ;;  %v558_v37 = vmax.f32 %v2563_v52, %v470_v24  ;;  %v5025_v43 = vld [vmem:[#allocation10_spill] sm:$0xff]  ;;  %v5096_v40 = vld [vmem:[#allocation49_spill] sm:$0xff] }
 0x12e   :  { %v5011_v32 = vsel %vm3014_vm8, 4294967295, %v5010_v32  ;;  %v559_v60 = vmax.f32 %v2724_v7, %v471_v4  ;;  %v5015_v23 = vxor.u32 2, %v1992_v31  ;;  %v5021_v61 = vxor.u32 2, %v5020_v33  ;;  %v5027_v0 = vld [vmem:[#allocation30_spill] sm:$0xff] }
 0x12f   :  { %5012 = vst [vmem:[#allocation15_spill] sm:$0xff] %v5011_v32  ;;  %v5022_v32 = vld [vmem:[#allocation34_spill] sm:$0xff]  ;;  %v5023_v6 = vmov 0  ;;  %v5026_v44 = vxor.u32 2, %v5025_v43  ;;  %v5028_v24 = vmov 0  ;;  %vm5030_vm13 = vcmp.eq.s32.totalorder %v4968_v3, 0 }
 0x130   :  { %vm3029_vm9 = vcmp.eq.s32.totalorder %v5016_v41, %v5015_v23  ;;  %vm3036_vm11 = vcmp.eq.s32.totalorder %v5022_v32, %v5021_v61  ;;  %vm3051_vm1 = vmand %vm4930_vm4, %vm5030_vm13  ;;  %v5031_v4 = vmov 0  ;;  %vm5034_vm8 = vnez %v4874_v29  ;;  %v5038_v23 = vld [vmem:[#allocation6_spill] sm:$0xff]  ;;  %v5040_v32 = vld [vmem:[#allocation29_spill] sm:$0xff] }
 0x131   :  { %v5018_v14 = vsel %vm3029_vm9, 4294967295, %v5017_v14  ;;  %v5024_v6 = vsel %vm3036_vm11, 4294967295, %v5023_v6  ;;  %vm3043_vm0 = vcmp.eq.s32.totalorder %v5027_v0, %v5026_v44  ;;  %v5032_v4 = vsel %vm3051_vm1, 4294967295, %v5031_v4  ;;  %v5102_v20 = vld [vmem:[#allocation51_spill] sm:$0xff] }
 0x132   :  { %5019 = vst [vmem:[#allocation13_spill] sm:$0xff] %v5018_v14  ;;  %v5029_v24 = vsel %vm3043_vm0, 4294967295, %v5028_v24  ;;  %vm5033_vm9 = vnez %v4869_v62  ;;  %v3061_v41 = vsel %vm5034_vm8, %v545_v12, %v553_v5  ;;  %vm5035_vm10 = vnez %v4877_v39  ;;  %v5044_v39 = vld [vmem:[#allocation37_spill] sm:$0xff]  ;;  %v5052_v5 = vld [vmem:[#allocation12_spill] sm:$0xff] }
 0x133   :  { %v3065_v52 = vsel %vm5035_vm10, %v548_v19, %v556_v57  ;;  %vm5036_vm0 = vnez %v4883_v45  ;;  %vm5037_vm13 = vnez %v4887_v55  ;;  %v5039_v9 = vxor.u32 2, %v5038_v23  ;;  %v5054_v19 = vld [vmem:[#allocation33_spill] sm:$0xff] }
 0x134   :  { %v3069_v7 = vsel %vm5036_vm0, %v549_v36, %v557_v15  ;;  %v3073_v61 = vsel %vm5037_vm13, %v552_v54, %v560_v56  ;;  %v5041_v44 = vmov 0  ;;  %v5043_v29 = vxor.u32 2, %v2000_v34  ;;  %v5049_v36 = vld [vmem:[#allocation36_spill] sm:$0xff] }
 0x135   :  { %vm3078_vm11 = vcmp.eq.s32.totalorder %v5040_v32, %v5039_v9  ;;  %v5045_v12 = vmov 0  ;;  %v5048_v45 = vxor.u32 2, %v2012_v38  ;;  %v5050_v55 = vmov 0  ;;  %v5111_v62 = vld [vmem:[#allocation52_spill] sm:$0xff] }
 0x136   :  { %v5042_v44 = vsel %vm3078_vm11, 4294967295, %v5041_v44  ;;  %vm3085_vm10 = vcmp.eq.s32.totalorder %v5044_v39, %v5043_v29  ;;  %v5053_v15 = vxor.u32 2, %v5052_v5  ;;  %v5055_v54 = vmov 0  ;;  %v5067_v29 = vld [vmem:[#allocation8_spill] sm:$0xff] }
 0x137   :  { %v5046_v12 = vsel %vm3085_vm10, 4294967295, %v5045_v12  ;;  %vm3092_vm0 = vcmp.eq.s32.totalorder %v5049_v36, %v5048_v45  ;;  %vm5058_vm13 = vcmp.eq.s32.totalorder %v4977_v17, 0  ;;  %v5059_v57 = vmov 0  ;;  %v5069_v45 = vld [vmem:[#allocation32_spill] sm:$0xff] }
 0x138   :  { %5047 = vst [vmem:[#allocation38_spill] sm:$0xff] %v5046_v12  ;;  %v5051_v55 = vsel %vm3092_vm0, 4294967295, %v5050_v55  ;;  %vm3099_vm8 = vcmp.eq.s32.totalorder %v5054_v19, %v5053_v15  ;;  %vm3107_vm4 = vmand %vm4937_vm15, %vm5058_vm13  ;;  %vm5062_vm11 = vnez %v4890_v1  ;;  %vm5063_vm1 = vnez %v4904_v50 }
 0x139   :  { %v5056_v54 = vsel %vm3099_vm8, 4294967295, %v5055_v54  ;;  %v5060_v57 = vsel %vm3107_vm4, 4294967295, %v5059_v57  ;;  %v3117_v56 = vsel %vm5063_vm1, %v546_v8, %v554_v46  ;;  %v3121_v0 = vsel %vm5064_vm14, %v547_v63, %v555_v25 }
 0x13a   :  { %5057 = vst [vmem:[#allocation34_spill] sm:$0xff] %v5056_v54  ;;  %vm5065_vm8 = vnez %v4915_v59  ;;  %vm5066_vm13 = vnez %v4921_v48  ;;  %v5068_v39 = vxor.u32 2, %v5067_v29  ;;  %v5070_v36 = vmov 0 }
 0x13b   :  { %v3125_v9 = vsel %vm5065_vm8, %v550_v18, %v558_v37  ;;  %v3129_v32 = vsel %vm5066_vm13, %v551_v49, %v559_v60  ;;  %vm5073_vm1 = vcmp.eq.s32.totalorder %v4991_v35, 0  ;;  %vm5074_vm14 = vnez %v4950_v10  ;;  %v5173_v10 = vld [vmem:[#allocation27_spill] sm:$0xff] }
 0x13c   :  { %vm3134_vm0 = vcmp.eq.s32.totalorder %v5069_v45, %v5068_v39  ;;  %vm3142_vm15 = vmand %vm5074_vm14, %vm5073_vm1  ;;  %v5075_v25 = vmov 0  ;;  %v577_v37 = vrot.slane %v3061_v41, 6  ;;  %v578_v60 = vrot.slane %v3117_v56, 6 }
 0x13d   :  { %v5071_v36 = vsel %vm3134_vm0, 4294967295, %v5070_v36  ;;  %v5076_v25 = vsel %vm3142_vm15, 4294967295, %v5075_v25  ;;  %v579_v50 = vrot.slane %v3121_v0, 6  ;;  %v580_v26 = vrot.slane %v3065_v52, 6 }
 0x13e   :  { %5072 = vst [vmem:[#allocation30_spill] sm:$0xff] %v5071_v36  ;;  %v581_v59 = vrot.slane %v3069_v7, 6  ;;  %v582_v48 = vrot.slane %v3125_v9, 6  ;;  %v583_v8 = vrot.slane %v3129_v32, 6  ;;  %v584_v63 = vrot.slane %v3073_v61, 6 }
 0x13f   :  { %vm5081_vm4 = vnez %v4939_v13  ;;  %vm5082_vm8 = vcmp.lt.s32.totalorder %v1992_v31, 2  ;;  %v594_v15 = vrot.slane %v3061_v41, 2  ;;  %vm5085_vm0 = vnez %v4953_v47 }
 0x140   :  { %v590_v18 = vsel %vm5082_vm8, %v579_v50, %v580_v26  ;;  %vm5083_vm13 = vmmov %vm5082_vm8  ;;  %v588_v45 = vsel %vm5082_vm8, %v581_v59, %v582_v48  ;;  %v595_v27 = vrot.slane %v3117_v56, 2  ;;  %v601_v22 = vrot.slane %v3073_v61, 2 }
 0x141   :  { %v591_v49 = vsel %vm5083_vm13, %v578_v60, %v579_v50  ;;  %vm5084_vm14 = vmmov %vm5082_vm8  ;;  %v5123_v43 = vmov 0 }
 0x142   :  { %v592_v46 = vsel %vm5084_vm14, %v577_v37, %v578_v60  ;;  %vm5086_vm10 = vmmov %vm5082_vm8  ;;  %v5090_v60 = vld [vmem:[#allocation76_spill] sm:$0xff] }
 0x143   :  { %v586_v19 = vsel %vm5086_vm10, %v583_v8, %v584_v63  ;;  %vm5087_vm15 = vmmov %vm5082_vm8  ;;  %vm5091_vm2 = vnez %v5090_v60  ;;  %v598_v60 = vrot.slane %v3069_v7, 2 }
 0x144   :  { %v587_v39 = vsel %vm5087_vm15, %v582_v48, %v583_v8  ;;  %vm5088_vm13 = vmmov %vm5082_vm8  ;;  %v596_v48 = vrot.slane %v3121_v0, 2 }
 0x145   :  { %v589_v50 = vsel %vm5088_vm13, %v580_v26, %v581_v59  ;;  %vm5089_vm14 = vmand %vm5008_vm5, %vm2780_vm3  ;;  %v597_v26 = vrot.slane %v3065_v52, 2  ;;  %vm5097_vm5 = vnez %v5096_v40 }
 0x146   :  { %vm3192_vm1 = vmor %vm5091_vm2, %vm5089_vm14  ;;  %vm5103_vm14 = vnez %v5102_v20  ;;  %v5113_v20 = vmov 0 }
 0x147   :  { %vm5094_vm10 = vmmov %vm5082_vm8  ;;  %vm5100_vm8 = vnez %v4936_v51 }
 0x148   :  { %v593_v8 = vsel %vm5094_vm10, %v584_v63, %v577_v37  ;;  %vm5095_vm15 = vmand %vm5014_vm12, %vm2848_vm6  ;;  %v599_v37 = vrot.slane %v3125_v9, 2  ;;  %v600_v63 = vrot.slane %v3129_v32, 2  ;;  %vm5109_vm6 = vnez %v4943_v58 }
 0x149   :  { %vm3208_vm2 = vmor %vm5097_vm5, %vm5095_vm15  ;;  %vm5106_vm15 = vcmp.lt.s32.totalorder %v1992_v31, 6 }
 0x14a   :  { %vm5101_vm13 = vmand %vm5033_vm9, %vm5100_vm8  ;;  %v607_v38 = vsel %vm5106_vm15, %v596_v48, %v597_v26  ;;  %vm5112_vm8 = vnez %v5111_v62  ;;  %v5121_v62 = vld [vmem:[#allocation15_spill] sm:$0xff] }
 0x14b   :  { %vm3223_vm10 = vmor %vm5103_vm14, %vm5101_vm13 }
 0x14c   :  { %vm5107_vm5 = vmmov %vm5106_vm15 }
 0x14d   :  { %v608_v34 = vsel %vm5107_vm5, %v595_v27, %v596_v48  ;;  %vm5108_vm12 = vmmov %vm5107_vm5  ;;  %v606_v1 = vsel %vm5107_vm5, %v597_v26, %v598_v60 }
 0x14e   :  { %v609_v23 = vsel %vm5108_vm12, %v594_v15, %v595_v27  ;;  %vm5110_vm9 = vmand %vm5062_vm11, %vm5109_vm6  ;;  %vm5118_vm11 = vnez %v4924_v42  ;;  %vm5122_vm6 = vnez %v5121_v62  ;;  %v5155_v62 = vld [vmem:[#allocation43_spill] sm:$0xff] }
 0x14f   :  { %vm3240_vm13 = vmor %vm5112_vm8, %vm5110_vm9  ;;  %vm5119_vm8 = vnez %v4958_v21 }
 0x150   :  { %v5114_v20 = vsel %vm3240_vm13, 4294967295, %v5113_v20  ;;  %vm5115_vm14 = vmmov %vm5107_vm5 }
 0x151   :  { %v603_v33 = vsel %vm5115_vm14, %v600_v63, %v601_v22  ;;  %vm5116_vm15 = vmmov %vm5107_vm5 }
 0x152   :  { %v604_v48 = vsel %vm5116_vm15, %v599_v37, %v600_v63  ;;  %vm5117_vm12 = vmmov %vm5107_vm5  ;;  %vm5126_vm15 = vnez %v5018_v14 }
 0x153   :  { %v605_v27 = vsel %vm5117_vm12, %v598_v60, %v599_v37  ;;  %vm5120_vm9 = vmand %vm5118_vm11, %vm5119_vm8  ;;  %v635_v37 = vsel %vm5126_vm15, %v593_v8, %v609_v23  ;;  %vm5127_vm12 = vnez %v5024_v6  ;;  %vm5129_vm11 = vnez %v4932_v16 }
 0x154   :  { %vm3260_vm13 = vmor %vm5122_vm6, %vm5120_vm9  ;;  %v636_v26 = vsel %vm5127_vm12, %v592_v46, %v608_v34  ;;  %vm5130_vm8 = vnez %v4971_v2  ;;  %vm5132_vm9 = vnez %v5032_v4  ;;  %vm5136_vm15 = vnez %v5046_v12 }
 0x155   :  { %v5124_v43 = vsel %vm3260_vm13, 4294967295, %v5123_v43  ;;  %vm5125_vm14 = vmmov %vm5107_vm5  ;;  %vm5128_vm5 = vnez %v5029_v24  ;;  %v639_v34 = vsel %vm5136_vm15, %v589_v50, %v605_v27  ;;  %vm5137_vm12 = vnez %v5051_v55 }
 0x156   :  { %v610_v63 = vsel %vm5125_vm14, %v601_v22, %v594_v15  ;;  %v637_v42 = vsel %vm5128_vm5, %v591_v49, %v607_v38  ;;  %vm5131_vm6 = vmand %vm5129_vm11, %vm5130_vm8  ;;  %vm5135_vm14 = vnez %v5042_v44  ;;  %v640_v38 = vsel %vm5137_vm12, %v588_v45, %v604_v48 }
 0x157   :  { %vm3279_vm13 = vmor %vm5132_vm9, %vm5131_vm6  ;;  %v638_v22 = vsel %vm5135_vm14, %v590_v18, %v606_v1  ;;  %vm5138_vm5 = vnez %v5056_v54  ;;  %vm5139_vm11 = vnez %v4980_v53  ;;  %vm5141_vm9 = vnez %v5060_v57 }
 0x158   :  { %v641_v23 = vsel %vm5138_vm5, %v587_v39, %v603_v33  ;;  %vm5140_vm6 = vmand %vm5081_vm4, %vm5139_vm11  ;;  %vm5144_vm14 = vnez %v5071_v36  ;;  %vm5146_vm5 = vnez %v5076_v25  ;;  %v715_v33 = vmin.f32 %v3061_v41, %v635_v37  ;;  %v5149_v39 = vld [vmem:[#allocation42_spill] sm:$0xff]  ;;  %v5151_v25 = vld [vmem:[#allocation19_spill] sm:$0xff] }
 0x159   :  { %vm3298_vm8 = vmor %vm5141_vm9, %vm5140_vm6  ;;  %v642_v1 = vsel %vm5144_vm14, %v586_v19, %v610_v63  ;;  %v716_v57 = vmin.f32 %v3117_v56, %v636_v26  ;;  %v717_v18 = vmin.f32 %v3121_v0, %v637_v42  ;;  %v718_v49 = vmin.f32 %v3065_v52, %v638_v22  ;;  %v5157_v63 = vld [vmem:[#allocation20_spill] sm:$0xff] }
 0x15a   :  { %vm5145_vm12 = vmand %vm5085_vm0, %vm2979_vm7  ;;  %v719_v46 = vmin.f32 %v3069_v7, %v639_v34  ;;  %v720_v15 = vmin.f32 %v3125_v9, %v640_v38  ;;  %v721_v19 = vmin.f32 %v3129_v32, %v641_v23  ;;  %vm5150_vm4 = vcmp.eq.s32.totalorder %v5149_v39, 0 }
 0x15b   :  { %vm3311_vm15 = vmor %vm5146_vm5, %vm5145_vm12  ;;  %vm5152_vm12 = vnez %v5151_v25  ;;  %v722_v50 = vmin.f32 %v3073_v61, %v642_v1  ;;  %v723_v8 = vmax.f32 %v3061_v41, %v635_v37  ;;  %v724_v48 = vmax.f32 %v3117_v56, %v636_v26  ;;  %v5161_v37 = vld [vmem:[#allocation46_spill] sm:$0xff]  ;;  %v5163_v56 = vld [vmem:[#allocation21_spill] sm:$0xff] }
 0x15c   :  { %vm3326_vm5 = vmand %vm5152_vm12, %vm5150_vm4  ;;  %v725_v27 = vmax.f32 %v3121_v0, %v637_v42  ;;  %vm5156_vm6 = vcmp.eq.s32.totalorder %v5155_v62, 0  ;;  %vm5158_vm9 = vnez %v5157_v63  ;;  %v5159_v39 = vmov 0  ;;  %v5210_v62 = vld [vmem:[#allocation39_spill] sm:$0xff] }
 0x15d   :  { %vm3338_vm0 = vmand %vm5158_vm9, %vm5156_vm6  ;;  %v726_v25 = vmax.f32 %v3065_v52, %v638_v22  ;;  %v727_v47 = vmax.f32 %v3069_v7, %v639_v34  ;;  %v728_v16 = vmax.f32 %v3125_v9, %v640_v38  ;;  %v729_v41 = vmax.f32 %v3129_v32, %v641_v23  ;;  %v5167_v9 = vld [vmem:[#allocation47_spill] sm:$0xff]  ;;  %v5169_v32 = vld [vmem:[#allocation22_spill] sm:$0xff] }
 0x15e   :  { %v5160_v39 = vsel %vm3338_vm0, 4294967295, %v5159_v39  ;;  %vm5162_vm4 = vcmp.eq.s32.totalorder %v5161_v37, 0  ;;  %vm5164_vm12 = vnez %v5163_v56  ;;  %v5165_v0 = vmov 0  ;;  %v5177_v38 = vld [vmem:[#allocation48_spill] sm:$0xff]  ;;  %v5179_v23 = vld [vmem:[#allocation23_spill] sm:$0xff] }
 0x15f   :  { %vm3350_vm14 = vmand %vm5164_vm12, %vm5162_vm4  ;;  %v730_v26 = vmax.f32 %v3073_v61, %v642_v1  ;;  %v3357_v42 = vsel %vm3192_vm1, %v715_v33, %v723_v8  ;;  %v3361_v52 = vsel %vm3208_vm2, %v716_v57, %v724_v48  ;;  %v3365_v7 = vsel %vm3223_vm10, %v717_v18, %v725_v27  ;;  %v5187_v1 = vld [vmem:[#allocation24_spill] sm:$0xff]  ;;  %v5192_v57 = vld [vmem:[#allocation31_spill] sm:$0xff] }
 0x160   :  { %v5166_v0 = vsel %vm3350_vm14, 4294967295, %v5165_v0  ;;  %vm5168_vm6 = vcmp.eq.s32.totalorder %v5167_v9, 0  ;;  %vm5170_vm4 = vnez %v5169_v32  ;;  %v5171_v22 = vmov 0  ;;  %v5205_v48 = vld [vmem:[#allocation26_spill] sm:$0xff]  ;;  %v5216_v9 = vld [vmem:[#allocation41_spill] sm:$0xff] }
 0x161   :  { %vm3371_vm9 = vmand %vm5170_vm4, %vm5168_vm6  ;;  %vm5174_vm1 = vnez %v5173_v10  ;;  %vm5175_vm2 = vnez %v5114_v20  ;;  %vm5176_vm10 = vnez %v5124_v43  ;;  %v3389_v40 = vsel %vm3279_vm13, %v720_v15, %v728_v16 }
 0x162   :  { %v5172_v22 = vsel %vm3371_vm9, 4294967295, %v5171_v22  ;;  %v3381_v61 = vsel %vm5175_vm2, %v718_v49, %v726_v25  ;;  %v3385_v59 = vsel %vm5176_vm10, %v719_v46, %v727_v47  ;;  %v3393_v34 = vsel %vm3298_vm8, %v721_v19, %v729_v41  ;;  %v5184_v47 = vld [vmem:[#allocation28_spill] sm:$0xff]  ;;  %v5200_v19 = vld [vmem:[#allocation35_spill] sm:$0xff] }
 0x163   :  { %vm5178_vm6 = vcmp.eq.s32.totalorder %v5177_v38, 0  ;;  %vm5180_vm12 = vnez %v5179_v23  ;;  %v5181_v20 = vmov 0  ;;  %v3409_v16 = vsel %vm3311_vm15, %v722_v50, %v730_v26 }
 0x164   :  { %vm3399_vm4 = vmand %vm5180_vm12, %vm5178_vm6  ;;  %v739_v43 = vrot.slane %v3357_v42, 7  ;;  %v740_v60 = vrot.slane %v3361_v52, 7  ;;  %v741_v4 = vrot.slane %v3365_v7, 7  ;;  %vm5186_vm13 = vcmp.eq.s32.totalorder %v4968_v3, 0  ;;  %v5195_v3 = vld [vmem:[#allocation25_spill] sm:$0xff] }
 0x165   :  { %v5182_v20 = vsel %vm3399_vm4, 4294967295, %v5181_v20  ;;  %vm5188_vm8 = vnez %v5187_v1  ;;  %v5189_v33 = vmov 0  ;;  %v742_v13 = vrot.slane %v3381_v61, 7 }
 0x166   :  { %vm3418_vm6 = vmand %vm5188_vm8, %vm5186_vm13  ;;  %v743_v18 = vrot.slane %v3385_v59, 7  ;;  %v744_v49 = vrot.slane %v3389_v40, 7  ;;  %v745_v46 = vrot.slane %v3393_v34, 7  ;;  %vm5194_vm4 = vcmp.eq.s32.totalorder %v4977_v17, 0 }
 0x167   :  { %v5190_v33 = vsel %vm3418_vm6, 4294967295, %v5189_v33  ;;  %vm5196_vm13 = vnez %v5195_v3  ;;  %v5197_v15 = vmov 0  ;;  %v746_v25 = vrot.slane %v3409_v16, 7 }
 0x168   :  { %vm3434_vm8 = vmand %vm5196_vm13, %vm5194_vm4  ;;  %vm5202_vm9 = vcmp.lt.s32.totalorder %v1992_v31, 1  ;;  %v755_v17 = vrot.slane %v3357_v42, 1  ;;  %vm5204_vm4 = vcmp.eq.s32.totalorder %v4991_v35, 0  ;;  %vm5206_vm13 = vnez %v5205_v48 }
 0x169   :  { %v5198_v15 = vsel %vm3434_vm8, 4294967295, %v5197_v15  ;;  %v752_v50 = vsel %vm5202_vm9, %v740_v60, %v741_v4  ;;  %vm5203_vm12 = vmmov %vm5202_vm9  ;;  %v5207_v27 = vmov 0  ;;  %vm5209_vm14 = vnez %v4958_v21 }
 0x16a   :  { %v753_v8 = vsel %vm5203_vm12, %v739_v43, %v740_v60  ;;  %vm3452_vm8 = vmand %vm5206_vm13, %vm5204_vm4  ;;  %vm5211_vm6 = vnez %v5210_v62  ;;  %v748_v41 = vsel %vm5202_vm9, %v744_v49, %v745_v46  ;;  %vm5215_vm4 = vnez %v4971_v2  ;;  %v5281_v62 = vld [vmem:[#allocation10_spill] sm:$0xff] }
 0x16b   :  { %v5208_v27 = vsel %vm3452_vm8, 4294967295, %v5207_v27  ;;  %vm5212_vm12 = vmmov %vm5202_vm9  ;;  %vm5217_vm13 = vnez %v5216_v9  ;;  %v756_v48 = vrot.slane %v3361_v52, 1  ;;  %v760_v32 = vrot.slane %v3389_v40, 1  ;;  %v5302_v9 = vld [vmem:[#allocation63_spill] sm:$0xff] }
 0x16c   :  { %v749_v37 = vsel %vm5212_vm12, %v743_v18, %v744_v49  ;;  %vm5213_vm0 = vmmov %vm5202_vm9  ;;  %v757_v49 = vrot.slane %v3365_v7, 1  ;;  %vm5224_vm9 = vcmp.lt.s32.totalorder %v1992_v31, 7  ;;  %v5227_v3 = vmov 0 }
 0x16d   :  { %v750_v35 = vsel %vm5213_vm0, %v742_v13, %v743_v18  ;;  %vm5214_vm2 = vmmov %vm5213_vm0  ;;  %v5220_v18 = vld [vmem:[#allocation45_spill] sm:$0xff]  ;;  %v891_v23 = vand.u32 4, %v5067_v29  ;;  %v5236_v45 = vmov 0  ;;  %v5282_v21 = vxor.u32 4, %v5281_v62 }
 0x16e   :  { %v751_v26 = vsel %vm5214_vm2, %v741_v4, %v742_v13  ;;  %vm5218_vm10 = vmmov %vm5213_vm0  ;;  %v758_v4 = vrot.slane %v3381_v61, 1  ;;  %v759_v13 = vrot.slane %v3385_v59, 1  ;;  %v768_v1 = vsel %vm5224_vm9, %v756_v48, %v757_v49 }
 0x16f   :  { %v747_v38 = vsel %vm5218_vm10, %v745_v46, %v746_v25  ;;  %vm5219_vm15 = vmmov %vm5213_vm0  ;;  %vm5221_vm0 = vnez %v5220_v18  ;;  %v761_v46 = vrot.slane %v3393_v34, 1  ;;  %v5303_v2 = vmov 0 }
 0x170   :  { %v754_v60 = vsel %vm5219_vm15, %v746_v25, %v739_v43  ;;  %v5222_v43 = vld [vmem:[#allocation50_spill] sm:$0xff]  ;;  %v762_v25 = vrot.slane %v3409_v16, 1  ;;  %vm5225_vm12 = vmmov %vm5224_vm9  ;;  %v765_v36 = vsel %vm5224_vm9, %v759_v13, %v760_v32  ;;  %v5321_v18 = vmov 0 }
 0x171   :  { %vm5223_vm10 = vnez %v5222_v43  ;;  %v769_v63 = vsel %vm5225_vm12, %v755_v17, %v756_v48  ;;  %vm5226_vm2 = vmand %vm5174_vm1, %vm2780_vm3  ;;  %vm5232_vm3 = vnez %v5184_v47 }
 0x172   :  { %vm3502_vm8 = vmor %vm3326_vm5, %vm5226_vm2  ;;  %vm5233_vm5 = vnez %v4927_v30  ;;  %vm5235_vm2 = vnez %v5160_v39  ;;  %v5248_v30 = vmov 0  ;;  %v5250_v39 = vld [vmem:[#allocation40_spill] sm:$0xff] }
 0x173   :  { %v5228_v3 = vsel %vm3502_vm8, 4294967295, %v5227_v3  ;;  %vm5229_vm15 = vmmov %vm5224_vm9 }
 0x174   :  { %v764_v56 = vsel %vm5229_vm15, %v760_v32, %v761_v46  ;;  %vm5230_vm12 = vmmov %vm5224_vm9 }
 0x175   :  { %v766_v10 = vsel %vm5230_vm12, %v758_v4, %v759_v13  ;;  %vm5231_vm7 = vmmov %vm5224_vm9  ;;  %v5240_v13 = vld [vmem:[#allocation60_spill] sm:$0xff] }
 0x176   :  { %v767_v28 = vsel %vm5231_vm7, %v757_v49, %v758_v4  ;;  %vm5234_vm1 = vmand %vm5232_vm3, %vm5233_vm5  ;;  %vm5241_vm12 = vnez %v5240_v13  ;;  %v5242_v4 = vld [vmem:[#allocation53_spill] sm:$0xff]  ;;  %vm5244_vm5 = vnez %v5192_v57  ;;  %vm5245_vm3 = vnez %v4936_v51 }
 0x177   :  { %vm3522_vm8 = vmor %vm5235_vm2, %vm5234_vm1  ;;  %v771_v49 = vsel %vm5241_vm12, %v754_v60, %v769_v63  ;;  %vm5247_vm2 = vnez %v5166_v0  ;;  %v5254_v60 = vld [vmem:[#allocation61_spill] sm:$0xff]  ;;  %v5311_v13 = vmov 0 }
 0x178   :  { %v5237_v45 = vsel %vm3522_vm8, 4294967295, %v5236_v45  ;;  %vm5238_vm15 = vmmov %vm5231_vm7  ;;  %vm5255_vm12 = vnez %v5254_v60  ;;  %v5264_v0 = vld [vmem:[#allocation9_spill] sm:$0xff]  ;;  %v5306_v60 = vld [vmem:[#allocation67_spill] sm:$0xff] }
 0x179   :  { %v763_v32 = vsel %vm5238_vm15, %v761_v46, %v762_v25  ;;  %vm5239_vm9 = vmmov %vm5231_vm7  ;;  %vm5243_vm7 = vnez %v5242_v4  ;;  %vm5251_vm15 = vnez %v5250_v39  ;;  %v5252_v46 = vld [vmem:[#allocation72_spill] sm:$0xff]  ;;  %v5309_v39 = vxor.u32 4, %v5067_v29  ;;  %v5310_v4 = vld [vmem:[#allocation66_spill] sm:$0xff] }
 0x17a   :  { %v770_v48 = vsel %vm5239_vm9, %v762_v25, %v755_v17  ;;  %v772_v47 = vsel %vm5243_vm7, %v753_v8, %v768_v1  ;;  %vm5246_vm1 = vmand %vm5244_vm5, %vm5245_vm3  ;;  %v773_v17 = vsel %vm5251_vm15, %v752_v50, %v767_v28  ;;  %vm5253_vm9 = vnez %v5252_v46  ;;  %v5256_v8 = vld [vmem:[#allocation18_spill] sm:$0xff]  ;;  %v5278_v28 = vld [vmem:[#allocation16_spill] sm:$0xff] }
 0x17b   :  { %vm3541_vm8 = vmor %vm5247_vm2, %vm5246_vm1  ;;  %v774_v63 = vsel %vm5253_vm9, %v751_v26, %v766_v10  ;;  %v775_v1 = vsel %vm5255_vm12, %v750_v35, %v765_v36  ;;  %vm5257_vm7 = vnez %v5256_v8  ;;  %vm5258_vm3 = vnez %v5200_v19  ;;  %v5266_v26 = vld [vmem:[#allocation64_spill] sm:$0xff]  ;;  %v5269_v36 = vld [vmem:[#allocation55_spill] sm:$0xff] }
 0x17c   :  { %v5249_v30 = vsel %vm3541_vm8, 4294967295, %v5248_v30  ;;  %v776_v57 = vsel %vm5257_vm7, %v749_v37, %v764_v56  ;;  %vm5259_vm5 = vnez %v4943_v58  ;;  %vm5261_vm2 = vnez %v5172_v22  ;;  %v5271_v37 = vld [vmem:[#allocation73_spill] sm:$0xff] }
 0x17d   :  { %vm5260_vm1 = vmand %vm5258_vm3, %vm5259_vm5  ;;  %v5265_v50 = vxor.u32 4, %v5264_v0  ;;  %vm5270_vm7 = vnez %v5269_v36  ;;  %vm5272_vm12 = vnez %v5271_v37  ;;  %v803_v35 = vmin.f32 %v3357_v42, %v771_v49  ;;  %v5291_v37 = vld [vmem:[#allocation7_spill] sm:$0xff] }
 0x17e   :  { %vm3560_vm8 = vmor %vm5261_vm2, %vm5260_vm1  ;;  %v777_v56 = vsel %vm5270_vm7, %v748_v41, %v763_v32  ;;  %v778_v58 = vsel %vm5272_vm12, %v747_v38, %v770_v48  ;;  %vm5274_vm1 = vnez %v5182_v20  ;;  %v804_v10 = vmin.f32 %v3361_v52, %v772_v47  ;;  %v5283_v32 = vld [vmem:[#allocation71_spill] sm:$0xff]  ;;  %v5286_v48 = vld [vmem:[#allocation6_spill] sm:$0xff] }
 0x17f   :  { %vm3567_vm9 = vcmp.eq.s32.totalorder %v5266_v26, %v5265_v50  ;;  %vm5273_vm5 = vmand %vm5211_vm6, %vm5209_vm14  ;;  %v5277_v41 = vxor.u32 4, %v1992_v31  ;;  %vm3598_vm14 = vcmp.eq.s32.totalorder %v5283_v32, %v5282_v21  ;;  %v5287_v50 = vxor.u32 4, %v5286_v48  ;;  %v5288_v26 = vld [vmem:[#allocation69_spill] sm:$0xff] }
 0x180   :  { %vm3582_vm2 = vmor %vm5274_vm1, %vm5273_vm5  ;;  %v5292_v36 = vxor.u32 4, %v5291_v37  ;;  %vm5297_vm12 = vnez %v5190_v33  ;;  %v805_v32 = vmin.f32 %v3365_v7, %v773_v17  ;;  %v5305_v33 = vxor.u32 4, %v5052_v5 }
 0x181   :  { %vm3591_vm3 = vcmp.eq.s32.totalorder %v5278_v28, %v5277_v41  ;;  %vm3605_vm6 = vcmp.eq.s32.totalorder %v5288_v26, %v5287_v50  ;;  %v5293_v41 = vld [vmem:[#allocation68_spill] sm:$0xff]  ;;  %vm5296_vm1 = vmand %vm5217_vm13, %vm5215_vm4  ;;  %v806_v50 = vmin.f32 %v3381_v61, %v774_v63  ;;  %v808_v26 = vmin.f32 %v3389_v40, %v776_v57 }
 0x182   :  { %vm3612_vm5 = vcmp.eq.s32.totalorder %v5293_v41, %v5292_v36  ;;  %vm3623_vm7 = vmor %vm5297_vm12, %vm5296_vm1  ;;  %v807_v36 = vmin.f32 %v3385_v59, %v775_v1  ;;  %v5300_v41 = vld [vmem:[#allocation11_spill] sm:$0xff]  ;;  %vm3641_vm4 = vcmp.eq.s32.totalorder %v5306_v60, %v5305_v33  ;;  %v5307_v46 = vmov 0 }
 0x183   :  { %v5301_v8 = vxor.u32 4, %v5300_v41  ;;  %v5308_v46 = vsel %vm3641_vm4, 4294967295, %v5307_v46  ;;  %vm3648_vm12 = vcmp.eq.s32.totalorder %v5310_v4, %v5309_v39  ;;  %v5313_v54 = vand.u32 4, %v5264_v0  ;;  %vm5316_vm13 = vmand %vm5221_vm0, %vm5139_vm11 }
 0x184   :  { %v5312_v13 = vsel %vm3648_vm12, 4294967295, %v5311_v13  ;;  %vm5317_vm4 = vnez %v5198_v15  ;;  %v809_v4 = vmin.f32 %v3393_v34, %v777_v56  ;;  %v810_v39 = vmin.f32 %v3409_v16, %v778_v58 }
 0x185   :  { %vm3634_vm15 = vcmp.eq.s32.totalorder %v5302_v9, %v5301_v8  ;;  %vm3654_vm1 = vcmp.eq.s32.totalorder %v5313_v54, 0  ;;  %v5314_v9 = vmov 0  ;;  %v811_v54 = vmax.f32 %v3357_v42, %v771_v49 }
 0x186   :  { %v5304_v2 = vsel %vm3634_vm15, 4294967295, %v5303_v2  ;;  %v5315_v9 = vsel %vm3654_vm1, 4294967295, %v5314_v9  ;;  %vm3665_vm15 = vmor %vm5317_vm4, %vm5316_vm13  ;;  %v812_v60 = vmax.f32 %v3361_v52, %v772_v47  ;;  %v5320_v8 = vand.u32 4, %v5286_v48 }
 0x187   :  { %vm5323_vm11 = vnez %v4994_v11  ;;  %vm5325_vm0 = vnez %v5208_v27  ;;  %v813_v42 = vmax.f32 %v3365_v7, %v773_v17  ;;  %v814_v52 = vmax.f32 %v3381_v61, %v774_v63 }
 0x188   :  { %vm3675_vm1 = vcmp.eq.s32.totalorder %v5320_v8, 0  ;;  %vm5324_vm13 = vmand %vm5223_vm10, %vm5323_vm11  ;;  %v815_v47 = vmax.f32 %v3385_v59, %v775_v1  ;;  %v816_v15 = vmax.f32 %v3389_v40, %v776_v57  ;;  %v5328_v49 = vand.u32 4, %v5300_v41 }
 0x189   :  { %v5322_v18 = vsel %vm3675_vm1, 4294967295, %v5321_v18  ;;  %vm3686_vm4 = vmor %vm5325_vm0, %vm5324_vm13  ;;  %v5329_v0 = vmov 0  ;;  %v817_v11 = vmax.f32 %v3393_v34, %v777_v56  ;;  %v818_v27 = vmax.f32 %v3409_v16, %v778_v58 }
 0x18a   :  { %vm3696_vm1 = vcmp.eq.s32.totalorder %v5328_v49, 0  ;;  %vm5331_vm11 = vnez %v5228_v3  ;;  %vm5332_vm13 = vnez %v5237_v45  ;;  %vm3706_vm0 = vcmp.eq.s32.totalorder %v891_v23, 0 }
 0x18b   :  { %v5330_v0 = vsel %vm3696_vm1, 4294967295, %v5329_v0  ;;  %v819_v48 = vsel %vm5331_vm11, %v803_v35, %v811_v54  ;;  %v820_v7 = vsel %vm5332_vm13, %v804_v10, %v812_v60  ;;  %v5333_v61 = vmov 0 }
 0x18c   :  { %v5334_v61 = vsel %vm3706_vm0, 4294967295, %v5333_v61  ;;  %vm5335_vm10 = vnez %v5249_v30  ;;  %v822_v40 = vsel %vm3560_vm8, %v806_v50, %v814_v52  ;;  %v823_v34 = vsel %vm3582_vm2, %v807_v36, %v815_v47 }
 0x18d   :  { %v821_v59 = vsel %vm5335_vm10, %v805_v32, %v813_v42  ;;  %v824_v16 = vsel %vm3623_vm7, %v808_v26, %v816_v15  ;;  %v5336_v3 = vand.u32 4, %v1992_v31  ;;  %v825_v23 = vsel %vm3665_vm15, %v809_v4, %v817_v11 }
 0x18e   :  { %v826_v30 = vsel %vm3686_vm4, %v810_v39, %v818_v27  ;;  %v835_v17 = vrot.slane %v819_v48, 4  ;;  %v836_v63 = vrot.slane %v820_v7, 4  ;;  %v5339_v1 = vand.u32 4, %v5281_v62 }
 0x18f   :  { %vm3720_vm11 = vcmp.eq.s32.totalorder %v5336_v3, 0  ;;  %v5340_v57 = vmov 0  ;;  %v5342_v51 = vand.u32 4, %v5291_v37  ;;  %v5343_v56 = vmov 0 }
 0x190   :  { %vm3730_vm8 = vcmp.eq.s32.totalorder %v5339_v1, 0  ;;  %v837_v58 = vrot.slane %v821_v59, 4  ;;  %v838_v22 = vrot.slane %v822_v40, 4  ;;  %v839_v35 = vrot.slane %v823_v34, 4 }
 0x191   :  { %v5341_v57 = vsel %vm3730_vm8, 4294967295, %v5340_v57  ;;  %vm3736_vm10 = vcmp.eq.s32.totalorder %v5342_v51, 0  ;;  %v840_v10 = vrot.slane %v824_v16, 4  ;;  %v5345_v21 = vand.u32 4, %v5052_v5 }
 0x192   :  { %v5344_v56 = vsel %vm3736_vm10, 4294967295, %v5343_v56  ;;  %v5346_v32 = vmov 0  ;;  %v841_v62 = vrot.slane %v825_v23, 4  ;;  %v842_v50 = vrot.slane %v826_v30, 4 }
 0x193   :  { %vm3742_vm7 = vcmp.eq.s32.totalorder %v5345_v21, 0  ;;  %vm5348_vm15 = vcmp.lt.s32.totalorder %v1992_v31, 4  ;;  %v5349_v37 = vlaneseq }
 0x194   :  { %v5347_v32 = vsel %vm3742_vm7, 4294967295, %v5346_v32  ;;  %v850_v36 = vsel %vm5348_vm15, %v835_v17, %v836_v63  ;;  %vm5351_vm2 = vmmov %vm5348_vm15 }
 0x195   :  { %v3749_v26 = vand.u32 127, %v5349_v37  ;;  %v846_v41 = vsel %vm5351_vm2, %v839_v35, %v840_v10  ;;  %vm5352_vm4 = vmmov %vm5351_vm2 }
 0x196   :  { %v847_v33 = vsel %vm5352_vm4, %v838_v22, %v839_v35  ;;  %vm5353_vm13 = vmmov %vm5351_vm2 }
 0x197   :  { %5350 = vst [vmem:[#allocation29_spill] sm:$0xff] %v3749_v26  ;;  %v848_v5 = vsel %vm5353_vm13, %v837_v58, %v838_v22  ;;  %vm5354_vm10 = vmmov %vm5351_vm2  ;;  %v880_v52 = vsel %vm3612_vm5, %v847_v33, %v846_v41  ;;  %vm5364_vm13 = vnez %v5322_v18 }
 0x198   :  { %v849_v29 = vsel %vm5354_vm10, %v836_v63, %v837_v58  ;;  %vm5355_vm7 = vmmov %vm5351_vm2  ;;  %v879_v42 = vsel %vm3605_vm6, %v848_v5, %v847_v33  ;;  %vm5358_vm10 = vnez %v5304_v2  ;;  %v960_v51 = vmin.f32 %v823_v34, %v880_v52 }
 0x199   :  { %v844_v4 = vsel %vm5355_vm7, %v841_v62, %v842_v50  ;;  %vm5356_vm15 = vmmov %vm5351_vm2  ;;  %v877_v60 = vsel %vm3567_vm9, %v850_v36, %v849_v29  ;;  %v878_v53 = vsel %vm3598_vm14, %v849_v29, %v848_v5  ;;  %vm5360_vm7 = vmmov 1  }
 0x19a   :  { %v845_v39 = vsel %vm5356_vm15, %v840_v10, %v841_v62  ;;  %vm5357_vm8 = vmmov %vm5351_vm2  ;;  %vm5361_vm2 = vnez %v5315_v9  ;;  %v958_v63 = vmin.f32 %v821_v59, %v878_v53  ;;  %v959_v1 = vmin.f32 %v822_v40, %v879_v42 }
 0x19b   :  { %v851_v54 = vsel %vm5357_vm8, %v842_v50, %v835_v17  ;;  %v881_v47 = vsel %vm5358_vm10, %v846_v41, %v845_v39  ;;  %vm5359_vm8 = vnez %v5308_v46  ;;  %vm3784_vm4 = vmxor %vm5361_vm2, %vm5360_vm7  ;;  %v957_v17 = vmin.f32 %v820_v7, %v877_v60 }
 0x19c   :  { %v876_v8 = vsel %vm3591_vm3, %v851_v54, %v850_v36  ;;  %v882_v15 = vsel %vm5359_vm8, %v845_v39, %v844_v4  ;;  %v883_v49 = vsel %vm3648_vm12, %v844_v4, %v851_v54  ;;  %vm3791_vm15 = vmxor %vm5364_vm13, %vm5360_vm7  ;;  %v961_v22 = vmin.f32 %v824_v16, %v881_v47 }
 0x19d   :  { %v956_v27 = vmin.f32 %v819_v48, %v876_v8  ;;  %vm3798_vm12 = vmxor %vm3696_vm1, %vm5360_vm7  ;;  %v962_v35 = vmin.f32 %v825_v23, %v882_v15  ;;  %v963_v10 = vmin.f32 %v826_v30, %v883_v49  ;;  %v964_v21 = vmax.f32 %v819_v48, %v876_v8 }
 0x19e   :  { %vm931_vm13 = vmxor %vm3706_vm0, %vm5360_vm7  ;;  %v965_v62 = vmax.f32 %v820_v7, %v877_v60  ;;  %v966_v50 = vmax.f32 %v821_v59, %v878_v53  ;;  %v967_v36 = vmax.f32 %v822_v40, %v879_v42  ;;  %v968_v37 = vmax.f32 %v823_v34, %v880_v52 }
 0x19f   :  { %v969_v41 = vmax.f32 %v824_v16, %v881_v47  ;;  %v970_v33 = vmax.f32 %v825_v23, %v882_v15  ;;  %v971_v5 = vmax.f32 %v826_v30, %v883_v49  ;;  %v3807_v29 = vsel %vm3720_vm11, %v956_v27, %v964_v21 }
 0x1a0   :  { %v3811_v4 = vsel %vm3784_vm4, %v957_v17, %v965_v62  ;;  %vm5369_vm1 = vnez %v5341_v57  ;;  %v3819_v7 = vsel %vm3791_vm15, %v959_v1, %v967_v36  ;;  %vm5370_vm7 = vnez %v5344_v56 }
 0x1a1   :  { %v3815_v48 = vsel %vm5369_vm1, %v958_v63, %v966_v50  ;;  %v3823_v59 = vsel %vm5370_vm7, %v960_v51, %v968_v37  ;;  %v3827_v40 = vsel %vm3798_vm12, %v961_v22, %v969_v41  ;;  %vm5371_vm0 = vnez %v5347_v32 }
 0x1a2   :  { %v3831_v34 = vsel %vm5371_vm0, %v962_v35, %v970_v33  ;;  %v3833_v16 = vsel %vm931_vm13, %v963_v10, %v971_v5  ;;  %v980_v23 = vrot.slane %v3807_v29, 6  ;;  %v981_v30 = vrot.slane %v3811_v4, 6 }
 0x1a3   :  { %v982_v39 = vrot.slane %v3815_v48, 6  ;;  %v983_v54 = vrot.slane %v3819_v7, 6  ;;  %v984_v60 = vrot.slane %v3823_v59, 6  ;;  %v985_v8 = vrot.slane %v3827_v40, 6 }
 0x1a4   :  { %v986_v53 = vrot.slane %v3831_v34, 6  ;;  %v987_v42 = vrot.slane %v3833_v16, 6  ;;  %v996_v52 = vrot.slane %v3807_v29, 2  ;;  %vm5372_vm12 = vcmp.lt.s32.totalorder %v1992_v31, 2 }
 0x1a5   :  { %v991_v47 = vsel %vm5372_vm12, %v983_v54, %v984_v60  ;;  %vm5373_vm4 = vmmov %vm5372_vm12  ;;  %v997_v1 = vrot.slane %v3811_v4, 2  ;;  %v998_v51 = vrot.slane %v3815_v48, 2  ;;  %v999_v58 = vrot.slane %v3819_v7, 2 }
 0x1a6   :  { %v992_v15 = vsel %vm5373_vm4, %v982_v39, %v983_v54  ;;  %vm5374_vm13 = vmmov %vm5373_vm4  ;;  %v1000_v22 = vrot.slane %v3823_v59, 2  ;;  %v1001_v35 = vrot.slane %v3827_v40, 2  ;;  %v1002_v10 = vrot.slane %v3831_v34, 2 }
 0x1a7   :  { %v993_v49 = vsel %vm5374_vm13, %v981_v30, %v982_v39  ;;  %vm5375_vm15 = vmmov %vm5373_vm4  ;;  %v1003_v21 = vrot.slane %v3833_v16, 2  ;;  %v1537_v62 = vmul.u32 16, %v1992_v31 }
 0x1a8   :  { %v994_v11 = vsel %vm5375_vm15, %v980_v23, %v981_v30  ;;  %vm5376_vm0 = vmmov %vm5373_vm4 }
 0x1a9   :  { %v988_v27 = vsel %vm5376_vm0, %v986_v53, %v987_v42  ;;  %vm5377_vm7 = vmmov %vm5376_vm0 }
 0x1aa   :  { %v989_v3 = vsel %vm5377_vm7, %v985_v8, %v986_v53  ;;  %vm5378_vm1 = vmmov %vm5376_vm0 }
 0x1ab   :  { %v990_v17 = vsel %vm5378_vm1, %v984_v60, %v985_v8  ;;  %vm5379_vm12 = vmmov %vm5376_vm0  ;;  %vm5380_vm1 = vcmp.lt.s32.totalorder %v1992_v31, 6 }
 0x1ac   :  { %v995_v63 = vsel %vm5379_vm12, %v987_v42, %v980_v23  ;;  %v1007_v50 = vsel %vm5380_vm1, %v999_v58, %v1000_v22  ;;  %vm5381_vm0 = vmmov %vm5380_vm1 }
 0x1ad   :  { %v1008_v36 = vsel %vm5381_vm0, %v998_v51, %v999_v58  ;;  %vm5382_vm7 = vmmov %vm5381_vm0 }
 0x1ae   :  { %v1009_v37 = vsel %vm5382_vm7, %v997_v1, %v998_v51  ;;  %vm5383_vm4 = vmmov %vm5381_vm0  ;;  %vm5389_vm7 = vnez %v5024_v6  ;;  %v5396_v51 = vld [vmem:[#allocation30_spill] sm:$0xff] }
 0x1af   :  { %v1010_v41 = vsel %vm5383_vm4, %v996_v52, %v997_v1  ;;  %vm5384_vm13 = vmmov %vm5381_vm0  ;;  %v1013_v54 = vsel %vm5389_vm7, %v994_v11, %v1009_v37  ;;  %vm5390_vm4 = vnez %v5029_v24  ;;  %v5394_v1 = vld [vmem:[#allocation34_spill] sm:$0xff] }
 0x1b0   :  { %v1004_v33 = vsel %vm5384_vm13, %v1002_v10, %v1003_v21  ;;  %vm5385_vm15 = vmmov %vm5381_vm0  ;;  %v1014_v60 = vsel %vm5390_vm4, %v993_v49, %v1008_v36  ;;  %vm5391_vm13 = vnez %v5042_v44  ;;  %v1045_v58 = vmin.f32 %v3811_v4, %v1013_v54 }
 0x1b1   :  { %v1005_v5 = vsel %vm5385_vm15, %v1001_v35, %v1002_v10  ;;  %vm5386_vm12 = vmmov %vm5381_vm0  ;;  %v1015_v8 = vsel %vm5391_vm13, %v992_v15, %v1007_v50  ;;  %vm5392_vm15 = vnez %v5046_v12  ;;  %v1046_v49 = vmin.f32 %v3815_v48, %v1014_v60  ;;  %v5440_v12 = vld [vmem:[#allocation18_spill] sm:$0xff] }
 0x1b2   :  { %v1006_v23 = vsel %vm5386_vm12, %v1000_v22, %v1001_v35  ;;  %vm5387_vm1 = vmmov %vm5381_vm0  ;;  %vm5388_vm0 = vnez %v5018_v14  ;;  %vm5393_vm12 = vnez %v5051_v55  ;;  %v1047_v15 = vmin.f32 %v3819_v7, %v1015_v8 }
 0x1b3   :  { %v1011_v30 = vsel %vm5387_vm1, %v1003_v21, %v996_v52  ;;  %v1012_v39 = vsel %vm5388_vm0, %v995_v63, %v1010_v41  ;;  %v1016_v53 = vsel %vm5392_vm15, %v991_v47, %v1006_v23  ;;  %v1017_v42 = vsel %vm5393_vm12, %v990_v17, %v1005_v5  ;;  %v5400_v23 = vld [vmem:[#allocation14_spill] sm:$0xff] }
 0x1b4   :  { %vm5395_vm1 = vnez %v5394_v1  ;;  %vm5397_vm0 = vnez %v5396_v51  ;;  %v1044_v11 = vmin.f32 %v3807_v29, %v1012_v39  ;;  %v1048_v22 = vmin.f32 %v3823_v59, %v1016_v53 }
 0x1b5   :  { %v1018_v52 = vsel %vm5395_vm1, %v989_v3, %v1004_v33  ;;  %v1019_v63 = vsel %vm5397_vm0, %v988_v27, %v1011_v30  ;;  %v1049_v47 = vmin.f32 %v3827_v40, %v1017_v42  ;;  %v1052_v3 = vmax.f32 %v3807_v29, %v1012_v39  ;;  %v5398_v33 = vld [vmem:[#allocation54_spill] sm:$0xff]  ;;  %v5410_v39 = vld [vmem:[#allocation65_spill] sm:$0xff] }
 0x1b6   :  { %v1050_v17 = vmin.f32 %v3831_v34, %v1018_v52  ;;  %v1051_v35 = vmin.f32 %v3833_v16, %v1019_v63  ;;  %v1053_v27 = vmax.f32 %v3811_v4, %v1013_v54  ;;  %v1054_v10 = vmax.f32 %v3815_v48, %v1014_v60  ;;  %v5402_v4 = vld [vmem:[#allocation57_spill] sm:$0xff]  ;;  %v5412_v60 = vld [vmem:[#allocation75_spill] sm:$0xff] }
 0x1b7   :  { %v1055_v21 = vmax.f32 %v3819_v7, %v1015_v8  ;;  %v1056_v50 = vmax.f32 %v3823_v59, %v1016_v53  ;;  %v1057_v36 = vmax.f32 %v3827_v40, %v1017_v42  ;;  %v1058_v37 = vmax.f32 %v3831_v34, %v1018_v52  ;;  %v5404_v7 = vld [vmem:[#allocation17_spill] sm:$0xff]  ;;  %v5406_v40 = vld [vmem:[#allocation59_spill] sm:$0xff] }
 0x1b8   :  { %v1059_v41 = vmax.f32 %v3833_v16, %v1019_v63  ;;  %vm5399_vm15 = vnez %v5398_v33  ;;  %vm5401_vm0 = vnez %v5400_v23  ;;  %vm5403_vm1 = vnez %v5402_v4  ;;  %v5408_v16 = vld [vmem:[#allocation74_spill] sm:$0xff]  ;;  %v5434_v33 = vld [vmem:[#allocation40_spill] sm:$0xff]  ;;  %v5438_v4 = vld [vmem:[#allocation61_spill] sm:$0xff] }
 0x1b9   :  { %v3918_v5 = vsel %vm5399_vm15, %v1044_v11, %v1052_v3  ;;  %v3922_v29 = vsel %vm5401_vm0, %v1045_v58, %v1053_v27  ;;  %v3926_v48 = vsel %vm5403_vm1, %v1046_v49, %v1054_v10  ;;  %vm5405_vm12 = vnez %v5404_v7 }
 0x1ba   :  { %v3930_v59 = vsel %vm5405_vm12, %v1047_v15, %v1055_v21  ;;  %vm5407_vm13 = vnez %v5406_v40  ;;  %vm5409_vm4 = vnez %v5408_v16  ;;  %vm5411_vm15 = vnez %v5410_v39  ;;  %v5436_v39 = vld [vmem:[#allocation72_spill] sm:$0xff] }
 0x1bb   :  { %v3934_v34 = vsel %vm5407_vm13, %v1048_v22, %v1056_v50  ;;  %v3938_v30 = vsel %vm5409_vm4, %v1049_v47, %v1057_v36  ;;  %v3942_v54 = vsel %vm5411_vm15, %v1050_v17, %v1058_v37  ;;  %vm5413_vm0 = vnez %v5412_v60 }
 0x1bc   :  { %v3946_v8 = vsel %vm5413_vm0, %v1051_v35, %v1059_v41  ;;  %v1068_v53 = vrot.slane %v3918_v5, 7  ;;  %v1069_v42 = vrot.slane %v3922_v29, 7  ;;  %v1070_v52 = vrot.slane %v3926_v48, 7 }
 0x1bd   :  { %v1071_v63 = vrot.slane %v3930_v59, 7  ;;  %v1072_v11 = vrot.slane %v3934_v34, 7  ;;  %v1073_v58 = vrot.slane %v3938_v30, 7  ;;  %v1074_v49 = vrot.slane %v3942_v54, 7 }
 0x1be   :  { %v1075_v15 = vrot.slane %v3946_v8, 7  ;;  %vm5414_vm4 = vcmp.lt.s32.totalorder %v1992_v31, 1  ;;  %v1084_v35 = vrot.slane %v3918_v5, 1  ;;  %v1085_v36 = vrot.slane %v3922_v29, 1 }
 0x1bf   :  { %v1080_v22 = vsel %vm5414_vm4, %v1070_v52, %v1071_v63  ;;  %vm5415_vm12 = vmmov %vm5414_vm4  ;;  %v1086_v37 = vrot.slane %v3926_v48, 1  ;;  %v1087_v41 = vrot.slane %v3930_v59, 1  ;;  %v1088_v23 = vrot.slane %v3934_v34, 1 }
 0x1c0   :  { %v1081_v47 = vsel %vm5415_vm12, %v1069_v42, %v1070_v52  ;;  %vm5416_vm0 = vmmov %vm5414_vm4  ;;  %v1089_v7 = vrot.slane %v3938_v30, 1  ;;  %v1090_v16 = vrot.slane %v3942_v54, 1  ;;  %v1091_v60 = vrot.slane %v3946_v8, 1 }
 0x1c1   :  { %v1082_v17 = vsel %vm5416_vm0, %v1068_v53, %v1069_v42  ;;  %vm5417_vm13 = vmmov %vm5416_vm0 }
 0x1c2   :  { %v1076_v3 = vsel %vm5417_vm13, %v1074_v49, %v1075_v15  ;;  %vm5418_vm15 = vmmov %vm5416_vm0  ;;  %vm5422_vm13 = vcmp.lt.s32.totalorder %v1992_v31, 7 }
 0x1c3   :  { %v1077_v27 = vsel %vm5418_vm15, %v1073_v58, %v1074_v49  ;;  %vm5419_vm1 = vmmov %vm5416_vm0  ;;  %v1096_v42 = vsel %vm5422_vm13, %v1086_v37, %v1087_v41 }
 0x1c4   :  { %v1078_v10 = vsel %vm5419_vm1, %v1072_v11, %v1073_v58  ;;  %vm5420_vm7 = vmmov %vm5416_vm0 }
 0x1c5   :  { %v1079_v21 = vsel %vm5420_vm7, %v1071_v63, %v1072_v11  ;;  %vm5421_vm4 = vmmov %vm5416_vm0  ;;  %v3989_v63 = vsub.s32 %v3749_v26, %v1537_v62  ;;  %v5432_v62 = vld [vmem:[#allocation53_spill] sm:$0xff] }
 0x1c6   :  { %v1083_v50 = vsel %vm5421_vm4, %v1075_v15, %v1068_v53  ;;  %vm5423_vm7 = vmmov %vm5422_vm13 }
 0x1c7   :  { %v1097_v53 = vsel %vm5423_vm7, %v1085_v36, %v1086_v37  ;;  %vm5424_vm15 = vmmov %vm5423_vm7  ;;  %v5430_v37 = vld [vmem:[#allocation60_spill] sm:$0xff] }
 0x1c8   :  { %v1098_v52 = vsel %vm5424_vm15, %v1084_v35, %v1085_v36  ;;  %vm5425_vm1 = vmmov %vm5423_vm7  ;;  %vm5431_vm7 = vnez %v5430_v37  ;;  %vm5433_vm15 = vnez %v5432_v62 }
 0x1c9   :  { %v1092_v11 = vsel %vm5425_vm1, %v1090_v16, %v1091_v60  ;;  %vm5426_vm12 = vmmov %vm5425_vm1  ;;  %v1100_v40 = vsel %vm5431_vm7, %v1083_v50, %v1098_v52  ;;  %v1101_v26 = vsel %vm5433_vm15, %v1082_v17, %v1097_v53 }
 0x1ca   :  { %v1093_v58 = vsel %vm5426_vm12, %v1089_v7, %v1090_v16  ;;  %vm5427_vm0 = vmmov %vm5425_vm1  ;;  %vm5435_vm1 = vnez %v5434_v33  ;;  %vm5437_vm12 = vnez %v5436_v39  ;;  %v1132_v17 = vmin.f32 %v3918_v5, %v1100_v40  ;;  %v5446_v39 = vld [vmem:[#allocation19_spill] sm:$0xff] }
 0x1cb   :  { %v1094_v49 = vsel %vm5427_vm0, %v1088_v23, %v1089_v7  ;;  %vm5428_vm4 = vmmov %vm5427_vm0  ;;  %v1102_v14 = vsel %vm5435_vm1, %v1081_v47, %v1096_v42  ;;  %v1133_v53 = vmin.f32 %v3922_v29, %v1101_v26 }
 0x1cc   :  { %v1095_v15 = vsel %vm5428_vm4, %v1087_v41, %v1088_v23  ;;  %vm5429_vm13 = vmmov %vm5427_vm0  ;;  %vm5439_vm0 = vnez %v5438_v4  ;;  %vm5441_vm4 = vnez %v5440_v12  ;;  %v5442_v23 = vld [vmem:[#allocation55_spill] sm:$0xff]  ;;  %v1134_v47 = vmin.f32 %v3926_v48, %v1102_v14  ;;  %v5448_v4 = vld [vmem:[#allocation28_spill] sm:$0xff] }
 0x1cd   :  { %v1099_v36 = vsel %vm5429_vm13, %v1091_v60, %v1084_v35  ;;  %v1103_v16 = vsel %vm5437_vm12, %v1080_v22, %v1095_v15  ;;  %v1104_v7 = vsel %vm5439_vm0, %v1079_v21, %v1094_v49  ;;  %v1105_v41 = vsel %vm5441_vm4, %v1078_v10, %v1093_v58  ;;  %v5444_v60 = vld [vmem:[#allocation73_spill] sm:$0xff] }
 0x1ce   :  { %vm5443_vm13 = vnez %v5442_v23  ;;  %vm5445_vm7 = vnez %v5444_v60  ;;  %v1135_v22 = vmin.f32 %v3930_v59, %v1103_v16  ;;  %v1136_v42 = vmin.f32 %v3934_v34, %v1104_v7 }
 0x1cf   :  { %v1106_v35 = vsel %vm5443_vm13, %v1077_v27, %v1092_v11  ;;  %v1107_v50 = vsel %vm5445_vm7, %v1076_v3, %v1099_v36  ;;  %v1137_v21 = vmin.f32 %v3938_v30, %v1105_v41  ;;  %v1140_v27 = vmax.f32 %v3918_v5, %v1100_v40  ;;  %v5450_v40 = vld [vmem:[#allocation21_spill] sm:$0xff] }
 0x1d0   :  { %v1138_v10 = vmin.f32 %v3942_v54, %v1106_v35  ;;  %v1139_v52 = vmin.f32 %v3946_v8, %v1107_v50  ;;  %v1141_v3 = vmax.f32 %v3922_v29, %v1101_v26  ;;  %v1142_v11 = vmax.f32 %v3926_v48, %v1102_v14  ;;  %v5452_v14 = vld [vmem:[#allocation35_spill] sm:$0xff] }
 0x1d1   :  { %v1143_v58 = vmax.f32 %v3930_v59, %v1103_v16  ;;  %v1144_v49 = vmax.f32 %v3934_v34, %v1104_v7  ;;  %v1145_v15 = vmax.f32 %v3938_v30, %v1105_v41  ;;  %v1146_v36 = vmax.f32 %v3942_v54, %v1106_v35  ;;  %v5454_v48 = vld [vmem:[#allocation23_spill] sm:$0xff]  ;;  %v5456_v34 = vld [vmem:[#allocation41_spill] sm:$0xff] }
 0x1d2   :  { %v1147_v60 = vmax.f32 %v3946_v8, %v1107_v50  ;;  %vm5447_vm7 = vnez %v5446_v39  ;;  %vm5449_vm12 = vnez %v5448_v4  ;;  %vm5451_vm4 = vnez %v5450_v40  ;;  %v5458_v54 = vld [vmem:[#allocation25_spill] sm:$0xff] }
 0x1d3   :  { %v1148_v12 = vsel %vm5447_vm7, %v1132_v17, %v1140_v27  ;;  %v1149_v5 = vsel %vm5449_vm12, %v1133_v53, %v1141_v3  ;;  %v1150_v26 = vsel %vm5451_vm4, %v1134_v47, %v1142_v11  ;;  %vm5453_vm0 = vnez %v5452_v14  ;;  %v33_v47 = vld [vmem:[%s4350_s3] sm:$0xff] }
 0x1d4   :  { %v1151_v29 = vsel %vm5453_vm0, %v1135_v22, %v1143_v58  ;;  %vm5455_vm15 = vnez %v5454_v48  ;;  %vm5457_vm13 = vnez %v5456_v34  ;;  %vm5459_vm1 = vnez %v5458_v54  ;;  %v34_v22 = vld [vmem:[%s4350_s3 + $0x8] sm:$0xff] }
 0x1d5   :  { %v1152_v59 = vsel %vm5455_vm15, %v1136_v42, %v1144_v49  ;;  %v1153_v30 = vsel %vm5457_vm13, %v1137_v21, %v1145_v15  ;;  %v1154_v8 = vsel %vm5459_vm1, %v1138_v10, %v1146_v36  ;;  %vm5460_vm7 = vnez %v5222_v43 }
 0x1d6   :  { %v1155_v16 = vsel %vm5460_vm7, %v1139_v52, %v1147_v60  ;;  %v1252_v4 = vmin.f32 %v1148_v12, %v1149_v5  ;;  %v1254_v7 = vmin.f32 %v1150_v26, %v1151_v29  ;;  %v1256_v41 = vmin.f32 %v1152_v59, %v1153_v30 }
 0x1d7   :  { %v1258_v35 = vmin.f32 %v1154_v8, %v1155_v16  ;;  %v1261_v50 = vmax.f32 %v1149_v5, %v1148_v12  ;;  %v1263_v17 = vmax.f32 %v1151_v29, %v1150_v26  ;;  %v1265_v53 = vmax.f32 %v1153_v30, %v1152_v59 }
 0x1d8   :  { %v1267_v42 = vmax.f32 %v1155_v16, %v1154_v8  ;;  %v1276_v21 = vrot.slane %v1252_v4, 4  ;;  %v1278_v10 = vrot.slane %v1254_v7, 4  ;;  %v1280_v43 = vrot.slane %v1256_v41, 4 }
 0x1d9   :  { %v1277_v60 = vrot.slane %v1261_v50, 4  ;;  %v1279_v52 = vrot.slane %v1263_v17, 4  ;;  %v1281_v27 = vrot.slane %v1265_v53, 4  ;;  %v1282_v3 = vrot.slane %v1258_v35, 4 }
 0x1da   :  { %v1283_v11 = vrot.slane %v1267_v42, 4  ;;  %v1540_v12 = vcvt.s32.f32 %v3989_v63  ;;  %v1808_v58 = vpack.c.bf16 %v34_v22, %v33_v47  ;;  %vm5461_vm7 = vcmp.lt.s32.totalorder %v1992_v31, 4 }
 0x1db   :  { %v1285_v49 = vsel %vm5461_vm7, %v1281_v27, %v1282_v3  ;;  %vm5462_vm12 = vmmov %vm5461_vm7  ;;  %v5469_v47 = vmov 0.0|0.0  }
 0x1dc   :  { %v1286_v15 = vsel %vm5462_vm12, %v1280_v43, %v1281_v27  ;;  %vm5463_vm0 = vmmov %vm5461_vm7  ;;  %1809 = vmatpush3.bf16.msra.mxu1 %v1808_v58 }
 0x1dd   :  { %v1287_v36 = vsel %vm5463_vm0, %v1279_v52, %v1280_v43  ;;  %vm5464_vm13 = vmmov %vm5463_vm0  ;;  %1810 = vmatprep.subr.bf16.mxu1 %v5469_v47 }
 0x1de   :  { %v1288_v5 = vsel %vm5464_vm13, %v1278_v10, %v1279_v52  ;;  %vm5465_vm1 = vmmov %vm5463_vm0  ;;  %v1296_v22 = vsel %vm3612_vm5, %v1287_v36, %v1286_v15  ;;  %vm5474_vm5 = vnez %v5330_v0 }
 0x1df   :  { %v1284_v26 = vsel %vm5465_vm1, %v1282_v3, %v1283_v11  ;;  %vm5466_vm4 = vmmov %vm5463_vm0  ;;  %v1295_v16 = vsel %vm3605_vm6, %v1288_v5, %v1287_v36  ;;  %v1328_v19 = vmin.f32 %v1256_v41, %v1296_v22  ;;  %v1336_v2 = vmax.f32 %v1256_v41, %v1296_v22 }
 0x1e0   :  { %v1289_v14 = vsel %vm5466_vm4, %v1277_v60, %v1278_v10  ;;  %vm5467_vm15 = vmmov %vm5463_vm0  ;;  %v1298_v38 = vsel %vm5359_vm8, %v1285_v49, %v1284_v26  ;;  %v1335_v36 = vmax.f32 %v1263_v17, %v1295_v16  ;;  %vm5473_vm6 = vnez %v5344_v56 }
 0x1e1   :  { %v1290_v29 = vsel %vm5467_vm15, %v1276_v21, %v1277_v60  ;;  %vm5468_vm7 = vmmov %vm5463_vm0  ;;  %v1294_v8 = vsel %vm3598_vm14, %v1289_v14, %v1288_v5  ;;  %v1327_v60 = vmin.f32 %v1263_v17, %v1295_v16  ;;  %v1330_v27 = vmin.f32 %v1258_v35, %v1298_v38 }
 0x1e2   :  { %v1291_v59 = vsel %vm5468_vm7, %v1283_v11, %v1276_v21  ;;  %v1293_v30 = vsel %vm3567_vm9, %v1290_v29, %v1289_v14  ;;  %v1297_v21 = vsel %vm5358_vm10, %v1286_v15, %v1285_v49  ;;  %v1326_v43 = vmin.f32 %v1254_v7, %v1294_v8 }
 0x1e3   :  { %v1292_v34 = vsel %vm3591_vm3, %v1291_v59, %v1290_v29  ;;  %vm5470_vm3 = vnez %v5312_v13  ;;  %v1325_v20 = vmin.f32 %v1261_v50, %v1293_v30  ;;  %v1329_v52 = vmin.f32 %v1265_v53, %v1297_v21 }
 0x1e4   :  { %v1299_v25 = vsel %vm5470_vm3, %v1284_v26, %v1291_v59  ;;  %v1324_v10 = vmin.f32 %v1252_v4, %v1292_v34  ;;  %v1332_v11 = vmax.f32 %v1252_v4, %v1292_v34  ;;  %v1333_v28 = vmax.f32 %v1261_v50, %v1293_v30 }
 0x1e5   :  { %v1331_v3 = vmin.f32 %v1267_v42, %v1299_v25  ;;  %v1334_v58 = vmax.f32 %v1254_v7, %v1294_v8  ;;  %v1337_v15 = vmax.f32 %v1265_v53, %v1297_v21  ;;  %v1338_v5 = vmax.f32 %v1258_v35, %v1298_v38 }
 0x1e6   :  { %v1339_v46 = vmax.f32 %v1267_v42, %v1299_v25  ;;  %v4091_v13 = vsel %vm3720_vm11, %v1324_v10, %v1332_v11  ;;  %v1341_v49 = vsel %vm5361_vm2, %v1325_v20, %v1333_v28  ;;  %vm5471_vm9 = vnez %v5341_v57 }
 0x1e7   :  { %v1342_v26 = vsel %vm5471_vm9, %v1326_v43, %v1334_v58  ;;  %vm5472_vm14 = vnez %v5322_v18  ;;  %v4101_v7 = vsel %vm5473_vm6, %v1328_v19, %v1336_v2  ;;  %v1345_v41 = vsel %vm5474_vm5, %v1329_v52, %v1337_v15 }
 0x1e8   :  { %v1343_v4 = vsel %vm5472_vm14, %v1327_v60, %v1335_v36  ;;  %vm5475_vm10 = vnez %v5347_v32  ;;  %vm5476_vm11 = vnez %v5334_v61  ;;  %v1348_v35 = vrot.slane %v4091_v13, 6 }
 0x1e9   :  { %v1346_v45 = vsel %vm5475_vm10, %v1330_v27, %v1338_v5  ;;  %v1347_v9 = vsel %vm5476_vm11, %v1331_v3, %v1339_v46  ;;  %v1349_v57 = vrot.slane %v1341_v49, 6  ;;  %v1350_v50 = vrot.slane %v1342_v26, 6 }
 0x1ea   :  { %v1351_v17 = vrot.slane %v1343_v4, 6  ;;  %v1352_v18 = vrot.slane %v4101_v7, 6  ;;  %v1353_v53 = vrot.slane %v1345_v41, 6  ;;  %v1354_v56 = vrot.slane %v1346_v45, 6 }
 0x1eb   :  { %v1355_v42 = vrot.slane %v1347_v9, 6  ;;  %vm5477_vm8 = vcmp.lt.s32.totalorder %v1992_v31, 2  ;;  %v1364_v14 = vrot.slane %v4091_v13, 2  ;;  %v1365_v30 = vrot.slane %v1341_v49, 2 }
 0x1ec   :  { %v1360_v0 = vsel %vm5477_vm8, %v1350_v50, %v1351_v17  ;;  %vm5478_vm2 = vmmov %vm5477_vm8  ;;  %v1366_v8 = vrot.slane %v1342_v26, 2  ;;  %v1367_v16 = vrot.slane %v1343_v4, 2  ;;  %v1368_v22 = vrot.slane %v4101_v7, 2 }
 0x1ed   :  { %v1361_v32 = vsel %vm5478_vm2, %v1349_v57, %v1350_v50  ;;  %vm5479_vm15 = vmmov %vm5478_vm2  ;;  %v1369_v21 = vrot.slane %v1345_v41, 2  ;;  %v1370_v38 = vrot.slane %v1346_v45, 2  ;;  %v1371_v25 = vrot.slane %v1347_v9, 2 }
 0x1ee   :  { %v1362_v61 = vsel %vm5479_vm15, %v1348_v35, %v1349_v57  ;;  %vm5480_vm1 = vmmov %vm5478_vm2  ;;  %vm5485_vm7 = vcmp.lt.s32.totalorder %v1992_v31, 6  ;;  %vm5492_vm11 = vnez %v5024_v6  ;;  %vm5493_vm8 = vnez %v5029_v24 }
 0x1ef   :  { %v1356_v29 = vsel %vm5480_vm1, %v1354_v56, %v1355_v42  ;;  %vm5481_vm4 = vmmov %vm5480_vm1  ;;  %v1375_v43 = vsel %vm5485_vm7, %v1367_v16, %v1368_v22  ;;  %vm5494_vm2 = vnez %v5042_v44  ;;  %vm5495_vm15 = vnez %v5051_v55  ;;  %v5498_v55 = vld [vmem:[#allocation56_spill] sm:$0xff] }
 0x1f0   :  { %v1357_v59 = vsel %vm5481_vm4, %v1353_v53, %v1354_v56  ;;  %vm5482_vm12 = vmmov %vm5480_vm1  ;;  %v1383_v36 = vsel %vm5494_vm2, %v1360_v0, %v1375_v43  ;;  %vm5497_vm4 = vnez %v5396_v51  ;;  %v5501_v51 = vld [vmem:[#allocation38_spill] sm:$0xff]  ;;  %v5514_v43 = vld [vmem:[#allocation13_spill] sm:$0xff] }
 0x1f1   :  { %v1358_v34 = vsel %vm5482_vm12, %v1352_v18, %v1353_v53  ;;  %vm5483_vm0 = vmmov %vm5480_vm1  ;;  %vm5496_vm1 = vnez %v5394_v1  ;;  %v1415_v57 = vmin.f32 %v1343_v4, %v1383_v36  ;;  %v1423_v53 = vmax.f32 %v1343_v4, %v1383_v36  ;;  %v5507_v4 = vld [vmem:[#allocation62_spill] sm:$0xff] }
 0x1f2   :  { %v1359_v10 = vsel %vm5483_vm0, %v1351_v17, %v1352_v18  ;;  %vm5484_vm13 = vmmov %vm5483_vm0  ;;  %vm5499_vm12 = vnez %v5498_v55 }
 0x1f3   :  { %v1363_v20 = vsel %vm5484_vm13, %v1355_v42, %v1348_v35  ;;  %vm5486_vm3 = vmmov %vm5485_vm7  ;;  %vm5502_vm13 = vnez %v5501_v51 }
 0x1f4   :  { %v1376_v60 = vsel %vm5486_vm3, %v1366_v8, %v1367_v16  ;;  %vm5487_vm9 = vmmov %vm5486_vm3 }
 0x1f5   :  { %v1377_v19 = vsel %vm5487_vm9, %v1365_v30, %v1366_v8  ;;  %vm5488_vm14 = vmmov %vm5486_vm3  ;;  %v1382_v58 = vsel %vm5493_vm8, %v1361_v32, %v1376_v60  ;;  %vm5508_vm9 = vnez %v5507_v4  ;;  %vm5517_vm8 = vcmp.lt.s32.totalorder %v1992_v31, 7  ;;  %v5538_v4 = vld [vmem:[#allocation18_spill] sm:$0xff] }
 0x1f6   :  { %v1374_v52 = vsel %vm5488_vm14, %v1368_v22, %v1369_v21  ;;  %vm5489_vm6 = vmmov %vm5486_vm3  ;;  %v1381_v28 = vsel %vm5492_vm11, %v1362_v61, %v1377_v19  ;;  %v1414_v35 = vmin.f32 %v1342_v26, %v1382_v58  ;;  %v1422_v18 = vmax.f32 %v1342_v26, %v1382_v58  ;;  %v5503_v61 = vld [vmem:[#allocation57_spill] sm:$0xff] }
 0x1f7   :  { %v1372_v27 = vsel %vm5489_vm6, %v1370_v38, %v1371_v25  ;;  %vm5490_vm5 = vmmov %vm5486_vm3  ;;  %v1413_v46 = vmin.f32 %v1341_v49, %v1381_v28  ;;  %v1421_v24 = vmax.f32 %v1341_v49, %v1381_v28  ;;  %v1384_v32 = vsel %vm5502_vm13, %v1359_v10, %v1374_v52  ;;  %v5505_v49 = vld [vmem:[#allocation58_spill] sm:$0xff] }
 0x1f8   :  { %v1373_v3 = vsel %vm5490_vm5, %v1369_v21, %v1370_v38  ;;  %vm5491_vm10 = vmmov %vm5486_vm3  ;;  %v1386_v15 = vsel %vm5496_vm1, %v1357_v59, %v1372_v27  ;;  %vm5504_vm7 = vnez %v5503_v61  ;;  %v5511_v59 = vld [vmem:[#allocation70_spill] sm:$0xff]  ;;  %vm5513_vm5 = vcmp.lt.s32.totalorder %v1992_v31, 1  ;;  %v5536_v61 = vld [vmem:[#allocation61_spill] sm:$0xff] }
 0x1f9   :  { %v1379_v11 = vsel %vm5491_vm10, %v1371_v25, %v1364_v14  ;;  %v1385_v2 = vsel %vm5495_vm15, %v1358_v34, %v1373_v3  ;;  %v1418_v50 = vmin.f32 %v1346_v45, %v1386_v15  ;;  %v1426_v56 = vmax.f32 %v1346_v45, %v1386_v15  ;;  %vm5500_vm0 = vmmov %vm5486_vm3  ;;  %v5509_v45 = vld [vmem:[#allocation65_spill] sm:$0xff]  ;;  %v5521_v15 = vld [vmem:[#allocation54_spill] sm:$0xff] }
 0x1fa   :  { %v1387_v5 = vsel %vm5497_vm4, %v1356_v29, %v1379_v11  ;;  %v1417_v6 = vmin.f32 %v1345_v41, %v1385_v2  ;;  %v1425_v44 = vmax.f32 %v1345_v41, %v1385_v2  ;;  %v4157_v0 = vsel %vm5499_vm12, %v1413_v46, %v1421_v24  ;;  %vm5516_vm11 = vmmov %vm5513_vm5 }
 0x1fb   :  { %v1419_v17 = vmin.f32 %v1347_v9, %v1387_v5  ;;  %v1427_v42 = vmax.f32 %v1347_v9, %v1387_v5  ;;  %v1378_v1 = vsel %vm5500_vm0, %v1364_v14, %v1365_v30  ;;  %v4165_v29 = vsel %vm5504_vm7, %v1414_v35, %v1422_v18  ;;  %vm5518_vm2 = vmmov %vm5517_vm8  ;;  %v5523_v35 = vld [vmem:[#allocation59_spill] sm:$0xff] }
 0x1fc   :  { %vm5506_vm3 = vnez %v5505_v49  ;;  %v1433_v41 = vsel %vm5508_vm9, %v1417_v6, %v1425_v44  ;;  %vm5510_vm14 = vnez %v5509_v45  ;;  %vm5512_vm6 = vnez %v5511_v59  ;;  %vm5525_vm0 = vmmov %vm5518_vm2 }
 0x1fd   :  { %v4169_v26 = vsel %vm5506_vm3, %v1415_v57, %v1423_v53  ;;  %v4175_v9 = vsel %vm5510_vm14, %v1418_v50, %v1426_v56  ;;  %v4179_v14 = vsel %vm5512_vm6, %v1419_v17, %v1427_v42  ;;  %v1437_v34 = vrot.slane %v4157_v0, 7  ;;  %vm5526_vm13 = vmmov %vm5513_vm5 }
 0x1fe   :  { %v1438_v30 = vrot.slane %v4165_v29, 7  ;;  %v1441_v8 = vrot.slane %v1433_v41, 7  ;;  %v1442_v16 = vrot.slane %v4175_v9, 7  ;;  %v1454_v22 = vrot.slane %v4165_v29, 1  ;;  %vm5527_vm7 = vmmov %vm5513_vm5 }
 0x1ff   :  { %v1455_v21 = vrot.slane %v4169_v26, 1  ;;  %v1458_v38 = vrot.slane %v4175_v9, 1  ;;  %v1459_v10 = vrot.slane %v4179_v14, 1  ;;  %vm5515_vm10 = vnez %v5514_v43  ;;  %vm5528_vm3 = vmmov %vm5513_vm5 }
 0x200   :  { %v1449_v25 = vsel %vm5513_vm5, %v1437_v34, %v1438_v30  ;;  %v1380_v60 = vsel %vm5515_vm10, %v1363_v20, %v1378_v1  ;;  %v1416_v19 = vmin.f32 %v4101_v7, %v1384_v32  ;;  %v1445_v52 = vsel %vm5516_vm11, %v1441_v8, %v1442_v16  ;;  %vm5529_vm9 = vmmov %vm5525_vm0 }
 0x201   :  { %v1464_v27 = vsel %vm5517_vm8, %v1454_v22, %v1455_v21  ;;  %v1412_v3 = vmin.f32 %v4091_v13, %v1380_v60  ;;  %v1420_v11 = vmax.f32 %v4091_v13, %v1380_v60  ;;  %v1460_v28 = vsel %vm5518_vm2, %v1458_v38, %v1459_v10  ;;  %vm5530_vm14 = vmmov %vm5525_vm0 }
 0x202   :  { %vm5519_vm15 = vnez %v5434_v33  ;;  %v1424_v20 = vmax.f32 %v4101_v7, %v1384_v32  ;;  %v1439_v36 = vrot.slane %v4169_v26, 7  ;;  %vm5520_vm1 = vnez %v5442_v23  ;;  %vm5531_vm6 = vmmov %vm5528_vm3 }
 0x203   :  { %v4203_v58 = vsel %vm5519_vm15, %v1449_v25, %v1464_v27  ;;  %v4209_v2 = vsel %vm5520_vm1, %v1445_v52, %v1460_v28  ;;  %vm5522_vm4 = vnez %v5521_v15  ;;  %v1443_v13 = vrot.slane %v4179_v14, 7  ;;  %vm5532_vm5 = vmmov %vm5528_vm3  ;;  %v5543_v27 = vld [vmem:[#allocation20_spill] sm:$0xff]  ;;  %v1544_v28 = vpop.permute.xlu1 %1543 }
 0x204   :  { %v1428_v5 = vsel %vm5522_vm4, %v1412_v3, %v1420_v11  ;;  %v1453_v46 = vrot.slane %v4157_v0, 1  ;;  %vm5524_vm12 = vnez %v5523_v35  ;;  %v1457_v50 = vrot.slane %v1433_v41, 1  ;;  %vm5533_vm10 = vmmov %vm5525_vm0  ;;  %v5546_v3 = vld [vmem:[#allocation24_spill] sm:$0xff] }
 0x205   :  { %v1432_v33 = vsel %vm5524_vm12, %v1416_v19, %v1424_v20  ;;  %v1436_v57 = vrot.slane %v1428_v5, 7  ;;  %v1452_v6 = vrot.slane %v1428_v5, 1  ;;  %v1444_v24 = vsel %vm5526_vm13, %v1442_v16, %v1443_v13  ;;  %vm5540_vm1 = vmmov %vm5528_vm3 }
 0x206   :  { %v1440_v7 = vrot.slane %v1432_v33, 7  ;;  %v1456_v17 = vrot.slane %v1432_v33, 1  ;;  %v1465_v23 = vsel %vm5525_vm0, %v1453_v46, %v1454_v22  ;;  %v1461_v44 = vsel %vm5529_vm9, %v1457_v50, %v1458_v38  ;;  %vm5542_vm12 = vmmov %vm5525_vm0 }
 0x207   :  { %v1450_v18 = vsel %vm5527_vm7, %v1436_v57, %v1437_v34  ;;  %v1451_v53 = vsel %vm5528_vm3, %v1443_v13, %v1436_v57  ;;  %v1466_v56 = vsel %vm5530_vm14, %v1452_v6, %v1453_v46  ;;  %vm5534_vm11 = vnez %v5430_v37 }
 0x208   :  { %v1446_v42 = vsel %vm5531_vm6, %v1440_v7, %v1441_v8  ;;  %v1447_v55 = vsel %vm5532_vm5, %v1439_v36, %v1440_v7  ;;  %v1462_v1 = vsel %vm5533_vm10, %v1456_v17, %v1457_v50  ;;  %v1468_v51 = vsel %vm5534_vm11, %v1451_v53, %v1466_v56  ;;  %v5556_v53 = vld [vmem:[#allocation26_spill] sm:$0xff] }
 0x209   :  { %vm5535_vm8 = vnez %v5432_v62  ;;  %vm5537_vm2 = vnez %v5536_v61  ;;  %vm5539_vm15 = vnez %v5538_v4  ;;  %v1500_v59 = vmin.f32 %v1428_v5, %v1468_v51  ;;  %v134_v4 = vpop.permute.xlu1 %133 }
 0x20a   :  { %v1469_v32 = vsel %vm5535_vm8, %v1450_v18, %v1465_v23  ;;  %v1472_v49 = vsel %vm5537_vm2, %v1447_v55, %v1462_v1  ;;  %v1473_v45 = vsel %vm5539_vm15, %v1446_v42, %v1461_v44  ;;  %v1508_v22 = vmax.f32 %v1428_v5, %v1468_v51  ;;  %v35_v5 = vld [vmem:[%s4350_s3 + $0x10] sm:$0xff]  ;;  %v38_v23 = vld [vmem:[%s4350_s3 + $0x28] sm:$0xff]  ;;  %v40_v1 = vld [vmem:[%s4350_s3 + $0x38] sm:$0xff] }
 0x20b   :  { %v1501_v34 = vmin.f32 %v4157_v0, %v1469_v32  ;;  %v1504_v8 = vmin.f32 %v1432_v33, %v1472_v49  ;;  %v1505_v16 = vmin.f32 %v1433_v41, %v1473_v45  ;;  %v1509_v38 = vmax.f32 %v4157_v0, %v1469_v32  ;;  %v39_v55 = vld [vmem:[%s4350_s3 + $0x30] sm:$0xff] }
 0x20c   :  { %v1512_v25 = vmax.f32 %v1432_v33, %v1472_v49  ;;  %v1513_v37 = vmax.f32 %v1433_v41, %v1473_v45  ;;  %v1448_v62 = vsel %vm5540_vm1, %v1438_v30, %v1439_v36  ;;  %vm5541_vm4 = vnez %v5446_v39  ;;  %v5548_v39 = vld [vmem:[#allocation72_spill] sm:$0xff]  ;;  %v5550_v36 = vld [vmem:[#allocation73_spill] sm:$0xff] }
 0x20d   :  { %v1516_v43 = vsel %vm5541_vm4, %v1500_v59, %v1508_v22  ;;  %v1463_v60 = vsel %vm5542_vm12, %v1455_v21, %v1456_v17  ;;  %v1467_v19 = vsel %vm5525_vm0, %v1459_v10, %v1452_v6  ;;  %v1502_v52 = vmin.f32 %v4165_v29, %v4203_v58  ;;  %v37_v17 = vld [vmem:[%s4350_s3 + $0x20] sm:$0xff] }
 0x20e   :  { %vm5544_vm13 = vnez %v5543_v27  ;;  %vm5545_vm7 = vnez %v5454_v48  ;;  %vm5547_vm3 = vnez %v5546_v3  ;;  %vm5549_vm9 = vnez %v5548_v39  ;;  %v36_v48 = vld [vmem:[%s4350_s3 + $0x18] sm:$0xff]  ;;  %s1892_s3 = smov 40  }
 0x20f   :  { %v1517_v0 = vsel %vm5544_vm13, %v1501_v34, %v1509_v38  ;;  %v1520_v41 = vsel %vm5545_vm7, %v1504_v8, %v1512_v25  ;;  %v1521_v30 = vsel %vm5547_vm3, %v1505_v16, %v1513_v37  ;;  %v1471_v11 = vsel %vm5549_vm9, %v1448_v62, %v1463_v60  ;;  %v5559_v34 = vld [vmem:[#allocation44_spill] sm:$0xff] }
 0x210   :  { %v1524_v21 = vsub.f32 %v1516_v43, %v1520_v41  ;;  %v1525_v20 = vsub.f32 %v1517_v0, %v1521_v30  ;;  %vm5551_vm14 = vnez %v5550_v36  ;;  %v1503_v15 = vmin.f32 %v4169_v26, %v1471_v11  ;;  %v5562_v41 = vld [vmem:[#allocation5_spill] sm:$0xff] }
 0x211   :  { %v1475_v10 = vsel %vm5551_vm14, %v1444_v24, %v1467_v19  ;;  %v1506_v13 = vmin.f32 %v4175_v9, %v4209_v2  ;;  %v1510_v35 = vmax.f32 %v4165_v29, %v4203_v58  ;;  %v1511_v33 = vmax.f32 %v4169_v26, %v1471_v11  ;;  %v5553_v26 = vld [vmem:[#allocation22_spill] sm:$0xff] }
 0x212   :  { %v1507_v46 = vmin.f32 %v4179_v14, %v1475_v10  ;;  %v1528_v57 = vand.u32 2147483647, %v1524_v21  ;;  %v1529_v6 = vand.u32 2147483647, %v1525_v20  ;;  %v1514_v50 = vmax.f32 %v4175_v9, %v4209_v2  ;;  %v4294_v9 = vld [vmem:[%s4352_s5] sm:$0x3f] }
 0x213   :  { %v1515_v7 = vmax.f32 %v4179_v14, %v1475_v10  ;;  %v1545_v24 = vrot.slane %v1544_v28, 2  ;;  %vm5552_vm6 = vnez %v5450_v40  ;;  %vm5554_vm5 = vnez %v5553_v26  ;;  %v5563_v21 = vld [vmem:[#allocation29_spill] sm:$0xff] }
 0x214   :  { %v1518_v29 = vsel %vm5552_vm6, %v1502_v52, %v1510_v35  ;;  %v1519_v58 = vsel %vm5554_vm5, %v1503_v15, %v1511_v33  ;;  %v1811_v18 = vpack.c.bf16 %v36_v48, %v35_v5  ;;  %v1828_v14 = vpack.c.bf16 %v1529_v6, %v1528_v57 }
 0x215   :  { %vm5555_vm10 = vnez %v5458_v54  ;;  %vm5557_vm11 = vnez %v5556_v53  ;;  %v1814_v40 = vpack.c.bf16 %v38_v23, %v37_v17  ;;  %v1711_v54 = vmul.f32 -1.442695, %v4294_v9 }
 0x216   :  { %v1522_v2 = vsel %vm5555_vm10, %v1506_v13, %v1514_v50  ;;  %v1523_v44 = vsel %vm5557_vm11, %v1507_v46, %v1515_v7  ;;  %1812 = vmatpush3.bf16.msra.mxu1 %v1811_v18  ;;  %1829 = vmatpush3.bf16.msra.mxu0 %v1828_v14  ;;  %vm1539_vm8 = vcmp.ge.s32.totalorder %v3989_v63, 0  ;;  %vm1547_vm2 = vcmp.lt.f32.partialorder %v1540_v12, %v1545_v24 }
 0x217   :  { %v1526_v56 = vsub.f32 %v1518_v29, %v1522_v2  ;;  %v1527_v42 = vsub.f32 %v1519_v58, %v1523_v44  ;;  %1813 = vmatprep.subr.bf16.mxu1 %v5469_v47  ;;  %1830 = vmatprep.subr.bf16.mxu0 %v5469_v47  ;;  %1853 = vpow2.f32 %v1711_v54  ;;  %v1817_v49 = vpack.c.bf16 %v40_v1, %v39_v55  ;;  %vm1548_vm15 = vmand %vm1539_vm8, %vm1547_vm2 }
 0x218   :  { %v5558_v45 = vmov 0.0   ;;  %vm5560_vm1 = vcmask 261120   ;;  %vm147_vm4 = vcmask 523264   ;;  %vm1626_vm0 = vcmask 254976  }
 0x219   :  { %v1530_v51 = vand.u32 2147483647, %v1526_v56  ;;  %v1531_v32 = vand.u32 2147483647, %v1527_v42  ;;  %v1717_v59 = vsel %vm1548_vm15, 1.0, %v5558_v45  ;;  %v136_v63 = vsel %vm5560_vm1, %v5559_v34, %v134_v4  ;;  %vm5561_vm12 = vmmov %vm5560_vm1 }
 0x21a   :  { %1815 = vmatpush3.bf16.msra.mxu1 %v1814_v40  ;;  %vm1630_vm13 = vcmp.gt.f32.partialorder %v5562_v41, 0.5  ;;  %v145_v39 = vsub.s32 4, %v1992_v31  ;;  %vm223_vm7 = vcmp.lt.s32.totalorder %v5563_v21, 24  ;;  %vm1640_vm3 = vcmask 326656  }
 0x21b   :  { %v1831_v61 = vpack.c.bf16 %v1531_v32, %v1530_v51  ;;  %1816 = vmatprep.subr.bf16.mxu1 %v5469_v47  ;;  %vm1642_vm9 = vcmask 328704   ;;  %v1687_v50 = vsub.s32 5, %v1992_v31  ;;  %v1659_v29 = vsub.s32 0, %v1992_v31 }
 0x21c   :  { %v146_v11 = vrot.slane %v4294_v9, %v145_v39  ;;  %v1664_v26 = vsub.s32 1, %v1992_v31  ;;  %v1669_v18 = vsub.s32 2, %v1992_v31  ;;  %v1677_v44 = vsub.s32 3, %v1992_v31 }
 0x21d   :  { %1832 = vmatpush3.bf16.msra.mxu0 %v1831_v61  ;;  %v1688_v7 = vrot.slane %v4294_v9, %v1687_v50  ;;  %v1660_v58 = vrot.slane %v4294_v9, %v1659_v29  ;;  %vm1683_vm14 = vcmask 7168   ;;  %vm1694_vm6 = vcmask 9216  }
 0x21e   :  { %1818 = vmatpush3.bf16.msra.mxu1 %v1817_v49  ;;  %v1665_v53 = vrot.slane %v4294_v9, %v1664_v26  ;;  %v1670_v42 = vrot.slane %v4294_v9, %v1669_v18  ;;  %v1678_v55 = vrot.slane %v4294_v9, %v1677_v44 }
 0x220   :  { %1799 = vmatmul.mubr.msk.f32.vlgmr.msra.gmra.mrb[6].mxu0 %vm5561_vm12, %v1717_v59 }
 0x221   :  { %1774 = vmatmul.mubr.msk.f32.vlgmr.msra.gmra.mrb[0].mxu1 %vm147_vm4, %v136_v63  ;;  %v1854_v12 = vpop.eup %1853 }
 0x222   :  { %v140_v8 = vadd.f32 1.0, %v1854_v12 }
 0x224   :  { %1855 = vrcp.f32 %v140_v8 }
 0x225   :  { %1857 = vrcp.f32 %v1545_v24 }
 0x22e   :  { %v1856_v16 = vpop.eup %1855 }
 0x22f   :  { %v224_v22 = vsub.f32 1.0, %v1856_v16  ;;  %v231_v38 = vrot.slane %v1856_v16, 5  ;;  %v1858_v47 = vpop.eup %1857 }
 0x231   :  { %v226_v25 = vrot.slane %v224_v22, 5 }
 0x233   :  { %1833 = vpush %v226_v25 }
 0x234   :  { %1835 = vpush %v231_v38 }
 0x264   :  { %s1834_s11 = spop %1833 }
 0x265   :  { %s1836_s12 = spop %1835  ;;  %v228_v28 = vstv %s1834_s11 }
 0x266   :  { %v233_v20 = vstv %s1836_s12 }
 0x267   :  { %v235_v10 = vsel %vm223_vm7, %v228_v28, %v233_v20 }
 0x2f3   :  { %v1620_v37 = vpop.f32.mrb[6].mxu0 }
 0x2f4   :  { %v1625_v62 = vmul.f32 %v1858_v47, %v1620_v37  ;;  %v1800_v43 = vpop.f32.mrb[7].mxu0  ;;  %v217_v60 = vpop.f32.mrb[0].mxu1 }
 0x2f5   :  { %v1775_v52 = vpop.f32.mrb[1].mxu1  ;;  %v218_v36 = vadd.f32 %v217_v60, %v146_v11 }
 0x2f6   :  { %v1627_v19 = vsel %vm1626_vm0, %v1625_v62, -inf }
 0x2f7   :  { %1628 = vmax.xlane.f32.xlu1 %v1627_v19  ;;  %v236_v15 = vmul.f32 %v235_v10, %v218_v36 }
 0x384   :  { %v1629_v27 = vpop.xlane.xlu1 %1628 }
 0x385   :  { %v1632_v0 = vrot.slane %v1629_v27, 6 }
 0x387   :  { %v1634_v3 = vsel %vm1630_vm13, %v1632_v0, 0.0 }
 0x388   :  { %v1636_v30 = vrot.slane %v1634_v3, 2 }
 0x38a   :  { %1637 = vrot.lane.b32.xlu0 %v1636_v30, %s1892_s3 }
 0x3fc   :  { %v1638_v5 = vpop.permute.xlu0 %1637 }
 0x3fd   :  { %v1641_v48 = vsel %vm1640_vm3, %v236_v15, %v1638_v5 }
 0x3fe   :  { %v1643_v13 = vsel %vm1642_vm9, %v1641_v48, 0.0 }
 0x3ff   :  { %1644 = vadd.xlane.f32.xlu0 %v1643_v13 }
 0x415   :  { %1690 = vrot.lane.b32.xlu0 %v1688_v7, %s1893_s13 }
 0x48c   :  { %v1645_v46 = vpop.xlane.xlu0 %1644 }
 0x48d   :  { %v1647_v35 = vmul.f32 0.024390243, %v1645_v46 }
 0x48f   :  { %v1648_v33 = vsub.f32 %v1641_v48, %v1647_v35 }
 0x490   :  { %v1691_v49 = vpop.permute.xlu0 %1690 }
 0x491   :  { %v1649_v57 = vmul.f32 %v1648_v33, %v1648_v33 }
 0x493   :  { %v1650_v6 = vsel %vm1642_vm9, %v1649_v57, 0.0 }
 0x494   :  { %1651 = vadd.xlane.f32.xlu1 %v1650_v6 }
 0x521   :  { %v1652_v17 = vpop.xlane.xlu1 %1651 }
 0x522   :  { %v1653_v23 = vmul.f32 0.024390243, %v1652_v17 }
 0x524   :  { %v1654_v24 = vadd.f32 1e-05, %v1653_v23 }
 0x526   :  { %1859 = vrsqrt.f32 %v1654_v24 }
 0x530   :  { %v1860_v14 = vpop.eup %1859 }
 0x531   :  { %v1656_v2 = vmul.f32 %v1860_v14, %v1648_v33 }
 0x533   :  { %v1661_v56 = vmul.f32 %v1660_v58, %v1656_v2 }
 0x535   :  { %v1666_v40 = vadd.f32 %v1665_v53, %v1661_v56 }
 0x537   :  { %v1671_v1 = vmul.f32 %v1670_v42, %v1666_v40  ;;  %v1679_v51 = vmul.f32 %v1678_v55, %v1666_v40 }
 0x539   :  { %v1672_v54 = vsel %vm1642_vm9, %v1671_v1, 0.0  ;;  %v1680_v32 = vsel %vm1642_vm9, %v1679_v51, 0.0 }
 0x53a   :  { %1673 = vadd.xlane.f32.xlu1 %v1672_v54 }
 0x53e   :  { %1681 = vadd.xlane.f32.xlu1 %v1680_v32 }
 0x5c7   :  { %v1674_v61 = vpop.xlane.xlu1 %1673 }
 0x5cb   :  { %v1682_v31 = vpop.xlane.xlu1 %1681 }
 0x5cc   :  { %v1684_v4 = vsel %vm1683_vm14, %v1674_v61, %v1682_v31 }
 0x5cd   :  { %v1693_v45 = vadd.f32 %v1691_v49, %v1684_v4 }
 0x5cf   :  { %1695 = vst.msk [vmem:[#allocation2] sm:$0x3] %vm1694_vm6, %v1693_v45 }
 0x5d0   :  { %1872 = shalt.err (!%p1869_p4)
}
 0x5d1   :  { %s1873_s19 = scalar_lea.hbm %s4353_s6, 32 }
 0x5d2   :  { %p1874_p5 = scmp.ne.s32.totalorder %s4353_s6, %s1873_s19  ;;  %p1877_p6 = scmp.lt.u32.totalorder %s1873_s19, %s4353_s6 }
 0x5d4   :  { %p1879_p7 = pnand %p1877_p6, %p1874_p5 }
 0x5d6   :  { %1882 = shalt.err (!%p1879_p7)
}
 0x5d7   :  { %1705 = dma.vmem_to_hbm [thread:$0]  %s1703_s15, 32, %s4353_s6, [#allocation3]  }
 0x5d8   :  { %1883 = dma.done.wait [#allocation3], 32  }
 0x5d9   :  { %1884 = vsyncadd [#allocation3], 4294967264 }
 0x5da   :  { %1709 = vsyncpa [#allocation3], 1 }

</bundles_post_ra>
